<compile_context>
chip_gen: v5e
topology: v5e:2x2
jax: 0.10.0
libtpu: 0.0.40
codegen_flags: <defaults>
</compile_context>

<pallas_src>
import functools

import jax
import jax.numpy as jnp
from jax.experimental import pallas as pl
from jax.experimental.pallas import tpu as pltpu


def _leaky_relu(x, slope):
    return jnp.where(x >= 0.0, x, slope * x)


def _elu(x):
    # clamp before exp so large positives never hit inf in the discarded branch
    return jnp.where(x > 0.0, x, jnp.exp(jnp.minimum(x, 0.0)) - 1.0)


def _attend(g, st, n_heads, d, slope):
    """Batched per-head softmax attention + aggregation + fused ELU.

    g:  (Bt, N, H*d) f32 head-major projected features
    st: (Bt, N, 2H)  f32 folded logit terms; [..., :H] = a_l.g_i, [..., H:] = a_r.g_j
    returns (Bt, N, H*d) f32 — lane-dense concat of head results.
    """
    s_src = st[..., :n_heads]                                   # (Bt, N, H), N in sublanes
    # ONE small XLU transpose for all heads: the j-term needs N in the lane dim.
    t_dst = jnp.transpose(st[..., n_heads:], (0, 2, 1))         # (Bt, H, N), N in lanes
    outs = []
    # TODO(synk): for large N switch this static unroll to lax.fori_loop + query tiling so
    # only one head's (N,N) temporaries are live at a time (VMEM O(N_tile*N), v7x 64 MiB).
    for h in range(n_heads):
        e = s_src[..., h:h + 1] + t_dst[:, h:h + 1, :]          # (Bt,N,N): e[i,j]=a_l.g_i+a_r.g_j
        e = _leaky_relu(e, slope)
        m = jnp.max(e, axis=-1, keepdims=True)
        p = jnp.exp(e - m)
        # softmax over neighbours j; divide done on the otherwise-idle EUP slot.
        attn = p * pl.reciprocal(jnp.sum(p, axis=-1, keepdims=True), approx=True)
        # TODO(synk): attention dropout omitted — identity in eval/inference mode.
        gh = g[..., h * d:(h + 1) * d]                          # (Bt, N, d)
        # Aggregation kept in f32: these per-graph matmuls are shape-bound (<=16 rows/cols),
        # so bf16 buys no MXU throughput here and would only cost accuracy.
        r = jnp.einsum("bij,bjd->bid", attn, gh,
                       preferred_element_type=jnp.float32)      # (Bt, N, d)
        outs.append(_elu(r))
    return jnp.concatenate(outs, axis=-1)                       # (Bt, N, H*d), lane-dense


def _gat_backbone_kernel(x_ref, w1_ref, w2_ref, o_ref, *, n_heads, d1, d2, leaky_slope):
    bt, n, _ = x_ref.shape
    hd1 = n_heads * d1
    hd2 = n_heads * d2

    # -------- layer 1: GraphAttentionLayer(3 -> 128, 8 heads) + ELU ------------------------
    f = x_ref[...].astype(jnp.float32)                          # (Bt, N, 3)
    w1 = w1_ref[...]                                            # (3, hd1 + 2H) = [W1 | W1@A1]
    # K=3 projection (+ folded attention-logit columns) as three VPU broadcast-FMAs;
    # an MXU pass at K=3 would be ~all padding.
    y1 = (f[..., 0:1] * w1[0:1, :]
          + f[..., 1:2] * w1[1:2, :]
          + f[..., 2:3] * w1[2:3, :])                           # (Bt, N, hd1 + 2H)
    g1 = y1[..., :hd1]                                          # (Bt, N, 128)
    st1 = y1[..., hd1:]                                         # (Bt, N, 2H)
    hid = _attend(g1, st1, n_heads, d1, leaky_slope)            # (Bt, N, 128), stays on-chip

    # -------- layer 2: GraphAttentionLayer(128 -> 512, 8 heads) + ELU ----------------------
    w2 = w2_ref[...]                                            # (hd1, hd2 + 2H) bf16 = [W2 | W2@A2]
    # One lane-dense MXU pass over the whole (Bt*N)-row block yields g2 AND st2.
    # bf16 operands, f32 accumulation.
    y2 = jnp.dot(hid.reshape(bt * n, hd1).astype(w2.dtype), w2,
                 preferred_element_type=jnp.float32)            # (Bt*N, hd2 + 2H)
    y2 = y2.reshape(bt, n, hd2 + 2 * n_heads)
    g2 = y2[..., :hd2]                                          # (Bt, N, 512)
    st2 = y2[..., hd2:]                                         # (Bt, N, 2H)
    out = _attend(g2, st2, n_heads, d2, leaky_slope)            # (Bt, N, 512)

    # single, fully lane-dense 512-lane store — no masked partial stores.
    o_ref[...] = out.astype(o_ref.dtype)
    # TODO(synk): final nn.Dropout omitted — identity in eval/inference mode.


def _pick_block_b(b, n, max_rows=256):
    """Largest divisor of b with block_b*n <= max_rows rows per step.

    Prefer leaving >=2 grid steps (keeps both v7x TensorCores busy) as long as the
    MXU M dim stays >= 128 (on v5e's 128-row MXU, 256 rows is two clean passes).
    """
    divisors = [c for c in range(1, b + 1) if b % c == 0 and c * n <= max_rows]
    if not divisors:
        return 1
    good = [c for c in divisors if b // c >= 2 and c * n >= 128]
    return max(good) if good else max(divisors)


def gat_backbone(xyz, w1_cat, w2_cat, *, n_heads=8, leaky_slope=0.2, block_b=None):
    """xyz: (B, N, 3); w*_cat: (F_in, H*D + 2H) = [W | W@A_pack].  Returns (B, N, H*D2) f32."""
    b, n, f_in = xyz.shape
    hd1 = w1_cat.shape[1] - 2 * n_heads
    hd2 = w2_cat.shape[1] - 2 * n_heads
    d1, d2 = hd1 // n_heads, hd2 // n_heads
    assert w1_cat.shape[0] == f_in and w2_cat.shape[0] == hd1
    assert hd1 % n_heads == 0 and hd2 % n_heads == 0

    if block_b is None:
        block_b = _pick_block_b(b, n)
    assert b % block_b == 0, (b, block_b)
    grid_b = b // block_b

    kernel = functools.partial(_gat_backbone_kernel, n_heads=n_heads, d1=d1, d2=d2,
                               leaky_slope=leaky_slope)

    flops = 2 * b * n * (f_in * (hd1 + 2 * n_heads)            # layer-1 proj + folded logits
                         + hd1 * (hd2 + 2 * n_heads)           # layer-2 proj + folded logits
                         + n_heads * n * (d1 + d2 + 2))        # per-head aggregation + logit adds
    transcendentals = b * (2 * n_heads * n * n                 # softmax exps
                           + 2 * n_heads * n                   # approx reciprocals
                           + n * (hd1 + hd2))                  # ELU exps (worst case)
    bytes_accessed = (xyz.size * xyz.dtype.itemsize
                      + w1_cat.size * w1_cat.dtype.itemsize
                      + w2_cat.size * w2_cat.dtype.itemsize
                      + b * n * hd2 * 4)

    return pl.pallas_call(
        kernel,
        out_shape=jax.ShapeDtypeStruct((b, n, hd2), jnp.float32),
        grid_spec=pltpu.PrefetchScalarGridSpec(
            num_scalar_prefetch=0,
            grid=(grid_b,),
            in_specs=[
                pl.BlockSpec((block_b, n, f_in), lambda i: (i, 0, 0)),
                # constant index_map -> weights DMA'd once; explicit pl.Buffered(1)
                # single-buffering would only save ~0.3 MB here (w2_cat is bf16).
                pl.BlockSpec((f_in, hd1 + 2 * n_heads), lambda i: (0, 0)),
                pl.BlockSpec((hd1, hd2 + 2 * n_heads), lambda i: (0, 0)),
            ],
            out_specs=pl.BlockSpec((block_b, n, hd2), lambda i: (i, 0, 0)),
        ),
        compiler_params=pltpu.CompilerParams(
            dimension_semantics=("parallel",),
            # explicit VMEM budget; per-step working set here is well under this
            # on all of v5e (128 MiB), v6e (128 MiB) and v7x (64 MiB).
            vmem_limit_bytes=32 * 1024 * 1024,
        ),
        cost_estimate=pl.CostEstimate(flops=flops, transcendentals=transcendentals,
                                      bytes_accessed=bytes_accessed),
    )(xyz, w1_cat, w2_cat)


# ---------------- parameter setup (deterministic, torch nn.Linear layouts) ----------------

def init_params(key):
    k1, k2, k3, k4 = jax.random.split(key, 4)
    # layer1: GraphAttentionLayer(3, 128, 8)  -> n_hidden = 16
    w1 = jax.random.normal(k1, (128, 3), jnp.float32) / jnp.sqrt(3.0)      # torch Linear (out, in)
    a1 = jax.random.normal(k2, (1, 32), jnp.float32) / jnp.sqrt(32.0)      # attn weight (1, 2*D)
    # layer4: GraphAttentionLayer(128, 512, 8) -> n_hidden = 64
    w4 = jax.random.normal(k3, (512, 128), jnp.float32) / jnp.sqrt(128.0)
    a4 = jax.random.normal(k4, (1, 128), jnp.float32) / jnp.sqrt(128.0)
    return {"w1": w1, "a1": a1, "w4": w4, "a4": a4}


def prep_layer(w, a, n_heads):
    """torch Linear (out,in) + attn (1, 2D)  ->  [W_flat | W_flat @ A_pack]  of shape (F_in, H*D + 2H).

    Folding the attention-logit projection into W offline removes the
    (N, H*D) @ (H*D, 2H) logit matmul from the kernel entirely.
    """
    out_dim, _ = w.shape
    d = out_dim // n_heads
    # torch Linear: g = f @ W.T ; output slot o = h*D + d_idx is already head-major.
    w_flat = jnp.transpose(w)                              # (F_in, H*D)
    a_l = a[0, :d]
    a_r = a[0, d:]
    eye = jnp.eye(n_heads, dtype=a.dtype)
    left = jnp.kron(eye, a_l.reshape(d, 1))                # (H*D, H) block-diagonal a_l columns
    right = jnp.kron(eye, a_r.reshape(d, 1))               # (H*D, H) block-diagonal a_r columns
    a_pack = jnp.concatenate([left, right], axis=1)        # (H*D, 2H)
    return jnp.concatenate([w_flat, w_flat @ a_pack], axis=1)   # (F_in, H*D + 2H)


def backbone_forward(x, params):
    xyz = x[..., :3]
    w1_cat = prep_layer(params["w1"], params["a1"], 8)                       # (3, 144) f32 (VPU path)
    # bf16 weights for the MXU pass: ~2-3x MXU throughput, half the DMA/VMEM; f32 accumulate.
    w2_cat = prep_layer(params["w4"], params["a4"], 8).astype(jnp.bfloat16)  # (128, 528)
    return gat_backbone(xyz, w1_cat, w2_cat)                                 # (B, N, 512)


# ---------------- pure-JAX reference (mirrors the PyTorch forward) ----------------

def _gat_ref(f, w, a, n_heads, slope=0.2):
    b, n, _ = f.shape
    hd = w.shape[0]
    d = hd // n_heads
    g = jnp.einsum("bnf,of->bno", f, w).reshape(b, n, n_heads, d)
    a_l, a_r = a[0, :d], a[0, d:]
    e_src = jnp.einsum("bnhd,d->bnh", g, a_l)
    e_dst = jnp.einsum("bnhd,d->bnh", g, a_r)
    e = e_src[:, :, None, :] + e_dst[:, None, :, :]
    e = jnp.where(e >= 0, e, slope * e)
    attn = jax.nn.softmax(e, axis=2)
    res = jnp.einsum("bijh,bjhd->bihd", attn, g)
    return res.reshape(b, n, hd)


def backbone_ref(x, params):
    xyz = x[..., :3]
    p = jax.nn.elu(_gat_ref(xyz, params["w1"], params["a1"], 8))
    p = jax.nn.elu(_gat_ref(p, params["w4"], params["a4"], 8))
    return p


if __name__ == "__main__":
    key = jax.random.PRNGKey(0)
    kx, kp = jax.random.split(key)
    x = jax.random.normal(kx, (2, 16, 4), jnp.float32)   # (B, N, C) — first 3 channels are xyz
    params = init_params(kp)

    out = jax.block_until_ready(backbone_forward(x, params))
    assert out.shape == (2, 16, 512), out.shape

    ref = backbone_ref(x, params)
    err = float(jnp.max(jnp.abs(out - ref)))
    # bf16 MXU operands (layer-2 projection) with f32 accumulation + approx reciprocal:
    # observed error is O(1e-3); 2e-2 gives comfortable margin.
    assert jnp.allclose(out, ref, rtol=2e-2, atol=2e-2), f"max abs err {err}"

    print("KERNEL_OK")
</pallas_src>

<mosaic_0001>
module attributes {stable_mosaic.version = 11 : i64} {
  func.func @_gat_backbone_kernel(%arg0: i32, %arg1: memref<2x16x3xf32, #tpu.memory_space<vmem>>, %arg2: memref<3x144xf32, #tpu.memory_space<vmem>>, %arg3: memref<128x528xbf16, #tpu.memory_space<vmem>>, %arg4: memref<2x16x512xf32, #tpu.memory_space<vmem>>) attributes {dimension_semantics = [#tpu.dimension_semantics<parallel>], iteration_bounds = array<i64: 1>, scalar_prefetch = 0 : i64, scratch_operands = 0 : i64, tpu.core_type = #tpu.core_type<tc>, window_params = [{transform_indices = @transform_0, window_bounds = array<i64: 2, 16, 3>}, {pipeline_mode = #tpu.pipeline_mode<synchronous>, transform_indices = @transform_1, window_bounds = array<i64: 3, 144>}, {pipeline_mode = #tpu.pipeline_mode<synchronous>, transform_indices = @transform_2, window_bounds = array<i64: 128, 528>}, {transform_indices = @transform_3, window_bounds = array<i64: 2, 16, 512>}]} {
    %c0 = arith.constant 0 : index
    %c0_0 = arith.constant 0 : index
    %c0_1 = arith.constant 0 : index
    %0 = vector.load %arg1[%c0, %c0_0, %c0_1] : memref<2x16x3xf32, #tpu.memory_space<vmem>>, vector<2x16x3xf32>
    %c0_2 = arith.constant 0 : index
    %c0_3 = arith.constant 0 : index
    %1 = vector.load %arg2[%c0_2, %c0_3] : memref<3x144xf32, #tpu.memory_space<vmem>>, vector<3x144xf32>
    %2 = vector.extract_strided_slice %0 {offsets = [0, 0, 0], sizes = [2, 16, 1], strides = [1, 1, 1]} : vector<2x16x3xf32> to vector<2x16x1xf32>
    %3 = vector.extract_strided_slice %1 {offsets = [0, 0], sizes = [1, 144], strides = [1, 1]} : vector<3x144xf32> to vector<1x144xf32>
    %4 = vector.shape_cast %3 : vector<1x144xf32> to vector<1x1x144xf32>
    %5 = vector.broadcast %2 : vector<2x16x1xf32> to vector<2x16x144xf32>
    %6 = vector.broadcast %4 : vector<1x1x144xf32> to vector<2x16x144xf32>
    %7 = arith.mulf %5, %6 : vector<2x16x144xf32>
    %8 = vector.extract_strided_slice %0 {offsets = [0, 0, 1], sizes = [2, 16, 1], strides = [1, 1, 1]} : vector<2x16x3xf32> to vector<2x16x1xf32>
    %9 = vector.extract_strided_slice %1 {offsets = [1, 0], sizes = [1, 144], strides = [1, 1]} : vector<3x144xf32> to vector<1x144xf32>
    %10 = vector.shape_cast %9 : vector<1x144xf32> to vector<1x1x144xf32>
    %11 = vector.broadcast %8 : vector<2x16x1xf32> to vector<2x16x144xf32>
    %12 = vector.broadcast %10 : vector<1x1x144xf32> to vector<2x16x144xf32>
    %13 = arith.mulf %11, %12 : vector<2x16x144xf32>
    %14 = arith.addf %7, %13 : vector<2x16x144xf32>
    %15 = vector.extract_strided_slice %0 {offsets = [0, 0, 2], sizes = [2, 16, 1], strides = [1, 1, 1]} : vector<2x16x3xf32> to vector<2x16x1xf32>
    %16 = vector.extract_strided_slice %1 {offsets = [2, 0], sizes = [1, 144], strides = [1, 1]} : vector<3x144xf32> to vector<1x144xf32>
    %17 = vector.shape_cast %16 : vector<1x144xf32> to vector<1x1x144xf32>
    %18 = vector.broadcast %15 : vector<2x16x1xf32> to vector<2x16x144xf32>
    %19 = vector.broadcast %17 : vector<1x1x144xf32> to vector<2x16x144xf32>
    %20 = arith.mulf %18, %19 : vector<2x16x144xf32>
    %21 = arith.addf %14, %20 : vector<2x16x144xf32>
    %22 = vector.extract_strided_slice %21 {offsets = [0, 0, 0], sizes = [2, 16, 128], strides = [1, 1, 1]} : vector<2x16x144xf32> to vector<2x16x128xf32>
    %23 = vector.extract_strided_slice %21 {offsets = [0, 0, 128], sizes = [2, 16, 16], strides = [1, 1, 1]} : vector<2x16x144xf32> to vector<2x16x16xf32>
    %24 = vector.extract_strided_slice %23 {offsets = [0, 0, 0], sizes = [2, 16, 8], strides = [1, 1, 1]} : vector<2x16x16xf32> to vector<2x16x8xf32>
    %25 = vector.extract_strided_slice %23 {offsets = [0, 0, 8], sizes = [2, 16, 8], strides = [1, 1, 1]} : vector<2x16x16xf32> to vector<2x16x8xf32>
    %26 = tpu.transpose %25, [0, 2, 1] : vector<2x16x8xf32> -> vector<2x8x16xf32>
    %27 = vector.extract_strided_slice %24 {offsets = [0, 0, 0], sizes = [2, 16, 1], strides = [1, 1, 1]} : vector<2x16x8xf32> to vector<2x16x1xf32>
    %28 = vector.extract_strided_slice %26 {offsets = [0, 0, 0], sizes = [2, 1, 16], strides = [1, 1, 1]} : vector<2x8x16xf32> to vector<2x1x16xf32>
    %29 = vector.broadcast %27 : vector<2x16x1xf32> to vector<2x16x16xf32>
    %30 = vector.broadcast %28 : vector<2x1x16xf32> to vector<2x16x16xf32>
    %31 = arith.addf %29, %30 : vector<2x16x16xf32>
    %cst = arith.constant 0.000000e+00 : f32
    %32 = vector.broadcast %cst : f32 to vector<2x16x16xf32>
    %33 = arith.cmpf oge, %31, %32 : vector<2x16x16xf32>
    %cst_4 = arith.constant 2.000000e-01 : f32
    %34 = vector.broadcast %cst_4 : f32 to vector<2x16x16xf32>
    %35 = arith.mulf %34, %31 : vector<2x16x16xf32>
    %36 = arith.select %33, %31, %35 : vector<2x16x16xi1>, vector<2x16x16xf32>
    %cst_5 = arith.constant dense<0xFF800000> : vector<2x16xf32>
    %37 = vector.multi_reduction <maximumf>, %36, %cst_5 [2] : vector<2x16x16xf32> to vector<2x16xf32>
    %38 = vector.shape_cast %37 : vector<2x16xf32> to vector<2x16x1xf32>
    %39 = vector.broadcast %38 : vector<2x16x1xf32> to vector<2x16x16xf32>
    %40 = arith.subf %36, %39 : vector<2x16x16xf32>
    %41 = math.exp %40 : vector<2x16x16xf32>
    %cst_6 = arith.constant dense<0.000000e+00> : vector<2x16xf32>
    %42 = vector.multi_reduction <add>, %41, %cst_6 [2] : vector<2x16x16xf32> to vector<2x16xf32>
    %43 = vector.shape_cast %42 : vector<2x16xf32> to vector<2x16x1xf32>
    %44 = tpu.reciprocal %43 {approx = true} : vector<2x16x1xf32> -> vector<2x16x1xf32>
    %45 = vector.broadcast %44 : vector<2x16x1xf32> to vector<2x16x16xf32>
    %46 = arith.mulf %41, %45 : vector<2x16x16xf32>
    %47 = vector.extract_strided_slice %22 {offsets = [0, 0, 0], sizes = [2, 16, 16], strides = [1, 1, 1]} : vector<2x16x128xf32> to vector<2x16x16xf32>
    "tpu.trace_start"() <{level = 10 : i32, message = "bij,bjd->bid"}> : () -> ()
    %cst_7 = arith.constant dense<0.000000e+00> : vector<2x16x16xf32>
    %48 = tpu.matmul %46, %47, %cst_7 {dimension_numbers = #tpu.dot_dimension_numbers<[2], [1], [1], [2], [0, 0, 0, 1, 1, 2], [0], [0]>} : vector<2x16x16xf32>, vector<2x16x16xf32>, vector<2x16x16xf32> -> vector<2x16x16xf32>
    %cst_8 = arith.constant 0.000000e+00 : f32
    "tpu.trace_stop"() : () -> ()
    %49 = vector.broadcast %cst_8 : f32 to vector<2x16x16xf32>
    %50 = arith.cmpf ogt, %48, %49 : vector<2x16x16xf32>
    %cst_9 = arith.constant 0.000000e+00 : f32
    %51 = vector.broadcast %cst_9 : f32 to vector<2x16x16xf32>
    %52 = arith.minimumf %48, %51 : vector<2x16x16xf32>
    %53 = math.exp %52 : vector<2x16x16xf32>
    %cst_10 = arith.constant 1.000000e+00 : f32
    %54 = vector.broadcast %cst_10 : f32 to vector<2x16x16xf32>
    %55 = arith.subf %53, %54 : vector<2x16x16xf32>
    %56 = arith.select %50, %48, %55 : vector<2x16x16xi1>, vector<2x16x16xf32>
    %57 = vector.extract_strided_slice %24 {offsets = [0, 0, 1], sizes = [2, 16, 1], strides = [1, 1, 1]} : vector<2x16x8xf32> to vector<2x16x1xf32>
    %58 = vector.extract_strided_slice %26 {offsets = [0, 1, 0], sizes = [2, 1, 16], strides = [1, 1, 1]} : vector<2x8x16xf32> to vector<2x1x16xf32>
    %59 = vector.broadcast %57 : vector<2x16x1xf32> to vector<2x16x16xf32>
    %60 = vector.broadcast %58 : vector<2x1x16xf32> to vector<2x16x16xf32>
    %61 = arith.addf %59, %60 : vector<2x16x16xf32>
    %cst_11 = arith.constant 0.000000e+00 : f32
    %62 = vector.broadcast %cst_11 : f32 to vector<2x16x16xf32>
    %63 = arith.cmpf oge, %61, %62 : vector<2x16x16xf32>
    %cst_12 = arith.constant 2.000000e-01 : f32
    %64 = vector.broadcast %cst_12 : f32 to vector<2x16x16xf32>
    %65 = arith.mulf %64, %61 : vector<2x16x16xf32>
    %66 = arith.select %63, %61, %65 : vector<2x16x16xi1>, vector<2x16x16xf32>
    %cst_13 = arith.constant dense<0xFF800000> : vector<2x16xf32>
    %67 = vector.multi_reduction <maximumf>, %66, %cst_13 [2] : vector<2x16x16xf32> to vector<2x16xf32>
    %68 = vector.shape_cast %67 : vector<2x16xf32> to vector<2x16x1xf32>
    %69 = vector.broadcast %68 : vector<2x16x1xf32> to vector<2x16x16xf32>
    %70 = arith.subf %66, %69 : vector<2x16x16xf32>
    %71 = math.exp %70 : vector<2x16x16xf32>
    %cst_14 = arith.constant dense<0.000000e+00> : vector<2x16xf32>
    %72 = vector.multi_reduction <add>, %71, %cst_14 [2] : vector<2x16x16xf32> to vector<2x16xf32>
    %73 = vector.shape_cast %72 : vector<2x16xf32> to vector<2x16x1xf32>
    %74 = tpu.reciprocal %73 {approx = true} : vector<2x16x1xf32> -> vector<2x16x1xf32>
    %75 = vector.broadcast %74 : vector<2x16x1xf32> to vector<2x16x16xf32>
    %76 = arith.mulf %71, %75 : vector<2x16x16xf32>
    %77 = vector.extract_strided_slice %22 {offsets = [0, 0, 16], sizes = [2, 16, 16], strides = [1, 1, 1]} : vector<2x16x128xf32> to vector<2x16x16xf32>
    "tpu.trace_start"() <{level = 10 : i32, message = "bij,bjd->bid"}> : () -> ()
    %cst_15 = arith.constant dense<0.000000e+00> : vector<2x16x16xf32>
    %78 = tpu.matmul %76, %77, %cst_15 {dimension_numbers = #tpu.dot_dimension_numbers<[2], [1], [1], [2], [0, 0, 0, 1, 1, 2], [0], [0]>} : vector<2x16x16xf32>, vector<2x16x16xf32>, vector<2x16x16xf32> -> vector<2x16x16xf32>
    %cst_16 = arith.constant 0.000000e+00 : f32
    "tpu.trace_stop"() : () -> ()
    %79 = vector.broadcast %cst_16 : f32 to vector<2x16x16xf32>
    %80 = arith.cmpf ogt, %78, %79 : vector<2x16x16xf32>
    %cst_17 = arith.constant 0.000000e+00 : f32
    %81 = vector.broadcast %cst_17 : f32 to vector<2x16x16xf32>
    %82 = arith.minimumf %78, %81 : vector<2x16x16xf32>
    %83 = math.exp %82 : vector<2x16x16xf32>
    %cst_18 = arith.constant 1.000000e+00 : f32
    %84 = vector.broadcast %cst_18 : f32 to vector<2x16x16xf32>
    %85 = arith.subf %83, %84 : vector<2x16x16xf32>
    %86 = arith.select %80, %78, %85 : vector<2x16x16xi1>, vector<2x16x16xf32>
    %87 = vector.extract_strided_slice %24 {offsets = [0, 0, 2], sizes = [2, 16, 1], strides = [1, 1, 1]} : vector<2x16x8xf32> to vector<2x16x1xf32>
    %88 = vector.extract_strided_slice %26 {offsets = [0, 2, 0], sizes = [2, 1, 16], strides = [1, 1, 1]} : vector<2x8x16xf32> to vector<2x1x16xf32>
    %89 = vector.broadcast %87 : vector<2x16x1xf32> to vector<2x16x16xf32>
    %90 = vector.broadcast %88 : vector<2x1x16xf32> to vector<2x16x16xf32>
    %91 = arith.addf %89, %90 : vector<2x16x16xf32>
    %cst_19 = arith.constant 0.000000e+00 : f32
    %92 = vector.broadcast %cst_19 : f32 to vector<2x16x16xf32>
    %93 = arith.cmpf oge, %91, %92 : vector<2x16x16xf32>
    %cst_20 = arith.constant 2.000000e-01 : f32
    %94 = vector.broadcast %cst_20 : f32 to vector<2x16x16xf32>
    %95 = arith.mulf %94, %91 : vector<2x16x16xf32>
    %96 = arith.select %93, %91, %95 : vector<2x16x16xi1>, vector<2x16x16xf32>
    %cst_21 = arith.constant dense<0xFF800000> : vector<2x16xf32>
    %97 = vector.multi_reduction <maximumf>, %96, %cst_21 [2] : vector<2x16x16xf32> to vector<2x16xf32>
    %98 = vector.shape_cast %97 : vector<2x16xf32> to vector<2x16x1xf32>
    %99 = vector.broadcast %98 : vector<2x16x1xf32> to vector<2x16x16xf32>
    %100 = arith.subf %96, %99 : vector<2x16x16xf32>
    %101 = math.exp %100 : vector<2x16x16xf32>
    %cst_22 = arith.constant dense<0.000000e+00> : vector<2x16xf32>
    %102 = vector.multi_reduction <add>, %101, %cst_22 [2] : vector<2x16x16xf32> to vector<2x16xf32>
    %103 = vector.shape_cast %102 : vector<2x16xf32> to vector<2x16x1xf32>
    %104 = tpu.reciprocal %103 {approx = true} : vector<2x16x1xf32> -> vector<2x16x1xf32>
    %105 = vector.broadcast %104 : vector<2x16x1xf32> to vector<2x16x16xf32>
    %106 = arith.mulf %101, %105 : vector<2x16x16xf32>
    %107 = vector.extract_strided_slice %22 {offsets = [0, 0, 32], sizes = [2, 16, 16], strides = [1, 1, 1]} : vector<2x16x128xf32> to vector<2x16x16xf32>
    "tpu.trace_start"() <{level = 10 : i32, message = "bij,bjd->bid"}> : () -> ()
    %cst_23 = arith.constant dense<0.000000e+00> : vector<2x16x16xf32>
    %108 = tpu.matmul %106, %107, %cst_23 {dimension_numbers = #tpu.dot_dimension_numbers<[2], [1], [1], [2], [0, 0, 0, 1, 1, 2], [0], [0]>} : vector<2x16x16xf32>, vector<2x16x16xf32>, vector<2x16x16xf32> -> vector<2x16x16xf32>
    %cst_24 = arith.constant 0.000000e+00 : f32
    "tpu.trace_stop"() : () -> ()
    %109 = vector.broadcast %cst_24 : f32 to vector<2x16x16xf32>
    %110 = arith.cmpf ogt, %108, %109 : vector<2x16x16xf32>
    %cst_25 = arith.constant 0.000000e+00 : f32
    %111 = vector.broadcast %cst_25 : f32 to vector<2x16x16xf32>
    %112 = arith.minimumf %108, %111 : vector<2x16x16xf32>
    %113 = math.exp %112 : vector<2x16x16xf32>
    %cst_26 = arith.constant 1.000000e+00 : f32
    %114 = vector.broadcast %cst_26 : f32 to vector<2x16x16xf32>
    %115 = arith.subf %113, %114 : vector<2x16x16xf32>
    %116 = arith.select %110, %108, %115 : vector<2x16x16xi1>, vector<2x16x16xf32>
    %117 = vector.extract_strided_slice %24 {offsets = [0, 0, 3], sizes = [2, 16, 1], strides = [1, 1, 1]} : vector<2x16x8xf32> to vector<2x16x1xf32>
    %118 = vector.extract_strided_slice %26 {offsets = [0, 3, 0], sizes = [2, 1, 16], strides = [1, 1, 1]} : vector<2x8x16xf32> to vector<2x1x16xf32>
    %119 = vector.broadcast %117 : vector<2x16x1xf32> to vector<2x16x16xf32>
    %120 = vector.broadcast %118 : vector<2x1x16xf32> to vector<2x16x16xf32>
    %121 = arith.addf %119, %120 : vector<2x16x16xf32>
    %cst_27 = arith.constant 0.000000e+00 : f32
    %122 = vector.broadcast %cst_27 : f32 to vector<2x16x16xf32>
    %123 = arith.cmpf oge, %121, %122 : vector<2x16x16xf32>
    %cst_28 = arith.constant 2.000000e-01 : f32
    %124 = vector.broadcast %cst_28 : f32 to vector<2x16x16xf32>
    %125 = arith.mulf %124, %121 : vector<2x16x16xf32>
    %126 = arith.select %123, %121, %125 : vector<2x16x16xi1>, vector<2x16x16xf32>
    %cst_29 = arith.constant dense<0xFF800000> : vector<2x16xf32>
    %127 = vector.multi_reduction <maximumf>, %126, %cst_29 [2] : vector<2x16x16xf32> to vector<2x16xf32>
    %128 = vector.shape_cast %127 : vector<2x16xf32> to vector<2x16x1xf32>
    %129 = vector.broadcast %128 : vector<2x16x1xf32> to vector<2x16x16xf32>
    %130 = arith.subf %126, %129 : vector<2x16x16xf32>
    %131 = math.exp %130 : vector<2x16x16xf32>
    %cst_30 = arith.constant dense<0.000000e+00> : vector<2x16xf32>
    %132 = vector.multi_reduction <add>, %131, %cst_30 [2] : vector<2x16x16xf32> to vector<2x16xf32>
    %133 = vector.shape_cast %132 : vector<2x16xf32> to vector<2x16x1xf32>
    %134 = tpu.reciprocal %133 {approx = true} : vector<2x16x1xf32> -> vector<2x16x1xf32>
    %135 = vector.broadcast %134 : vector<2x16x1xf32> to vector<2x16x16xf32>
    %136 = arith.mulf %131, %135 : vector<2x16x16xf32>
    %137 = vector.extract_strided_slice %22 {offsets = [0, 0, 48], sizes = [2, 16, 16], strides = [1, 1, 1]} : vector<2x16x128xf32> to vector<2x16x16xf32>
    "tpu.trace_start"() <{level = 10 : i32, message = "bij,bjd->bid"}> : () -> ()
    %cst_31 = arith.constant dense<0.000000e+00> : vector<2x16x16xf32>
    %138 = tpu.matmul %136, %137, %cst_31 {dimension_numbers = #tpu.dot_dimension_numbers<[2], [1], [1], [2], [0, 0, 0, 1, 1, 2], [0], [0]>} : vector<2x16x16xf32>, vector<2x16x16xf32>, vector<2x16x16xf32> -> vector<2x16x16xf32>
    %cst_32 = arith.constant 0.000000e+00 : f32
    "tpu.trace_stop"() : () -> ()
    %139 = vector.broadcast %cst_32 : f32 to vector<2x16x16xf32>
    %140 = arith.cmpf ogt, %138, %139 : vector<2x16x16xf32>
    %cst_33 = arith.constant 0.000000e+00 : f32
    %141 = vector.broadcast %cst_33 : f32 to vector<2x16x16xf32>
    %142 = arith.minimumf %138, %141 : vector<2x16x16xf32>
    %143 = math.exp %142 : vector<2x16x16xf32>
    %cst_34 = arith.constant 1.000000e+00 : f32
    %144 = vector.broadcast %cst_34 : f32 to vector<2x16x16xf32>
    %145 = arith.subf %143, %144 : vector<2x16x16xf32>
    %146 = arith.select %140, %138, %145 : vector<2x16x16xi1>, vector<2x16x16xf32>
    %147 = vector.extract_strided_slice %24 {offsets = [0, 0, 4], sizes = [2, 16, 1], strides = [1, 1, 1]} : vector<2x16x8xf32> to vector<2x16x1xf32>
    %148 = vector.extract_strided_slice %26 {offsets = [0, 4, 0], sizes = [2, 1, 16], strides = [1, 1, 1]} : vector<2x8x16xf32> to vector<2x1x16xf32>
    %149 = vector.broadcast %147 : vector<2x16x1xf32> to vector<2x16x16xf32>
    %150 = vector.broadcast %148 : vector<2x1x16xf32> to vector<2x16x16xf32>
    %151 = arith.addf %149, %150 : vector<2x16x16xf32>
    %cst_35 = arith.constant 0.000000e+00 : f32
    %152 = vector.broadcast %cst_35 : f32 to vector<2x16x16xf32>
    %153 = arith.cmpf oge, %151, %152 : vector<2x16x16xf32>
    %cst_36 = arith.constant 2.000000e-01 : f32
    %154 = vector.broadcast %cst_36 : f32 to vector<2x16x16xf32>
    %155 = arith.mulf %154, %151 : vector<2x16x16xf32>
    %156 = arith.select %153, %151, %155 : vector<2x16x16xi1>, vector<2x16x16xf32>
    %cst_37 = arith.constant dense<0xFF800000> : vector<2x16xf32>
    %157 = vector.multi_reduction <maximumf>, %156, %cst_37 [2] : vector<2x16x16xf32> to vector<2x16xf32>
    %158 = vector.shape_cast %157 : vector<2x16xf32> to vector<2x16x1xf32>
    %159 = vector.broadcast %158 : vector<2x16x1xf32> to vector<2x16x16xf32>
    %160 = arith.subf %156, %159 : vector<2x16x16xf32>
    %161 = math.exp %160 : vector<2x16x16xf32>
    %cst_38 = arith.constant dense<0.000000e+00> : vector<2x16xf32>
    %162 = vector.multi_reduction <add>, %161, %cst_38 [2] : vector<2x16x16xf32> to vector<2x16xf32>
    %163 = vector.shape_cast %162 : vector<2x16xf32> to vector<2x16x1xf32>
    %164 = tpu.reciprocal %163 {approx = true} : vector<2x16x1xf32> -> vector<2x16x1xf32>
    %165 = vector.broadcast %164 : vector<2x16x1xf32> to vector<2x16x16xf32>
    %166 = arith.mulf %161, %165 : vector<2x16x16xf32>
    %167 = vector.extract_strided_slice %22 {offsets = [0, 0, 64], sizes = [2, 16, 16], strides = [1, 1, 1]} : vector<2x16x128xf32> to vector<2x16x16xf32>
    "tpu.trace_start"() <{level = 10 : i32, message = "bij,bjd->bid"}> : () -> ()
    %cst_39 = arith.constant dense<0.000000e+00> : vector<2x16x16xf32>
    %168 = tpu.matmul %166, %167, %cst_39 {dimension_numbers = #tpu.dot_dimension_numbers<[2], [1], [1], [2], [0, 0, 0, 1, 1, 2], [0], [0]>} : vector<2x16x16xf32>, vector<2x16x16xf32>, vector<2x16x16xf32> -> vector<2x16x16xf32>
    %cst_40 = arith.constant 0.000000e+00 : f32
    "tpu.trace_stop"() : () -> ()
    %169 = vector.broadcast %cst_40 : f32 to vector<2x16x16xf32>
    %170 = arith.cmpf ogt, %168, %169 : vector<2x16x16xf32>
    %cst_41 = arith.constant 0.000000e+00 : f32
    %171 = vector.broadcast %cst_41 : f32 to vector<2x16x16xf32>
    %172 = arith.minimumf %168, %171 : vector<2x16x16xf32>
    %173 = math.exp %172 : vector<2x16x16xf32>
    %cst_42 = arith.constant 1.000000e+00 : f32
    %174 = vector.broadcast %cst_42 : f32 to vector<2x16x16xf32>
    %175 = arith.subf %173, %174 : vector<2x16x16xf32>
    %176 = arith.select %170, %168, %175 : vector<2x16x16xi1>, vector<2x16x16xf32>
    %177 = vector.extract_strided_slice %24 {offsets = [0, 0, 5], sizes = [2, 16, 1], strides = [1, 1, 1]} : vector<2x16x8xf32> to vector<2x16x1xf32>
    %178 = vector.extract_strided_slice %26 {offsets = [0, 5, 0], sizes = [2, 1, 16], strides = [1, 1, 1]} : vector<2x8x16xf32> to vector<2x1x16xf32>
    %179 = vector.broadcast %177 : vector<2x16x1xf32> to vector<2x16x16xf32>
    %180 = vector.broadcast %178 : vector<2x1x16xf32> to vector<2x16x16xf32>
    %181 = arith.addf %179, %180 : vector<2x16x16xf32>
    %cst_43 = arith.constant 0.000000e+00 : f32
    %182 = vector.broadcast %cst_43 : f32 to vector<2x16x16xf32>
    %183 = arith.cmpf oge, %181, %182 : vector<2x16x16xf32>
    %cst_44 = arith.constant 2.000000e-01 : f32
    %184 = vector.broadcast %cst_44 : f32 to vector<2x16x16xf32>
    %185 = arith.mulf %184, %181 : vector<2x16x16xf32>
    %186 = arith.select %183, %181, %185 : vector<2x16x16xi1>, vector<2x16x16xf32>
    %cst_45 = arith.constant dense<0xFF800000> : vector<2x16xf32>
    %187 = vector.multi_reduction <maximumf>, %186, %cst_45 [2] : vector<2x16x16xf32> to vector<2x16xf32>
    %188 = vector.shape_cast %187 : vector<2x16xf32> to vector<2x16x1xf32>
    %189 = vector.broadcast %188 : vector<2x16x1xf32> to vector<2x16x16xf32>
    %190 = arith.subf %186, %189 : vector<2x16x16xf32>
    %191 = math.exp %190 : vector<2x16x16xf32>
    %cst_46 = arith.constant dense<0.000000e+00> : vector<2x16xf32>
    %192 = vector.multi_reduction <add>, %191, %cst_46 [2] : vector<2x16x16xf32> to vector<2x16xf32>
    %193 = vector.shape_cast %192 : vector<2x16xf32> to vector<2x16x1xf32>
    %194 = tpu.reciprocal %193 {approx = true} : vector<2x16x1xf32> -> vector<2x16x1xf32>
    %195 = vector.broadcast %194 : vector<2x16x1xf32> to vector<2x16x16xf32>
    %196 = arith.mulf %191, %195 : vector<2x16x16xf32>
    %197 = vector.extract_strided_slice %22 {offsets = [0, 0, 80], sizes = [2, 16, 16], strides = [1, 1, 1]} : vector<2x16x128xf32> to vector<2x16x16xf32>
    "tpu.trace_start"() <{level = 10 : i32, message = "bij,bjd->bid"}> : () -> ()
    %cst_47 = arith.constant dense<0.000000e+00> : vector<2x16x16xf32>
    %198 = tpu.matmul %196, %197, %cst_47 {dimension_numbers = #tpu.dot_dimension_numbers<[2], [1], [1], [2], [0, 0, 0, 1, 1, 2], [0], [0]>} : vector<2x16x16xf32>, vector<2x16x16xf32>, vector<2x16x16xf32> -> vector<2x16x16xf32>
    %cst_48 = arith.constant 0.000000e+00 : f32
    "tpu.trace_stop"() : () -> ()
    %199 = vector.broadcast %cst_48 : f32 to vector<2x16x16xf32>
    %200 = arith.cmpf ogt, %198, %199 : vector<2x16x16xf32>
    %cst_49 = arith.constant 0.000000e+00 : f32
    %201 = vector.broadcast %cst_49 : f32 to vector<2x16x16xf32>
    %202 = arith.minimumf %198, %201 : vector<2x16x16xf32>
    %203 = math.exp %202 : vector<2x16x16xf32>
    %cst_50 = arith.constant 1.000000e+00 : f32
    %204 = vector.broadcast %cst_50 : f32 to vector<2x16x16xf32>
    %205 = arith.subf %203, %204 : vector<2x16x16xf32>
    %206 = arith.select %200, %198, %205 : vector<2x16x16xi1>, vector<2x16x16xf32>
    %207 = vector.extract_strided_slice %24 {offsets = [0, 0, 6], sizes = [2, 16, 1], strides = [1, 1, 1]} : vector<2x16x8xf32> to vector<2x16x1xf32>
    %208 = vector.extract_strided_slice %26 {offsets = [0, 6, 0], sizes = [2, 1, 16], strides = [1, 1, 1]} : vector<2x8x16xf32> to vector<2x1x16xf32>
    %209 = vector.broadcast %207 : vector<2x16x1xf32> to vector<2x16x16xf32>
    %210 = vector.broadcast %208 : vector<2x1x16xf32> to vector<2x16x16xf32>
    %211 = arith.addf %209, %210 : vector<2x16x16xf32>
    %cst_51 = arith.constant 0.000000e+00 : f32
    %212 = vector.broadcast %cst_51 : f32 to vector<2x16x16xf32>
    %213 = arith.cmpf oge, %211, %212 : vector<2x16x16xf32>
    %cst_52 = arith.constant 2.000000e-01 : f32
    %214 = vector.broadcast %cst_52 : f32 to vector<2x16x16xf32>
    %215 = arith.mulf %214, %211 : vector<2x16x16xf32>
    %216 = arith.select %213, %211, %215 : vector<2x16x16xi1>, vector<2x16x16xf32>
    %cst_53 = arith.constant dense<0xFF800000> : vector<2x16xf32>
    %217 = vector.multi_reduction <maximumf>, %216, %cst_53 [2] : vector<2x16x16xf32> to vector<2x16xf32>
    %218 = vector.shape_cast %217 : vector<2x16xf32> to vector<2x16x1xf32>
    %219 = vector.broadcast %218 : vector<2x16x1xf32> to vector<2x16x16xf32>
    %220 = arith.subf %216, %219 : vector<2x16x16xf32>
    %221 = math.exp %220 : vector<2x16x16xf32>
    %cst_54 = arith.constant dense<0.000000e+00> : vector<2x16xf32>
    %222 = vector.multi_reduction <add>, %221, %cst_54 [2] : vector<2x16x16xf32> to vector<2x16xf32>
    %223 = vector.shape_cast %222 : vector<2x16xf32> to vector<2x16x1xf32>
    %224 = tpu.reciprocal %223 {approx = true} : vector<2x16x1xf32> -> vector<2x16x1xf32>
    %225 = vector.broadcast %224 : vector<2x16x1xf32> to vector<2x16x16xf32>
    %226 = arith.mulf %221, %225 : vector<2x16x16xf32>
    %227 = vector.extract_strided_slice %22 {offsets = [0, 0, 96], sizes = [2, 16, 16], strides = [1, 1, 1]} : vector<2x16x128xf32> to vector<2x16x16xf32>
    "tpu.trace_start"() <{level = 10 : i32, message = "bij,bjd->bid"}> : () -> ()
    %cst_55 = arith.constant dense<0.000000e+00> : vector<2x16x16xf32>
    %228 = tpu.matmul %226, %227, %cst_55 {dimension_numbers = #tpu.dot_dimension_numbers<[2], [1], [1], [2], [0, 0, 0, 1, 1, 2], [0], [0]>} : vector<2x16x16xf32>, vector<2x16x16xf32>, vector<2x16x16xf32> -> vector<2x16x16xf32>
    %cst_56 = arith.constant 0.000000e+00 : f32
    "tpu.trace_stop"() : () -> ()
    %229 = vector.broadcast %cst_56 : f32 to vector<2x16x16xf32>
    %230 = arith.cmpf ogt, %228, %229 : vector<2x16x16xf32>
    %cst_57 = arith.constant 0.000000e+00 : f32
    %231 = vector.broadcast %cst_57 : f32 to vector<2x16x16xf32>
    %232 = arith.minimumf %228, %231 : vector<2x16x16xf32>
    %233 = math.exp %232 : vector<2x16x16xf32>
    %cst_58 = arith.constant 1.000000e+00 : f32
    %234 = vector.broadcast %cst_58 : f32 to vector<2x16x16xf32>
    %235 = arith.subf %233, %234 : vector<2x16x16xf32>
    %236 = arith.select %230, %228, %235 : vector<2x16x16xi1>, vector<2x16x16xf32>
    %237 = vector.extract_strided_slice %24 {offsets = [0, 0, 7], sizes = [2, 16, 1], strides = [1, 1, 1]} : vector<2x16x8xf32> to vector<2x16x1xf32>
    %238 = vector.extract_strided_slice %26 {offsets = [0, 7, 0], sizes = [2, 1, 16], strides = [1, 1, 1]} : vector<2x8x16xf32> to vector<2x1x16xf32>
    %239 = vector.broadcast %237 : vector<2x16x1xf32> to vector<2x16x16xf32>
    %240 = vector.broadcast %238 : vector<2x1x16xf32> to vector<2x16x16xf32>
    %241 = arith.addf %239, %240 : vector<2x16x16xf32>
    %cst_59 = arith.constant 0.000000e+00 : f32
    %242 = vector.broadcast %cst_59 : f32 to vector<2x16x16xf32>
    %243 = arith.cmpf oge, %241, %242 : vector<2x16x16xf32>
    %cst_60 = arith.constant 2.000000e-01 : f32
    %244 = vector.broadcast %cst_60 : f32 to vector<2x16x16xf32>
    %245 = arith.mulf %244, %241 : vector<2x16x16xf32>
    %246 = arith.select %243, %241, %245 : vector<2x16x16xi1>, vector<2x16x16xf32>
    %cst_61 = arith.constant dense<0xFF800000> : vector<2x16xf32>
    %247 = vector.multi_reduction <maximumf>, %246, %cst_61 [2] : vector<2x16x16xf32> to vector<2x16xf32>
    %248 = vector.shape_cast %247 : vector<2x16xf32> to vector<2x16x1xf32>
    %249 = vector.broadcast %248 : vector<2x16x1xf32> to vector<2x16x16xf32>
    %250 = arith.subf %246, %249 : vector<2x16x16xf32>
    %251 = math.exp %250 : vector<2x16x16xf32>
    %cst_62 = arith.constant dense<0.000000e+00> : vector<2x16xf32>
    %252 = vector.multi_reduction <add>, %251, %cst_62 [2] : vector<2x16x16xf32> to vector<2x16xf32>
    %253 = vector.shape_cast %252 : vector<2x16xf32> to vector<2x16x1xf32>
    %254 = tpu.reciprocal %253 {approx = true} : vector<2x16x1xf32> -> vector<2x16x1xf32>
    %255 = vector.broadcast %254 : vector<2x16x1xf32> to vector<2x16x16xf32>
    %256 = arith.mulf %251, %255 : vector<2x16x16xf32>
    %257 = vector.extract_strided_slice %22 {offsets = [0, 0, 112], sizes = [2, 16, 16], strides = [1, 1, 1]} : vector<2x16x128xf32> to vector<2x16x16xf32>
    "tpu.trace_start"() <{level = 10 : i32, message = "bij,bjd->bid"}> : () -> ()
    %cst_63 = arith.constant dense<0.000000e+00> : vector<2x16x16xf32>
    %258 = tpu.matmul %256, %257, %cst_63 {dimension_numbers = #tpu.dot_dimension_numbers<[2], [1], [1], [2], [0, 0, 0, 1, 1, 2], [0], [0]>} : vector<2x16x16xf32>, vector<2x16x16xf32>, vector<2x16x16xf32> -> vector<2x16x16xf32>
    %cst_64 = arith.constant 0.000000e+00 : f32
    "tpu.trace_stop"() : () -> ()
    %259 = vector.broadcast %cst_64 : f32 to vector<2x16x16xf32>
    %260 = arith.cmpf ogt, %258, %259 : vector<2x16x16xf32>
    %cst_65 = arith.constant 0.000000e+00 : f32
    %261 = vector.broadcast %cst_65 : f32 to vector<2x16x16xf32>
    %262 = arith.minimumf %258, %261 : vector<2x16x16xf32>
    %263 = math.exp %262 : vector<2x16x16xf32>
    %cst_66 = arith.constant 1.000000e+00 : f32
    %264 = vector.broadcast %cst_66 : f32 to vector<2x16x16xf32>
    %265 = arith.subf %263, %264 : vector<2x16x16xf32>
    %266 = arith.select %260, %258, %265 : vector<2x16x16xi1>, vector<2x16x16xf32>
    %267 = tpu.concatenate %56, %86, %116, %146, %176, %206, %236, %266 in 2 : vector<2x16x16xf32>, vector<2x16x16xf32>, vector<2x16x16xf32>, vector<2x16x16xf32>, vector<2x16x16xf32>, vector<2x16x16xf32>, vector<2x16x16xf32>, vector<2x16x16xf32> -> vector<2x16x128xf32>
    %c0_67 = arith.constant 0 : index
    %c0_68 = arith.constant 0 : index
    %268 = vector.load %arg3[%c0_67, %c0_68] : memref<128x528xbf16, #tpu.memory_space<vmem>>, vector<128x528xbf16>
    %269 = vector.shape_cast %267 : vector<2x16x128xf32> to vector<32x128xf32>
    %270 = arith.truncf %269 : vector<32x128xf32> to vector<32x128xbf16>
    %cst_69 = arith.constant dense<0.000000e+00> : vector<32x528xf32>
    %271 = tpu.matmul %270, %268, %cst_69 {dimension_numbers = #tpu.dot_dimension_numbers<[1], [0], [0], [1], [0, 0, 1, 1], [], []>} : vector<32x128xbf16>, vector<128x528xbf16>, vector<32x528xf32> -> vector<32x528xf32>
    %272 = vector.shape_cast %271 : vector<32x528xf32> to vector<2x16x528xf32>
    %273 = vector.extract_strided_slice %272 {offsets = [0, 0, 0], sizes = [2, 16, 512], strides = [1, 1, 1]} : vector<2x16x528xf32> to vector<2x16x512xf32>
    %274 = vector.extract_strided_slice %272 {offsets = [0, 0, 512], sizes = [2, 16, 16], strides = [1, 1, 1]} : vector<2x16x528xf32> to vector<2x16x16xf32>
    %275 = vector.extract_strided_slice %274 {offsets = [0, 0, 0], sizes = [2, 16, 8], strides = [1, 1, 1]} : vector<2x16x16xf32> to vector<2x16x8xf32>
    %276 = vector.extract_strided_slice %274 {offsets = [0, 0, 8], sizes = [2, 16, 8], strides = [1, 1, 1]} : vector<2x16x16xf32> to vector<2x16x8xf32>
    %277 = tpu.transpose %276, [0, 2, 1] : vector<2x16x8xf32> -> vector<2x8x16xf32>
    %278 = vector.extract_strided_slice %275 {offsets = [0, 0, 0], sizes = [2, 16, 1], strides = [1, 1, 1]} : vector<2x16x8xf32> to vector<2x16x1xf32>
    %279 = vector.extract_strided_slice %277 {offsets = [0, 0, 0], sizes = [2, 1, 16], strides = [1, 1, 1]} : vector<2x8x16xf32> to vector<2x1x16xf32>
    %280 = vector.broadcast %278 : vector<2x16x1xf32> to vector<2x16x16xf32>
    %281 = vector.broadcast %279 : vector<2x1x16xf32> to vector<2x16x16xf32>
    %282 = arith.addf %280, %281 : vector<2x16x16xf32>
    %cst_70 = arith.constant 0.000000e+00 : f32
    %283 = vector.broadcast %cst_70 : f32 to vector<2x16x16xf32>
    %284 = arith.cmpf oge, %282, %283 : vector<2x16x16xf32>
    %cst_71 = arith.constant 2.000000e-01 : f32
    %285 = vector.broadcast %cst_71 : f32 to vector<2x16x16xf32>
    %286 = arith.mulf %285, %282 : vector<2x16x16xf32>
    %287 = arith.select %284, %282, %286 : vector<2x16x16xi1>, vector<2x16x16xf32>
    %cst_72 = arith.constant dense<0xFF800000> : vector<2x16xf32>
    %288 = vector.multi_reduction <maximumf>, %287, %cst_72 [2] : vector<2x16x16xf32> to vector<2x16xf32>
    %289 = vector.shape_cast %288 : vector<2x16xf32> to vector<2x16x1xf32>
    %290 = vector.broadcast %289 : vector<2x16x1xf32> to vector<2x16x16xf32>
    %291 = arith.subf %287, %290 : vector<2x16x16xf32>
    %292 = math.exp %291 : vector<2x16x16xf32>
    %cst_73 = arith.constant dense<0.000000e+00> : vector<2x16xf32>
    %293 = vector.multi_reduction <add>, %292, %cst_73 [2] : vector<2x16x16xf32> to vector<2x16xf32>
    %294 = vector.shape_cast %293 : vector<2x16xf32> to vector<2x16x1xf32>
    %295 = tpu.reciprocal %294 {approx = true} : vector<2x16x1xf32> -> vector<2x16x1xf32>
    %296 = vector.broadcast %295 : vector<2x16x1xf32> to vector<2x16x16xf32>
    %297 = arith.mulf %292, %296 : vector<2x16x16xf32>
    %298 = vector.extract_strided_slice %273 {offsets = [0, 0, 0], sizes = [2, 16, 64], strides = [1, 1, 1]} : vector<2x16x512xf32> to vector<2x16x64xf32>
    "tpu.trace_start"() <{level = 10 : i32, message = "bij,bjd->bid"}> : () -> ()
    %cst_74 = arith.constant dense<0.000000e+00> : vector<2x16x64xf32>
    %299 = tpu.matmul %297, %298, %cst_74 {dimension_numbers = #tpu.dot_dimension_numbers<[2], [1], [1], [2], [0, 0, 0, 1, 1, 2], [0], [0]>} : vector<2x16x16xf32>, vector<2x16x64xf32>, vector<2x16x64xf32> -> vector<2x16x64xf32>
    %cst_75 = arith.constant 0.000000e+00 : f32
    "tpu.trace_stop"() : () -> ()
    %300 = vector.broadcast %cst_75 : f32 to vector<2x16x64xf32>
    %301 = arith.cmpf ogt, %299, %300 : vector<2x16x64xf32>
    %cst_76 = arith.constant 0.000000e+00 : f32
    %302 = vector.broadcast %cst_76 : f32 to vector<2x16x64xf32>
    %303 = arith.minimumf %299, %302 : vector<2x16x64xf32>
    %304 = math.exp %303 : vector<2x16x64xf32>
    %cst_77 = arith.constant 1.000000e+00 : f32
    %305 = vector.broadcast %cst_77 : f32 to vector<2x16x64xf32>
    %306 = arith.subf %304, %305 : vector<2x16x64xf32>
    %307 = arith.select %301, %299, %306 : vector<2x16x64xi1>, vector<2x16x64xf32>
    %308 = vector.extract_strided_slice %275 {offsets = [0, 0, 1], sizes = [2, 16, 1], strides = [1, 1, 1]} : vector<2x16x8xf32> to vector<2x16x1xf32>
    %309 = vector.extract_strided_slice %277 {offsets = [0, 1, 0], sizes = [2, 1, 16], strides = [1, 1, 1]} : vector<2x8x16xf32> to vector<2x1x16xf32>
    %310 = vector.broadcast %308 : vector<2x16x1xf32> to vector<2x16x16xf32>
    %311 = vector.broadcast %309 : vector<2x1x16xf32> to vector<2x16x16xf32>
    %312 = arith.addf %310, %311 : vector<2x16x16xf32>
    %cst_78 = arith.constant 0.000000e+00 : f32
    %313 = vector.broadcast %cst_78 : f32 to vector<2x16x16xf32>
    %314 = arith.cmpf oge, %312, %313 : vector<2x16x16xf32>
    %cst_79 = arith.constant 2.000000e-01 : f32
    %315 = vector.broadcast %cst_79 : f32 to vector<2x16x16xf32>
    %316 = arith.mulf %315, %312 : vector<2x16x16xf32>
    %317 = arith.select %314, %312, %316 : vector<2x16x16xi1>, vector<2x16x16xf32>
    %cst_80 = arith.constant dense<0xFF800000> : vector<2x16xf32>
    %318 = vector.multi_reduction <maximumf>, %317, %cst_80 [2] : vector<2x16x16xf32> to vector<2x16xf32>
    %319 = vector.shape_cast %318 : vector<2x16xf32> to vector<2x16x1xf32>
    %320 = vector.broadcast %319 : vector<2x16x1xf32> to vector<2x16x16xf32>
    %321 = arith.subf %317, %320 : vector<2x16x16xf32>
    %322 = math.exp %321 : vector<2x16x16xf32>
    %cst_81 = arith.constant dense<0.000000e+00> : vector<2x16xf32>
    %323 = vector.multi_reduction <add>, %322, %cst_81 [2] : vector<2x16x16xf32> to vector<2x16xf32>
    %324 = vector.shape_cast %323 : vector<2x16xf32> to vector<2x16x1xf32>
    %325 = tpu.reciprocal %324 {approx = true} : vector<2x16x1xf32> -> vector<2x16x1xf32>
    %326 = vector.broadcast %325 : vector<2x16x1xf32> to vector<2x16x16xf32>
    %327 = arith.mulf %322, %326 : vector<2x16x16xf32>
    %328 = vector.extract_strided_slice %273 {offsets = [0, 0, 64], sizes = [2, 16, 64], strides = [1, 1, 1]} : vector<2x16x512xf32> to vector<2x16x64xf32>
    "tpu.trace_start"() <{level = 10 : i32, message = "bij,bjd->bid"}> : () -> ()
    %cst_82 = arith.constant dense<0.000000e+00> : vector<2x16x64xf32>
    %329 = tpu.matmul %327, %328, %cst_82 {dimension_numbers = #tpu.dot_dimension_numbers<[2], [1], [1], [2], [0, 0, 0, 1, 1, 2], [0], [0]>} : vector<2x16x16xf32>, vector<2x16x64xf32>, vector<2x16x64xf32> -> vector<2x16x64xf32>
    %cst_83 = arith.constant 0.000000e+00 : f32
    "tpu.trace_stop"() : () -> ()
    %330 = vector.broadcast %cst_83 : f32 to vector<2x16x64xf32>
    %331 = arith.cmpf ogt, %329, %330 : vector<2x16x64xf32>
    %cst_84 = arith.constant 0.000000e+00 : f32
    %332 = vector.broadcast %cst_84 : f32 to vector<2x16x64xf32>
    %333 = arith.minimumf %329, %332 : vector<2x16x64xf32>
    %334 = math.exp %333 : vector<2x16x64xf32>
    %cst_85 = arith.constant 1.000000e+00 : f32
    %335 = vector.broadcast %cst_85 : f32 to vector<2x16x64xf32>
    %336 = arith.subf %334, %335 : vector<2x16x64xf32>
    %337 = arith.select %331, %329, %336 : vector<2x16x64xi1>, vector<2x16x64xf32>
    %338 = vector.extract_strided_slice %275 {offsets = [0, 0, 2], sizes = [2, 16, 1], strides = [1, 1, 1]} : vector<2x16x8xf32> to vector<2x16x1xf32>
    %339 = vector.extract_strided_slice %277 {offsets = [0, 2, 0], sizes = [2, 1, 16], strides = [1, 1, 1]} : vector<2x8x16xf32> to vector<2x1x16xf32>
    %340 = vector.broadcast %338 : vector<2x16x1xf32> to vector<2x16x16xf32>
    %341 = vector.broadcast %339 : vector<2x1x16xf32> to vector<2x16x16xf32>
    %342 = arith.addf %340, %341 : vector<2x16x16xf32>
    %cst_86 = arith.constant 0.000000e+00 : f32
    %343 = vector.broadcast %cst_86 : f32 to vector<2x16x16xf32>
    %344 = arith.cmpf oge, %342, %343 : vector<2x16x16xf32>
    %cst_87 = arith.constant 2.000000e-01 : f32
    %345 = vector.broadcast %cst_87 : f32 to vector<2x16x16xf32>
    %346 = arith.mulf %345, %342 : vector<2x16x16xf32>
    %347 = arith.select %344, %342, %346 : vector<2x16x16xi1>, vector<2x16x16xf32>
    %cst_88 = arith.constant dense<0xFF800000> : vector<2x16xf32>
    %348 = vector.multi_reduction <maximumf>, %347, %cst_88 [2] : vector<2x16x16xf32> to vector<2x16xf32>
    %349 = vector.shape_cast %348 : vector<2x16xf32> to vector<2x16x1xf32>
    %350 = vector.broadcast %349 : vector<2x16x1xf32> to vector<2x16x16xf32>
    %351 = arith.subf %347, %350 : vector<2x16x16xf32>
    %352 = math.exp %351 : vector<2x16x16xf32>
    %cst_89 = arith.constant dense<0.000000e+00> : vector<2x16xf32>
    %353 = vector.multi_reduction <add>, %352, %cst_89 [2] : vector<2x16x16xf32> to vector<2x16xf32>
    %354 = vector.shape_cast %353 : vector<2x16xf32> to vector<2x16x1xf32>
    %355 = tpu.reciprocal %354 {approx = true} : vector<2x16x1xf32> -> vector<2x16x1xf32>
    %356 = vector.broadcast %355 : vector<2x16x1xf32> to vector<2x16x16xf32>
    %357 = arith.mulf %352, %356 : vector<2x16x16xf32>
    %358 = vector.extract_strided_slice %273 {offsets = [0, 0, 128], sizes = [2, 16, 64], strides = [1, 1, 1]} : vector<2x16x512xf32> to vector<2x16x64xf32>
    "tpu.trace_start"() <{level = 10 : i32, message = "bij,bjd->bid"}> : () -> ()
    %cst_90 = arith.constant dense<0.000000e+00> : vector<2x16x64xf32>
    %359 = tpu.matmul %357, %358, %cst_90 {dimension_numbers = #tpu.dot_dimension_numbers<[2], [1], [1], [2], [0, 0, 0, 1, 1, 2], [0], [0]>} : vector<2x16x16xf32>, vector<2x16x64xf32>, vector<2x16x64xf32> -> vector<2x16x64xf32>
    %cst_91 = arith.constant 0.000000e+00 : f32
    "tpu.trace_stop"() : () -> ()
    %360 = vector.broadcast %cst_91 : f32 to vector<2x16x64xf32>
    %361 = arith.cmpf ogt, %359, %360 : vector<2x16x64xf32>
    %cst_92 = arith.constant 0.000000e+00 : f32
    %362 = vector.broadcast %cst_92 : f32 to vector<2x16x64xf32>
    %363 = arith.minimumf %359, %362 : vector<2x16x64xf32>
    %364 = math.exp %363 : vector<2x16x64xf32>
    %cst_93 = arith.constant 1.000000e+00 : f32
    %365 = vector.broadcast %cst_93 : f32 to vector<2x16x64xf32>
    %366 = arith.subf %364, %365 : vector<2x16x64xf32>
    %367 = arith.select %361, %359, %366 : vector<2x16x64xi1>, vector<2x16x64xf32>
    %368 = vector.extract_strided_slice %275 {offsets = [0, 0, 3], sizes = [2, 16, 1], strides = [1, 1, 1]} : vector<2x16x8xf32> to vector<2x16x1xf32>
    %369 = vector.extract_strided_slice %277 {offsets = [0, 3, 0], sizes = [2, 1, 16], strides = [1, 1, 1]} : vector<2x8x16xf32> to vector<2x1x16xf32>
    %370 = vector.broadcast %368 : vector<2x16x1xf32> to vector<2x16x16xf32>
    %371 = vector.broadcast %369 : vector<2x1x16xf32> to vector<2x16x16xf32>
    %372 = arith.addf %370, %371 : vector<2x16x16xf32>
    %cst_94 = arith.constant 0.000000e+00 : f32
    %373 = vector.broadcast %cst_94 : f32 to vector<2x16x16xf32>
    %374 = arith.cmpf oge, %372, %373 : vector<2x16x16xf32>
    %cst_95 = arith.constant 2.000000e-01 : f32
    %375 = vector.broadcast %cst_95 : f32 to vector<2x16x16xf32>
    %376 = arith.mulf %375, %372 : vector<2x16x16xf32>
    %377 = arith.select %374, %372, %376 : vector<2x16x16xi1>, vector<2x16x16xf32>
    %cst_96 = arith.constant dense<0xFF800000> : vector<2x16xf32>
    %378 = vector.multi_reduction <maximumf>, %377, %cst_96 [2] : vector<2x16x16xf32> to vector<2x16xf32>
    %379 = vector.shape_cast %378 : vector<2x16xf32> to vector<2x16x1xf32>
    %380 = vector.broadcast %379 : vector<2x16x1xf32> to vector<2x16x16xf32>
    %381 = arith.subf %377, %380 : vector<2x16x16xf32>
    %382 = math.exp %381 : vector<2x16x16xf32>
    %cst_97 = arith.constant dense<0.000000e+00> : vector<2x16xf32>
    %383 = vector.multi_reduction <add>, %382, %cst_97 [2] : vector<2x16x16xf32> to vector<2x16xf32>
    %384 = vector.shape_cast %383 : vector<2x16xf32> to vector<2x16x1xf32>
    %385 = tpu.reciprocal %384 {approx = true} : vector<2x16x1xf32> -> vector<2x16x1xf32>
    %386 = vector.broadcast %385 : vector<2x16x1xf32> to vector<2x16x16xf32>
    %387 = arith.mulf %382, %386 : vector<2x16x16xf32>
    %388 = vector.extract_strided_slice %273 {offsets = [0, 0, 192], sizes = [2, 16, 64], strides = [1, 1, 1]} : vector<2x16x512xf32> to vector<2x16x64xf32>
    "tpu.trace_start"() <{level = 10 : i32, message = "bij,bjd->bid"}> : () -> ()
    %cst_98 = arith.constant dense<0.000000e+00> : vector<2x16x64xf32>
    %389 = tpu.matmul %387, %388, %cst_98 {dimension_numbers = #tpu.dot_dimension_numbers<[2], [1], [1], [2], [0, 0, 0, 1, 1, 2], [0], [0]>} : vector<2x16x16xf32>, vector<2x16x64xf32>, vector<2x16x64xf32> -> vector<2x16x64xf32>
    %cst_99 = arith.constant 0.000000e+00 : f32
    "tpu.trace_stop"() : () -> ()
    %390 = vector.broadcast %cst_99 : f32 to vector<2x16x64xf32>
    %391 = arith.cmpf ogt, %389, %390 : vector<2x16x64xf32>
    %cst_100 = arith.constant 0.000000e+00 : f32
    %392 = vector.broadcast %cst_100 : f32 to vector<2x16x64xf32>
    %393 = arith.minimumf %389, %392 : vector<2x16x64xf32>
    %394 = math.exp %393 : vector<2x16x64xf32>
    %cst_101 = arith.constant 1.000000e+00 : f32
    %395 = vector.broadcast %cst_101 : f32 to vector<2x16x64xf32>
    %396 = arith.subf %394, %395 : vector<2x16x64xf32>
    %397 = arith.select %391, %389, %396 : vector<2x16x64xi1>, vector<2x16x64xf32>
    %398 = vector.extract_strided_slice %275 {offsets = [0, 0, 4], sizes = [2, 16, 1], strides = [1, 1, 1]} : vector<2x16x8xf32> to vector<2x16x1xf32>
    %399 = vector.extract_strided_slice %277 {offsets = [0, 4, 0], sizes = [2, 1, 16], strides = [1, 1, 1]} : vector<2x8x16xf32> to vector<2x1x16xf32>
    %400 = vector.broadcast %398 : vector<2x16x1xf32> to vector<2x16x16xf32>
    %401 = vector.broadcast %399 : vector<2x1x16xf32> to vector<2x16x16xf32>
    %402 = arith.addf %400, %401 : vector<2x16x16xf32>
    %cst_102 = arith.constant 0.000000e+00 : f32
    %403 = vector.broadcast %cst_102 : f32 to vector<2x16x16xf32>
    %404 = arith.cmpf oge, %402, %403 : vector<2x16x16xf32>
    %cst_103 = arith.constant 2.000000e-01 : f32
    %405 = vector.broadcast %cst_103 : f32 to vector<2x16x16xf32>
    %406 = arith.mulf %405, %402 : vector<2x16x16xf32>
    %407 = arith.select %404, %402, %406 : vector<2x16x16xi1>, vector<2x16x16xf32>
    %cst_104 = arith.constant dense<0xFF800000> : vector<2x16xf32>
    %408 = vector.multi_reduction <maximumf>, %407, %cst_104 [2] : vector<2x16x16xf32> to vector<2x16xf32>
    %409 = vector.shape_cast %408 : vector<2x16xf32> to vector<2x16x1xf32>
    %410 = vector.broadcast %409 : vector<2x16x1xf32> to vector<2x16x16xf32>
    %411 = arith.subf %407, %410 : vector<2x16x16xf32>
    %412 = math.exp %411 : vector<2x16x16xf32>
    %cst_105 = arith.constant dense<0.000000e+00> : vector<2x16xf32>
    %413 = vector.multi_reduction <add>, %412, %cst_105 [2] : vector<2x16x16xf32> to vector<2x16xf32>
    %414 = vector.shape_cast %413 : vector<2x16xf32> to vector<2x16x1xf32>
    %415 = tpu.reciprocal %414 {approx = true} : vector<2x16x1xf32> -> vector<2x16x1xf32>
    %416 = vector.broadcast %415 : vector<2x16x1xf32> to vector<2x16x16xf32>
    %417 = arith.mulf %412, %416 : vector<2x16x16xf32>
    %418 = vector.extract_strided_slice %273 {offsets = [0, 0, 256], sizes = [2, 16, 64], strides = [1, 1, 1]} : vector<2x16x512xf32> to vector<2x16x64xf32>
    "tpu.trace_start"() <{level = 10 : i32, message = "bij,bjd->bid"}> : () -> ()
    %cst_106 = arith.constant dense<0.000000e+00> : vector<2x16x64xf32>
    %419 = tpu.matmul %417, %418, %cst_106 {dimension_numbers = #tpu.dot_dimension_numbers<[2], [1], [1], [2], [0, 0, 0, 1, 1, 2], [0], [0]>} : vector<2x16x16xf32>, vector<2x16x64xf32>, vector<2x16x64xf32> -> vector<2x16x64xf32>
    %cst_107 = arith.constant 0.000000e+00 : f32
    "tpu.trace_stop"() : () -> ()
    %420 = vector.broadcast %cst_107 : f32 to vector<2x16x64xf32>
    %421 = arith.cmpf ogt, %419, %420 : vector<2x16x64xf32>
    %cst_108 = arith.constant 0.000000e+00 : f32
    %422 = vector.broadcast %cst_108 : f32 to vector<2x16x64xf32>
    %423 = arith.minimumf %419, %422 : vector<2x16x64xf32>
    %424 = math.exp %423 : vector<2x16x64xf32>
    %cst_109 = arith.constant 1.000000e+00 : f32
    %425 = vector.broadcast %cst_109 : f32 to vector<2x16x64xf32>
    %426 = arith.subf %424, %425 : vector<2x16x64xf32>
    %427 = arith.select %421, %419, %426 : vector<2x16x64xi1>, vector<2x16x64xf32>
    %428 = vector.extract_strided_slice %275 {offsets = [0, 0, 5], sizes = [2, 16, 1], strides = [1, 1, 1]} : vector<2x16x8xf32> to vector<2x16x1xf32>
    %429 = vector.extract_strided_slice %277 {offsets = [0, 5, 0], sizes = [2, 1, 16], strides = [1, 1, 1]} : vector<2x8x16xf32> to vector<2x1x16xf32>
    %430 = vector.broadcast %428 : vector<2x16x1xf32> to vector<2x16x16xf32>
    %431 = vector.broadcast %429 : vector<2x1x16xf32> to vector<2x16x16xf32>
    %432 = arith.addf %430, %431 : vector<2x16x16xf32>
    %cst_110 = arith.constant 0.000000e+00 : f32
    %433 = vector.broadcast %cst_110 : f32 to vector<2x16x16xf32>
    %434 = arith.cmpf oge, %432, %433 : vector<2x16x16xf32>
    %cst_111 = arith.constant 2.000000e-01 : f32
    %435 = vector.broadcast %cst_111 : f32 to vector<2x16x16xf32>
    %436 = arith.mulf %435, %432 : vector<2x16x16xf32>
    %437 = arith.select %434, %432, %436 : vector<2x16x16xi1>, vector<2x16x16xf32>
    %cst_112 = arith.constant dense<0xFF800000> : vector<2x16xf32>
    %438 = vector.multi_reduction <maximumf>, %437, %cst_112 [2] : vector<2x16x16xf32> to vector<2x16xf32>
    %439 = vector.shape_cast %438 : vector<2x16xf32> to vector<2x16x1xf32>
    %440 = vector.broadcast %439 : vector<2x16x1xf32> to vector<2x16x16xf32>
    %441 = arith.subf %437, %440 : vector<2x16x16xf32>
    %442 = math.exp %441 : vector<2x16x16xf32>
    %cst_113 = arith.constant dense<0.000000e+00> : vector<2x16xf32>
    %443 = vector.multi_reduction <add>, %442, %cst_113 [2] : vector<2x16x16xf32> to vector<2x16xf32>
    %444 = vector.shape_cast %443 : vector<2x16xf32> to vector<2x16x1xf32>
    %445 = tpu.reciprocal %444 {approx = true} : vector<2x16x1xf32> -> vector<2x16x1xf32>
    %446 = vector.broadcast %445 : vector<2x16x1xf32> to vector<2x16x16xf32>
    %447 = arith.mulf %442, %446 : vector<2x16x16xf32>
    %448 = vector.extract_strided_slice %273 {offsets = [0, 0, 320], sizes = [2, 16, 64], strides = [1, 1, 1]} : vector<2x16x512xf32> to vector<2x16x64xf32>
    "tpu.trace_start"() <{level = 10 : i32, message = "bij,bjd->bid"}> : () -> ()
    %cst_114 = arith.constant dense<0.000000e+00> : vector<2x16x64xf32>
    %449 = tpu.matmul %447, %448, %cst_114 {dimension_numbers = #tpu.dot_dimension_numbers<[2], [1], [1], [2], [0, 0, 0, 1, 1, 2], [0], [0]>} : vector<2x16x16xf32>, vector<2x16x64xf32>, vector<2x16x64xf32> -> vector<2x16x64xf32>
    %cst_115 = arith.constant 0.000000e+00 : f32
    "tpu.trace_stop"() : () -> ()
    %450 = vector.broadcast %cst_115 : f32 to vector<2x16x64xf32>
    %451 = arith.cmpf ogt, %449, %450 : vector<2x16x64xf32>
    %cst_116 = arith.constant 0.000000e+00 : f32
    %452 = vector.broadcast %cst_116 : f32 to vector<2x16x64xf32>
    %453 = arith.minimumf %449, %452 : vector<2x16x64xf32>
    %454 = math.exp %453 : vector<2x16x64xf32>
    %cst_117 = arith.constant 1.000000e+00 : f32
    %455 = vector.broadcast %cst_117 : f32 to vector<2x16x64xf32>
    %456 = arith.subf %454, %455 : vector<2x16x64xf32>
    %457 = arith.select %451, %449, %456 : vector<2x16x64xi1>, vector<2x16x64xf32>
    %458 = vector.extract_strided_slice %275 {offsets = [0, 0, 6], sizes = [2, 16, 1], strides = [1, 1, 1]} : vector<2x16x8xf32> to vector<2x16x1xf32>
    %459 = vector.extract_strided_slice %277 {offsets = [0, 6, 0], sizes = [2, 1, 16], strides = [1, 1, 1]} : vector<2x8x16xf32> to vector<2x1x16xf32>
    %460 = vector.broadcast %458 : vector<2x16x1xf32> to vector<2x16x16xf32>
    %461 = vector.broadcast %459 : vector<2x1x16xf32> to vector<2x16x16xf32>
    %462 = arith.addf %460, %461 : vector<2x16x16xf32>
    %cst_118 = arith.constant 0.000000e+00 : f32
    %463 = vector.broadcast %cst_118 : f32 to vector<2x16x16xf32>
    %464 = arith.cmpf oge, %462, %463 : vector<2x16x16xf32>
    %cst_119 = arith.constant 2.000000e-01 : f32
    %465 = vector.broadcast %cst_119 : f32 to vector<2x16x16xf32>
    %466 = arith.mulf %465, %462 : vector<2x16x16xf32>
    %467 = arith.select %464, %462, %466 : vector<2x16x16xi1>, vector<2x16x16xf32>
    %cst_120 = arith.constant dense<0xFF800000> : vector<2x16xf32>
    %468 = vector.multi_reduction <maximumf>, %467, %cst_120 [2] : vector<2x16x16xf32> to vector<2x16xf32>
    %469 = vector.shape_cast %468 : vector<2x16xf32> to vector<2x16x1xf32>
    %470 = vector.broadcast %469 : vector<2x16x1xf32> to vector<2x16x16xf32>
    %471 = arith.subf %467, %470 : vector<2x16x16xf32>
    %472 = math.exp %471 : vector<2x16x16xf32>
    %cst_121 = arith.constant dense<0.000000e+00> : vector<2x16xf32>
    %473 = vector.multi_reduction <add>, %472, %cst_121 [2] : vector<2x16x16xf32> to vector<2x16xf32>
    %474 = vector.shape_cast %473 : vector<2x16xf32> to vector<2x16x1xf32>
    %475 = tpu.reciprocal %474 {approx = true} : vector<2x16x1xf32> -> vector<2x16x1xf32>
    %476 = vector.broadcast %475 : vector<2x16x1xf32> to vector<2x16x16xf32>
    %477 = arith.mulf %472, %476 : vector<2x16x16xf32>
    %478 = vector.extract_strided_slice %273 {offsets = [0, 0, 384], sizes = [2, 16, 64], strides = [1, 1, 1]} : vector<2x16x512xf32> to vector<2x16x64xf32>
    "tpu.trace_start"() <{level = 10 : i32, message = "bij,bjd->bid"}> : () -> ()
    %cst_122 = arith.constant dense<0.000000e+00> : vector<2x16x64xf32>
    %479 = tpu.matmul %477, %478, %cst_122 {dimension_numbers = #tpu.dot_dimension_numbers<[2], [1], [1], [2], [0, 0, 0, 1, 1, 2], [0], [0]>} : vector<2x16x16xf32>, vector<2x16x64xf32>, vector<2x16x64xf32> -> vector<2x16x64xf32>
    %cst_123 = arith.constant 0.000000e+00 : f32
    "tpu.trace_stop"() : () -> ()
    %480 = vector.broadcast %cst_123 : f32 to vector<2x16x64xf32>
    %481 = arith.cmpf ogt, %479, %480 : vector<2x16x64xf32>
    %cst_124 = arith.constant 0.000000e+00 : f32
    %482 = vector.broadcast %cst_124 : f32 to vector<2x16x64xf32>
    %483 = arith.minimumf %479, %482 : vector<2x16x64xf32>
    %484 = math.exp %483 : vector<2x16x64xf32>
    %cst_125 = arith.constant 1.000000e+00 : f32
    %485 = vector.broadcast %cst_125 : f32 to vector<2x16x64xf32>
    %486 = arith.subf %484, %485 : vector<2x16x64xf32>
    %487 = arith.select %481, %479, %486 : vector<2x16x64xi1>, vector<2x16x64xf32>
    %488 = vector.extract_strided_slice %275 {offsets = [0, 0, 7], sizes = [2, 16, 1], strides = [1, 1, 1]} : vector<2x16x8xf32> to vector<2x16x1xf32>
    %489 = vector.extract_strided_slice %277 {offsets = [0, 7, 0], sizes = [2, 1, 16], strides = [1, 1, 1]} : vector<2x8x16xf32> to vector<2x1x16xf32>
    %490 = vector.broadcast %488 : vector<2x16x1xf32> to vector<2x16x16xf32>
    %491 = vector.broadcast %489 : vector<2x1x16xf32> to vector<2x16x16xf32>
    %492 = arith.addf %490, %491 : vector<2x16x16xf32>
    %cst_126 = arith.constant 0.000000e+00 : f32
    %493 = vector.broadcast %cst_126 : f32 to vector<2x16x16xf32>
    %494 = arith.cmpf oge, %492, %493 : vector<2x16x16xf32>
    %cst_127 = arith.constant 2.000000e-01 : f32
    %495 = vector.broadcast %cst_127 : f32 to vector<2x16x16xf32>
    %496 = arith.mulf %495, %492 : vector<2x16x16xf32>
    %497 = arith.select %494, %492, %496 : vector<2x16x16xi1>, vector<2x16x16xf32>
    %cst_128 = arith.constant dense<0xFF800000> : vector<2x16xf32>
    %498 = vector.multi_reduction <maximumf>, %497, %cst_128 [2] : vector<2x16x16xf32> to vector<2x16xf32>
    %499 = vector.shape_cast %498 : vector<2x16xf32> to vector<2x16x1xf32>
    %500 = vector.broadcast %499 : vector<2x16x1xf32> to vector<2x16x16xf32>
    %501 = arith.subf %497, %500 : vector<2x16x16xf32>
    %502 = math.exp %501 : vector<2x16x16xf32>
    %cst_129 = arith.constant dense<0.000000e+00> : vector<2x16xf32>
    %503 = vector.multi_reduction <add>, %502, %cst_129 [2] : vector<2x16x16xf32> to vector<2x16xf32>
    %504 = vector.shape_cast %503 : vector<2x16xf32> to vector<2x16x1xf32>
    %505 = tpu.reciprocal %504 {approx = true} : vector<2x16x1xf32> -> vector<2x16x1xf32>
    %506 = vector.broadcast %505 : vector<2x16x1xf32> to vector<2x16x16xf32>
    %507 = arith.mulf %502, %506 : vector<2x16x16xf32>
    %508 = vector.extract_strided_slice %273 {offsets = [0, 0, 448], sizes = [2, 16, 64], strides = [1, 1, 1]} : vector<2x16x512xf32> to vector<2x16x64xf32>
    "tpu.trace_start"() <{level = 10 : i32, message = "bij,bjd->bid"}> : () -> ()
    %cst_130 = arith.constant dense<0.000000e+00> : vector<2x16x64xf32>
    %509 = tpu.matmul %507, %508, %cst_130 {dimension_numbers = #tpu.dot_dimension_numbers<[2], [1], [1], [2], [0, 0, 0, 1, 1, 2], [0], [0]>} : vector<2x16x16xf32>, vector<2x16x64xf32>, vector<2x16x64xf32> -> vector<2x16x64xf32>
    %cst_131 = arith.constant 0.000000e+00 : f32
    "tpu.trace_stop"() : () -> ()
    %510 = vector.broadcast %cst_131 : f32 to vector<2x16x64xf32>
    %511 = arith.cmpf ogt, %509, %510 : vector<2x16x64xf32>
    %cst_132 = arith.constant 0.000000e+00 : f32
    %512 = vector.broadcast %cst_132 : f32 to vector<2x16x64xf32>
    %513 = arith.minimumf %509, %512 : vector<2x16x64xf32>
    %514 = math.exp %513 : vector<2x16x64xf32>
    %cst_133 = arith.constant 1.000000e+00 : f32
    %515 = vector.broadcast %cst_133 : f32 to vector<2x16x64xf32>
    %516 = arith.subf %514, %515 : vector<2x16x64xf32>
    %517 = arith.select %511, %509, %516 : vector<2x16x64xi1>, vector<2x16x64xf32>
    %518 = tpu.concatenate %307, %337, %367, %397, %427, %457, %487, %517 in 2 : vector<2x16x64xf32>, vector<2x16x64xf32>, vector<2x16x64xf32>, vector<2x16x64xf32>, vector<2x16x64xf32>, vector<2x16x64xf32>, vector<2x16x64xf32>, vector<2x16x64xf32> -> vector<2x16x512xf32>
    %c0_134 = arith.constant 0 : index
    %c0_135 = arith.constant 0 : index
    %c0_136 = arith.constant 0 : index
    %519 = vector.load %arg4[%c0_134, %c0_135, %c0_136] : memref<2x16x512xf32, #tpu.memory_space<vmem>>, vector<2x16x512xf32>
    tpu.vector_store %arg4[%c0_134, %c0_135, %c0_136], %518 {strides = array<i32>} : memref<2x16x512xf32, #tpu.memory_space<vmem>>, vector<2x16x512xf32>,
    return
  }
  func.func @transform_0(%arg0: i32) -> (i32, i32, i32) {
    %c0_i32 = arith.constant 0 : i32
    %c0_i32_0 = arith.constant 0 : i32
    %c0_i32_1 = arith.constant 0 : i32
    return %arg0, %c0_i32, %c0_i32_0 : i32, i32, i32
  }
  func.func @transform_1(%arg0: i32) -> (i32, i32) {
    %c0_i32 = arith.constant 0 : i32
    %c0_i32_0 = arith.constant 0 : i32
    %c0_i32_1 = arith.constant 0 : i32
    return %c0_i32, %c0_i32_0 : i32, i32
  }
  func.func @transform_2(%arg0: i32) -> (i32, i32) {
    %c0_i32 = arith.constant 0 : i32
    %c0_i32_0 = arith.constant 0 : i32
    %c0_i32_1 = arith.constant 0 : i32
    return %c0_i32, %c0_i32_0 : i32, i32
  }
  func.func @transform_3(%arg0: i32) -> (i32, i32, i32) {
    %c0_i32 = arith.constant 0 : i32
    %c0_i32_0 = arith.constant 0 : i32
    %c0_i32_1 = arith.constant 0 : i32
    return %arg0, %c0_i32, %c0_i32_0 : i32, i32, i32
  }
}

</mosaic_0001>

<bundles_post_ra>
// kernel: tpu_custom_call.1
= control target key start
LH: loop header
LB: loop body
LE: loop exit
PB: predicated region body
PF: predicated region fallthrough
CT: control target
= control target key end

     0   :  { %v4617_v2 = vmov 0   ;;  %s6195_s0 = inlined_call_operand.vmem [shape: f32[2,16,3], index: 0, kind: input, shape index: {}]   ;;  %s6196_s1 = inlined_call_operand.vmem [shape: f32[3,144], index: 1, kind: input, shape index: {}]   ;;  %s6197_s2 = inlined_call_operand.vmem [shape: bf16[128,528], index: 2, kind: input, shape index: {}]   ;;  %s6198_s3 = inlined_call_operand.hbm [shape: f32[2,16,512], index: 3, kind: output, shape index: {}]  }
   0x1   :  { %v17_v0 = vld [vmem:[%s6195_s0 + $0x10] sm:$0xff]  ;;  %v15_v1 = vld [vmem:[%s6195_s0] sm:$0xff]  ;;  %3969 = vset.pattern.permute.xlu1 %v4617_v2  ;;  %3968 = vset.pattern.permute.xlu0 %v4617_v2 }
   0x2   :  { %32 = vperm.xlu1 %3969, %v17_v0   ;;  %22 = vperm.xlu0 %3968, %v15_v1  }
   0x3   :  { %8 = vsyncpa [#allocation3], 0  ;;  %v4618_v3 = vmov 1   ;;  %v18_v4 = vld [vmem:[%s6195_s0 + $0x18] sm:$0xff]  ;;  %v16_v5 = vld [vmem:[%s6195_s0 + $0x8] sm:$0xff]  ;;  %v4619_v6 = vmov 2  }
   0x4   :  { %3970 = vset.pattern.permute.xlu2 %v4618_v3  ;;  %v19_v9 = vld [vmem:[%s6196_s1] sm:$0x77]  ;;  %s4620_s21 = smov 120   ;;  %s4621_s1 = smov 112   ;;  %vm245_vm0 = vcmask 130048  }
   0x5   :  { %56 = vperm.xlu2 %3970, %v15_v1   ;;  %v72_v10 = vperm.slane %v19_v9, 5  ;;  %v110_v11 = vperm.slane %v19_v9, 6  ;;  %v42_v12 = vperm.slane %v19_v9, 4  ;;  %v41_v26 = vperm.slane %v19_v9, 0  ;;  %s4623_s22 = smov 96   ;;  %s4625_s23 = smov 80  }
   0x6   :  { %v71_v27 = vperm.slane %v19_v9, 1  ;;  %v109_v28 = vperm.slane %v19_v9, 2  ;;  %s4627_s24 = smov 64   ;;  %s4630_s25 = smov 48  }
   0x7   :  { %v76_v13 = vperm.slane %v72_v10, 1  ;;  %v114_v14 = vperm.slane %v110_v11, 2  ;;  %v46_v15 = vperm.slane %v42_v12, 0  ;;  %v45_v29 = vperm.slane %v41_v26, 0  ;;  %s4631_s26 = smov 32   ;;  %s4632_s27 = smov 16  }
   0x8   :  { %v75_v33 = vperm.slane %v71_v27, 1  ;;  %v113_v36 = vperm.slane %v109_v28, 2  ;;  %s4633_s5 = smov [#allocation2]   ;;  %s4634_s7 = smov 512  }
   0x9   :  { %s3603_s6 = sshll.u32 %s4633_s5, 4  ;;  %s3604_s6 = int_to_ptr.vmem [resolvable:$true] %s3603_s6 }
   0xa   :  { %37 = vperm.xlu1 %3969, %v18_v4   ;;  %27 = vperm.xlu0 %3968, %v16_v5  }
   0xd   :  { %60 = vperm.xlu2 %3970, %v16_v5  }
  0x12   :  { %3972 = vset.pattern.permute.xlu1 %v4618_v3  ;;  %3971 = vset.pattern.permute.xlu0 %v4618_v3 }
  0x13   :  { %68 = vperm.xlu1 %3972, %v18_v4   ;;  %64 = vperm.xlu0 %3971, %v17_v0  }
  0x15   :  { %3973 = vset.pattern.permute.xlu2 %v4619_v6 }
  0x16   :  { %94 = vperm.xlu2 %3973, %v15_v1  }
  0x1b   :  { %3974 = vset.pattern.permute.xlu1 %v4619_v6  ;;  %3975 = vset.pattern.permute.xlu0 %v4619_v6 }
  0x1c   :  { %98 = vperm.xlu1 %3974, %v16_v5   ;;  %106 = vperm.xlu0 %3975, %v18_v4  }
  0x1e   :  { %102 = vperm.xlu2 %3973, %v17_v0  }
  0x26   :  { %3976 = vset.pattern.permute.xlu2 %v4617_v2 }
  0x5f   :  { %v57_v7 = vpop.permute.xlu2 %56 }
  0x60   :  { %v78_v19 = vmul.f32 %v76_v13, %v57_v7  ;;  %v77_v41 = vmul.f32 %v75_v33, %v57_v7 }
  0x67   :  { %v61_v8 = vpop.permute.xlu2 %60 }
  0x68   :  { %v79_v47 = vmul.f32 %v75_v33, %v61_v8  ;;  %v80_v48 = vmul.f32 %v76_v13, %v61_v8 }
  0x70   :  { %v95_v16 = vpop.permute.xlu2 %94 }
  0x71   :  { %v116_v20 = vmul.f32 %v114_v14, %v95_v16  ;;  %v115_v49 = vmul.f32 %v113_v36, %v95_v16 }
  0x74   :  { %v23_v17 = vpop.permute.xlu0 %22  ;;  %v33_v18 = vpop.permute.xlu1 %32 }
  0x75   :  { %v48_v21 = vmul.f32 %v46_v15, %v23_v17  ;;  %v52_v34 = vmul.f32 %v46_v15, %v33_v18  ;;  %v47_v37 = vmul.f32 %v45_v29, %v23_v17  ;;  %v51_v45 = vmul.f32 %v45_v29, %v33_v18 }
  0x77   :  { %v86_v22 = vadd.f32 %v78_v19, %v48_v21  ;;  %v85_v50 = vadd.f32 %v77_v41, %v47_v37 }
  0x78   :  { %v103_v30 = vpop.permute.xlu2 %102 }
  0x79   :  { %v4679_v23 = vadd.f32 %v116_v20, %v86_v22  ;;  %v120_v38 = vmul.f32 %v114_v14, %v103_v30  ;;  %v119_v53 = vmul.f32 %v113_v36, %v103_v30  ;;  %v123_v62 = vadd.f32 %v115_v49, %v85_v50 }
  0x7b   :  { %135 = vrot.lane.b32.xlu1 %v4679_v23, %s4620_s21 }
  0x7c   :  { %v28_v24 = vpop.permute.xlu0 %27  ;;  %v38_v25 = vpop.permute.xlu1 %37 }
  0x7d   :  { %v49_v42 = vmul.f32 %v45_v29, %v28_v24  ;;  %v50_v43 = vmul.f32 %v46_v15, %v28_v24  ;;  %v53_v51 = vmul.f32 %v45_v29, %v38_v25  ;;  %v54_v5 = vmul.f32 %v46_v15, %v38_v25 }
  0x7f   :  { %v87_v54 = vadd.f32 %v79_v47, %v49_v42  ;;  %v88_v55 = vadd.f32 %v80_v48, %v50_v43 }
  0x85   :  { %v69_v31 = vpop.permute.xlu1 %68  ;;  %v65_v32 = vpop.permute.xlu0 %64 }
  0x86   :  { %v82_v35 = vmul.f32 %v76_v13, %v65_v32  ;;  %v81_v40 = vmul.f32 %v75_v33, %v65_v32  ;;  %v83_v46 = vmul.f32 %v75_v33, %v69_v31  ;;  %v84_v7 = vmul.f32 %v76_v13, %v69_v31 }
  0x88   :  { %v90_v39 = vadd.f32 %v82_v35, %v52_v34  ;;  %v89_v52 = vadd.f32 %v81_v40, %v51_v45  ;;  %v91_v58 = vadd.f32 %v83_v46, %v53_v51  ;;  %v92_v12 = vadd.f32 %v84_v7, %v54_v5 }
  0x8a   :  { %v4683_v44 = vadd.f32 %v120_v38, %v90_v39  ;;  %v127_v63 = vadd.f32 %v119_v53, %v89_v52 }
  0x8c   :  { %139 = vrot.lane.b32.xlu1 %v4683_v44, %s4620_s21 }
  0x8e   :  { %v99_v56 = vpop.permute.xlu1 %98  ;;  %v107_v57 = vpop.permute.xlu0 %106 }
  0x8f   :  { %v117_v59 = vmul.f32 %v113_v36, %v99_v56  ;;  %v118_v60 = vmul.f32 %v114_v14, %v99_v56  ;;  %v121_v61 = vmul.f32 %v113_v36, %v107_v57  ;;  %v122_v8 = vmul.f32 %v114_v14, %v107_v57 }
  0x91   :  { %v125_v0 = vadd.f32 %v117_v59, %v87_v54  ;;  %v4687_v1 = vadd.f32 %v118_v60, %v88_v55  ;;  %v129_v4 = vadd.f32 %v121_v61, %v91_v58  ;;  %v4703_v14 = vadd.f32 %v122_v8, %v92_v12 }
  0x93   :  { %137 = vrot.lane.b32.xlu2 %v4687_v1, %s4620_s21  ;;  %310 = vmatpush.msra.mxu0 %v125_v0  ;;  %v4691_v9 = vpack.i.bf16 %v125_v0, %v123_v62  ;;  %v4693_v10 = vpack.i.bf16 %v129_v4, %v127_v63  ;;  %v4697_v11 = vpack.i.bf16 %v123_v62, %v125_v0 }
  0x94   :  { %3945 = vmatpush.msra.mxu2 %v125_v0  ;;  %339 = vmatpush.msra.mxu1 %v129_v4  ;;  %v4701_v13 = vpack.i.bf16 %v127_v63, %v129_v4 }
  0x95   :  { %3947 = vmatpush.msra.mxu3 %v129_v4  ;;  %311 = vmatpush.msra.mxu0 %v123_v62 }
  0x96   :  { %3946 = vmatpush.msra.mxu2 %v123_v62  ;;  %3979 = vrot.lane.b32.xlu1 %v4691_v9, %s4621_s1 }
  0x97   :  { %3984 = vrot.lane.b32.xlu0 %v4693_v10, %s4621_s1  ;;  %340 = vmatpush.msra.mxu1 %v127_v63 }
  0x98   :  { %3948 = vmatpush.msra.mxu3 %v127_v63 }
  0x9b   :  { %141 = vrot.lane.b32.xlu2 %v4703_v14, %s4620_s21 }
  0x9e   :  { %553 = vperm.xlu1 %3974, %v4687_v1  }
  0x9f   :  { %557 = vperm.xlu0 %3975, %v4683_v44  }
  0xa3   :  { %212 = vperm.xlu2 %3976, %v4679_v23  }
  0xa6   :  { %561 = vperm.xlu1 %3974, %v4703_v14  }
  0xab   :  { %216 = vperm.xlu2 %3976, %v4687_v1  }
  0xb3   :  { %220 = vperm.xlu2 %3976, %v4683_v44  }
  0xbb   :  { %224 = vperm.xlu2 %3976, %v4703_v14  }
  0xc3   :  { %3977 = vset.pattern.permute.xlu2 %v4618_v3 }
  0xc4   :  { %373 = vperm.xlu2 %3977, %v4679_v23  }
  0xcc   :  { %377 = vperm.xlu2 %3977, %v4687_v1  }
  0xd4   :  { %381 = vperm.xlu2 %3977, %v4683_v44  }
  0xdc   :  { %385 = vperm.xlu2 %3977, %v4703_v14  }
  0xe4   :  { %3988 = vset.pattern.permute.xlu2 %v4619_v6 }
  0xe5   :  { %549 = vperm.xlu2 %3988, %v4679_v23  }
  0xed   :  { %v136_v15 = vpop.permute.xlu1 %135  ;;  %v138_v16 = vpop.permute.xlu2 %137 }
  0xee   :  { %147 = vxpose.xlu0.b32.start [1/2] (short) (narrow) %v136_v15, 8 }
  0xf5   :  { %v142_v18 = vpop.permute.xlu2 %141 }
  0xf6   :  { %148 = vxpose.xlu0.b32.end [2/2] (short) (narrow) %v138_v16, 8 }
  0xfd   :  { %v213_v26 = vpop.permute.xlu2 %212 }
  0xfe   :  { %v140_v17 = vpop.permute.xlu1 %139 }
  0xff   :  { %179 = vxpose.xlu1.b32.start [1/2] (short) (narrow) %v140_v17, 8 }
 0x105   :  { %v217_v27 = vpop.permute.xlu2 %216 }
 0x107   :  { %180 = vxpose.xlu1.b32.end [2/2] (short) (narrow) %v142_v18, 8 }
 0x108   :  { %v3980_v19 = vpop.permute.xlu1 %3979 }
 0x109   :  { %v3985_v20 = vpop.permute.xlu0 %3984  ;;  %v3982_v21 = vunpack.i.h.bf16 %v3980_v19  ;;  %v3981_v24 = vunpack.i.l.bf16 %v3980_v19 }
 0x10a   :  { %v3987_v22 = vunpack.i.h.bf16 %v3985_v20  ;;  %v3986_v25 = vunpack.i.l.bf16 %v3985_v20 }
 0x10b   :  { %478 = vmatpush.msrb.mxu2 %v3982_v21 }
 0x10c   :  { %515 = vmatpush.msrb.mxu3 %v3987_v22 }
 0x10d   :  { %479 = vmatpush.msrb.mxu2 %v3981_v24  ;;  %v221_v28 = vpop.permute.xlu2 %220 }
 0x10e   :  { %516 = vmatpush.msrb.mxu3 %v3986_v25 }
 0x110   :  { %v554_v33 = vpop.permute.xlu1 %553 }
 0x111   :  { %v4721_v32 = vpop.permute.xlu0 %557 }
 0x115   :  { %v225_v29 = vpop.permute.xlu2 %224 }
 0x118   :  { %v562_v48 = vpop.permute.xlu1 %561 }
 0x11e   :  { %v374_v30 = vpop.permute.xlu2 %373 }
 0x126   :  { %v378_v31 = vpop.permute.xlu2 %377 }
 0x12e   :  { %v382_v34 = vpop.permute.xlu2 %381 }
 0x136   :  { %v386_v50 = vpop.permute.xlu2 %385 }
 0x13f   :  { %v550_v57 = vpop.permute.xlu2 %549 }
 0x192   :  { %v4723_v35 = vpop.trf.xlu0 }
 0x193   :  { %v227_v36 = vperm.slane %v4723_v35, 0  ;;  %v388_v37 = vperm.slane %v4723_v35, 1  ;;  %v564_v54 = vperm.slane %v4723_v35, 2 }
 0x195   :  { %v230_v38 = vadd.f32 %v227_v36, %v217_v27  ;;  %v229_v39 = vadd.f32 %v227_v36, %v213_v26  ;;  %v390_v40 = vadd.f32 %v388_v37, %v374_v30  ;;  %v391_v61 = vadd.f32 %v388_v37, %v378_v31 }
 0x196   :  { %v566_v62 = vadd.f32 %v564_v54, %v550_v57  ;;  %v567_v22 = vadd.f32 %v564_v54, %v554_v33 }
 0x197   :  { %vm234_vm1 = vcmp.ge.f32.partialorder %v230_v38, 0.0  ;;  %v238_v41 = vmul.f32 0.2, %v230_v38  ;;  %vm233_vm2 = vcmp.ge.f32.partialorder %v229_v39, 0.0  ;;  %v237_v42 = vmul.f32 0.2, %v229_v39 }
 0x198   :  { %v398_v49 = vmul.f32 0.2, %v390_v40  ;;  %vm394_vm3 = vcmp.ge.f32.partialorder %v390_v40, 0.0  ;;  %v399_v18 = vmul.f32 0.2, %v391_v61  ;;  %vm395_vm7 = vcmp.ge.f32.partialorder %v391_v61, 0.0 }
 0x199   :  { %v4727_v43 = vsel %vm234_vm1, %v230_v38, %v238_v41  ;;  %v4729_v45 = vsel %vm233_vm2, %v229_v39, %v237_v42  ;;  %v574_v19 = vmul.f32 0.2, %v566_v62  ;;  %vm570_vm8 = vcmp.ge.f32.partialorder %v566_v62, 0.0 }
 0x19a   :  { %v249_v46 = vsel %vm245_vm0, %v4727_v43, -inf  ;;  %v246_v47 = vsel %vm245_vm0, %v4729_v45, -inf  ;;  %v4735_v51 = vsel %vm394_vm3, %v390_v40, %v398_v49  ;;  %v4757_v24 = vsel %vm395_vm7, %v391_v61, %v399_v18 }
 0x19b   :  { %250 = vmax.xlane.f32.xlu0 %v249_v46  ;;  %247 = vmax.xlane.f32.xlu2 %v246_v47  ;;  %v406_v52 = vsel %vm245_vm0, %v4735_v51, -inf  ;;  %v4759_v25 = vsel %vm570_vm8, %v566_v62, %v574_v19  ;;  %v409_v30 = vsel %vm245_vm0, %v4757_v24, -inf  ;;  %vm571_vm10 = vcmp.ge.f32.partialorder %v567_v22, 0.0 }
 0x19c   :  { %v582_v31 = vsel %vm245_vm0, %v4759_v25, -inf }
 0x1a3   :  { %v4739_v53 = vpop.trf.xlu1  ;;  %407 = vmax.xlane.f32.xlu0 %v406_v52 }
 0x1a4   :  { %v228_v55 = vperm.slane %v4739_v53, 0  ;;  %v389_v56 = vperm.slane %v4739_v53, 1  ;;  %v565_v20 = vperm.slane %v4739_v53, 2 }
 0x1a6   :  { %v231_v58 = vadd.f32 %v228_v55, %v221_v28  ;;  %v393_v59 = vadd.f32 %v389_v56, %v386_v50  ;;  %v232_v60 = vadd.f32 %v228_v55, %v225_v29  ;;  %v392_v5 = vadd.f32 %v389_v56, %v382_v34 }
 0x1a7   :  { %v569_v26 = vadd.f32 %v565_v20, %v562_v48  ;;  %v568_v28 = vadd.f32 %v565_v20, %v4721_v32  ;;  %v4622_v29 = vmov 3   ;;  %v575_v34 = vmul.f32 0.2, %v567_v22 }
 0x1a8   :  { %vm235_vm4 = vcmp.ge.f32.partialorder %v231_v58, 0.0  ;;  %v239_v63 = vmul.f32 0.2, %v231_v58  ;;  %vm397_vm5 = vcmp.ge.f32.partialorder %v393_v59, 0.0  ;;  %v401_v0 = vmul.f32 0.2, %v393_v59  ;;  %3999 = vset.pattern.permute.xlu1 %v4622_v29  ;;  %4000 = vset.pattern.permute.xlu0 %v4622_v29 }
 0x1a9   :  { %vm236_vm6 = vcmp.ge.f32.partialorder %v232_v60, 0.0  ;;  %v240_v4 = vmul.f32 0.2, %v232_v60  ;;  %v400_v21 = vmul.f32 0.2, %v392_v5  ;;  %vm396_vm9 = vcmp.ge.f32.partialorder %v392_v5, 0.0  ;;  %4001 = vset.pattern.permute.xlu2 %v4622_v29 }
 0x1aa   :  { %v4744_v7 = vsel %vm235_vm4, %v231_v58, %v239_v63  ;;  %v4746_v8 = vsel %vm397_vm5, %v393_v59, %v401_v0  ;;  %v577_v32 = vmul.f32 0.2, %v569_v26  ;;  %vm573_vm11 = vcmp.ge.f32.partialorder %v569_v26, 0.0 }
 0x1ab   :  { %v252_v12 = vsel %vm245_vm0, %v4744_v7, -inf  ;;  %v415_v15 = vsel %vm245_vm0, %v4746_v8, -inf  ;;  %v4752_v16 = vsel %vm236_vm6, %v232_v60, %v240_v4  ;;  %v4761_v27 = vsel %vm396_vm9, %v392_v5, %v400_v21 }
 0x1ac   :  { %253 = vmax.xlane.f32.xlu1 %v252_v12  ;;  %416 = vmax.xlane.f32.xlu0 %v415_v15  ;;  %v255_v17 = vsel %vm245_vm0, %v4752_v16, -inf  ;;  %v412_v33 = vsel %vm245_vm0, %v4761_v27, -inf  ;;  %v576_v36 = vmul.f32 0.2, %v568_v28  ;;  %vm572_vm12 = vcmp.ge.f32.partialorder %v568_v28, 0.0 }
 0x1ad   :  { %256 = vmax.xlane.f32.xlu2 %v255_v17  ;;  %v4773_v37 = vsel %vm571_vm10, %v567_v22, %v575_v34  ;;  %v4775_v38 = vsel %vm573_vm11, %v569_v26, %v577_v32  ;;  %v737_v0 = vperm.slane %v4739_v53, 3  ;;  %v736_v22 = vperm.slane %v4723_v35, 3 }
 0x1ae   :  { %v4777_v39 = vsel %vm572_vm12, %v568_v28, %v576_v36  ;;  %v585_v40 = vsel %vm245_vm0, %v4773_v37, -inf  ;;  %v591_v41 = vsel %vm245_vm0, %v4775_v38, -inf }
 0x1af   :  { %v588_v42 = vsel %vm245_vm0, %v4777_v39, -inf }
 0x1b4   :  { %410 = vmax.xlane.f32.xlu1 %v409_v30  ;;  %583 = vmax.xlane.f32.xlu0 %v582_v31 }
 0x1b5   :  { %413 = vmax.xlane.f32.xlu2 %v412_v33 }
 0x1bc   :  { %586 = vmax.xlane.f32.xlu1 %v585_v40  ;;  %592 = vmax.xlane.f32.xlu0 %v591_v41 }
 0x1bd   :  { %589 = vmax.xlane.f32.xlu2 %v588_v42 }
 0x1d0   :  { %3990 = vrot.lane.b32.xlu0 %v4691_v9, %s4623_s22 }
 0x1d5   :  { %3995 = vrot.lane.b32.xlu2 %v4693_v10, %s4623_s22  ;;  %721 = vperm.xlu1 %3999, %v4679_v23  }
 0x1d8   :  { %725 = vperm.xlu0 %4000, %v4687_v1  }
 0x1dd   :  { %729 = vperm.xlu2 %4001, %v4683_v44   ;;  %733 = vperm.xlu1 %3999, %v4703_v14  }
 0x20e   :  { %v4793_v46 = vpop.xlane.xlu0 %250  ;;  %v248_v47 = vpop.xlane.xlu2 %247 }
 0x20f   :  { %v258_v40 = vsub.f32 %v4729_v45, %v248_v47 }
 0x216   :  { %v408_v48 = vpop.xlane.xlu0 %407 }
 0x217   :  { %v418_v62 = vsub.f32 %v4735_v51, %v408_v48 }
 0x219   :  { %v422_v5 = vmul.f32 1.442695, %v418_v62 }
 0x21b   :  { %4207 = vpow2.f32 %v422_v5 }
 0x21f   :  { %v4797_v50 = vpop.xlane.xlu0 %416  ;;  %v4799_v54 = vpop.xlane.xlu1 %253 }
 0x220   :  { %v4795_v49 = vpop.xlane.xlu2 %256 }
 0x227   :  { %v584_v55 = vpop.xlane.xlu0 %583  ;;  %v411_v57 = vpop.xlane.xlu1 %410 }
 0x228   :  { %v414_v52 = vpop.xlane.xlu2 %413  ;;  %v419_v26 = vsub.f32 %v4757_v24, %v411_v57  ;;  %v594_v41 = vsub.f32 %v4759_v25, %v584_v55  ;;  %v421_v57 = vsub.f32 %v4746_v8, %v4797_v50  ;;  %v262_v25 = vmul.f32 1.442695, %v258_v40 }
 0x229   :  { %v420_v19 = vsub.f32 %v4761_v27, %v414_v52  ;;  %v4816_v27 = vpop.eup %4207  ;;  %v259_v8 = vsub.f32 %v4727_v43, %v4793_v46 }
 0x22a   :  { %v424_v32 = vmul.f32 1.442695, %v419_v26  ;;  %v430_v52 = vsel %vm245_vm0, %v4816_v27, 0.0 }
 0x22b   :  { %v426_v31 = vmul.f32 1.442695, %v420_v19  ;;  %v264_v46 = vmul.f32 1.442695, %v259_v8 }
 0x22d   :  { %4209 = vpow2.f32 %v426_v31 }
 0x22e   :  { %4211 = vpow2.f32 %v424_v32 }
 0x22f   :  { %v4803_v60 = vpop.xlane.xlu0 %592  ;;  %v4806_v63 = vpop.xlane.xlu1 %586  ;;  %4213 = vpow2.f32 %v262_v25 }
 0x230   :  { %v4801_v56 = vpop.xlane.xlu2 %589  ;;  %v595_v43 = vsub.f32 %v4773_v37, %v4806_v63 }
 0x233   :  { %v4832_v62 = vpop.eup %4209 }
 0x234   :  { %v4838_v5 = vpop.eup %4211 }
 0x235   :  { %v4850_v19 = vpop.eup %4213 }
 0x236   :  { %v270_v37 = vsel %vm245_vm0, %v4850_v19, 0.0 }
 0x238   :  { %v3996_v58 = vpop.permute.xlu2 %3995 }
 0x239   :  { %v3998_v59 = vunpack.i.h.bf16 %v3996_v58  ;;  %v3997_v61 = vunpack.i.l.bf16 %v3996_v58 }
 0x23b   :  { %687 = vmatpush.msrb.mxu1 %v3998_v59  ;;  %v598_v59 = vmul.f32 1.442695, %v594_v41 }
 0x23d   :  { %688 = vmatpush.msrb.mxu1 %v3997_v61  ;;  %4215 = vpow2.f32 %v598_v59 }
 0x240   :  { %v730_v4 = vpop.permute.xlu2 %729 }
 0x241   :  { %v740_v12 = vadd.f32 %v737_v0, %v730_v4  ;;  %v428_v4 = vmul.f32 1.442695, %v421_v57 }
 0x242   :  { %v3991_v15 = vpop.permute.xlu0 %3990 }
 0x243   :  { %v3993_v17 = vunpack.i.h.bf16 %v3991_v15  ;;  %vm744_vm13 = vcmp.ge.f32.partialorder %v740_v12, 0.0  ;;  %v748_v18 = vmul.f32 0.2, %v740_v12  ;;  %v3992_v21 = vunpack.i.l.bf16 %v3991_v15 }
 0x244   :  { %v436_v15 = vsel %vm245_vm0, %v4832_v62, 0.0  ;;  %4217 = vpow2.f32 %v428_v4 }
 0x245   :  { %652 = vmatpush.msrb.mxu0 %v3993_v17  ;;  %v4810_v20 = vsel %vm744_vm13, %v740_v12, %v748_v18  ;;  %v433_v17 = vsel %vm245_vm0, %v4838_v5, 0.0  ;;  %4219 = vpow2.f32 %v264_v46 }
 0x246   :  { %v760_v51 = vsel %vm245_vm0, %v4810_v20, -inf }
 0x247   :  { %761 = vmax.xlane.f32.xlu1 %v760_v51  ;;  %v722_v28 = vpop.permute.xlu1 %721  ;;  %653 = vmatpush.msrb.mxu0 %v3992_v21  ;;  %v260_v21 = vsub.f32 %v4744_v7, %v4799_v54  ;;  %v261_v54 = vsub.f32 %v4752_v16, %v4795_v49  ;;  %v596_v16 = vsub.f32 %v4777_v39, %v4801_v56 }
 0x248   :  { %v738_v30 = vadd.f32 %v736_v22, %v722_v28 }
 0x249   :  { %v602_v40 = vmul.f32 1.442695, %v596_v16 }
 0x24a   :  { %v726_v33 = vpop.permute.xlu0 %725  ;;  %vm742_vm14 = vcmp.ge.f32.partialorder %v738_v30, 0.0  ;;  %v746_v34 = vmul.f32 0.2, %v738_v30 }
 0x24b   :  { %v739_v36 = vadd.f32 %v736_v22, %v726_v33  ;;  %v266_v22 = vmul.f32 1.442695, %v260_v21 }
 0x24c   :  { %v4820_v42 = vsel %vm742_vm14, %v738_v30, %v746_v34  ;;  %v268_v34 = vmul.f32 1.442695, %v261_v54 }
 0x24d   :  { %v754_v24 = vsel %vm245_vm0, %v4820_v42, -inf  ;;  %vm743_vm15 = vcmp.ge.f32.partialorder %v739_v36, 0.0  ;;  %v747_v48 = vmul.f32 0.2, %v739_v36 }
 0x24e   :  { %755 = vmax.xlane.f32.xlu2 %v754_v24 }
 0x24f   :  { %431 = vadd.xlane.f32.xlu1 %v430_v52  ;;  %v734_v45 = vpop.permute.xlu1 %733  ;;  %v4828_v47 = vsel %vm743_vm15, %v739_v36, %v747_v48 }
 0x250   :  { %v741_v55 = vadd.f32 %v737_v0, %v734_v45  ;;  %v757_v58 = vsel %vm245_vm0, %v4828_v47, -inf  ;;  %v597_v0 = vsub.f32 %v4775_v38, %v4803_v60  ;;  %v4852_v38 = vpop.eup %4215  ;;  %v600_v60 = vmul.f32 1.442695, %v595_v43 }
 0x251   :  { %758 = vmax.xlane.f32.xlu0 %v757_v58  ;;  %v4856_v51 = vpop.eup %4217  ;;  %v606_v63 = vsel %vm245_vm0, %v4852_v38, 0.0 }
 0x252   :  { %vm745_vm1 = vcmp.ge.f32.partialorder %v741_v55, 0.0  ;;  %v749_v61 = vmul.f32 0.2, %v741_v55  ;;  %v604_v18 = vmul.f32 1.442695, %v597_v0  ;;  %v439_v26 = vsel %vm245_vm0, %v4856_v51, 0.0  ;;  %v4864_v28 = vpop.eup %4219 }
 0x253   :  { %v273_v31 = vsel %vm245_vm0, %v4864_v28, 0.0 }
 0x254   :  { %v4836_v50 = vsel %vm745_vm1, %v741_v55, %v749_v61  ;;  %4221 = vpow2.f32 %v604_v18  ;;  %v4624_v61 = vmov 4  }
 0x255   :  { %v763_v12 = vsel %vm245_vm0, %v4836_v50, -inf  ;;  %4223 = vpow2.f32 %v600_v60  ;;  %4014 = vset.pattern.permute.xlu2 %v4624_v61  ;;  %4012 = vset.pattern.permute.xlu0 %v4624_v61 }
 0x256   :  { %764 = vmax.xlane.f32.xlu2 %v763_v12  ;;  %4225 = vpow2.f32 %v266_v22  ;;  %4013 = vset.pattern.permute.xlu1 %v4624_v61 }
 0x257   :  { %437 = vadd.xlane.f32.xlu1 %v436_v15  ;;  %4227 = vpow2.f32 %v268_v34 }
 0x258   :  { %4229 = vpow2.f32 %v602_v40 }
 0x259   :  { %434 = vadd.xlane.f32.xlu0 %v433_v17 }
 0x25a   :  { %v4866_v7 = vpop.eup %4221 }
 0x25b   :  { %v4870_v30 = vpop.eup %4223  ;;  %v615_v33 = vsel %vm245_vm0, %v4866_v7, 0.0 }
 0x25c   :  { %v609_v32 = vsel %vm245_vm0, %v4870_v30, 0.0  ;;  %v4878_v36 = vpop.eup %4225 }
 0x25d   :  { %v276_v49 = vsel %vm245_vm0, %v4878_v36, 0.0  ;;  %v4884_v41 = vpop.eup %4227 }
 0x25e   :  { %271 = vadd.xlane.f32.xlu2 %v270_v37  ;;  %v279_v24 = vsel %vm245_vm0, %v4884_v41, 0.0  ;;  %v4888_v48 = vpop.eup %4229 }
 0x25f   :  { %607 = vadd.xlane.f32.xlu1 %v606_v63  ;;  %v612_v52 = vsel %vm245_vm0, %v4888_v48, 0.0 }
 0x261   :  { %440 = vadd.xlane.f32.xlu0 %v439_v26 }
 0x266   :  { %274 = vadd.xlane.f32.xlu2 %v273_v31 }
 0x267   :  { %616 = vadd.xlane.f32.xlu1 %v615_v33 }
 0x269   :  { %610 = vadd.xlane.f32.xlu0 %v609_v32 }
 0x26e   :  { %277 = vadd.xlane.f32.xlu2 %v276_v49 }
 0x276   :  { %280 = vadd.xlane.f32.xlu2 %v279_v24 }
 0x27e   :  { %613 = vadd.xlane.f32.xlu2 %v612_v52 }
 0x2ba   :  { %v762_v57 = vpop.xlane.xlu1 %761 }
 0x2bb   :  { %v768_v39 = vsub.f32 %v4810_v20, %v762_v57 }
 0x2bd   :  { %v774_v56 = vmul.f32 1.442695, %v768_v39 }
 0x2bf   :  { %4231 = vpow2.f32 %v774_v56 }
 0x2c1   :  { %v756_v45 = vpop.xlane.xlu2 %755 }
 0x2c2   :  { %v432_v25 = vpop.xlane.xlu1 %431  ;;  %v766_v55 = vsub.f32 %v4820_v42, %v756_v45 }
 0x2c4   :  { %v770_v58 = vmul.f32 1.442695, %v766_v55  ;;  %v759_v59 = vpop.xlane.xlu0 %758 }
 0x2c5   :  { %v4896_v4 = vpop.eup %4231  ;;  %v767_v8 = vsub.f32 %v4828_v47, %v759_v59 }
 0x2c6   :  { %4233 = vpow2.f32 %v770_v58  ;;  %v784_v20 = vsel %vm245_vm0, %v4896_v4, 0.0 }
 0x2c7   :  { %v772_v0 = vmul.f32 1.442695, %v767_v8  ;;  %785 = vadd.xlane.f32.xlu2 %v784_v20 }
 0x2c9   :  { %4235 = vpow2.f32 %v772_v0  ;;  %v765_v42 = vpop.xlane.xlu2 %764 }
 0x2ca   :  { %v769_v12 = vsub.f32 %v4836_v50, %v765_v42  ;;  %v438_v15 = vpop.xlane.xlu1 %437 }
 0x2cc   :  { %v4903_v43 = vpop.eup %4233  ;;  %v776_v46 = vmul.f32 1.442695, %v769_v12  ;;  %v435_v17 = vpop.xlane.xlu0 %434 }
 0x2cd   :  { %v778_v47 = vsel %vm245_vm0, %v4903_v43, 0.0 }
 0x2ce   :  { %4237 = vpow2.f32 %v776_v46  ;;  %779 = vadd.xlane.f32.xlu0 %v778_v47 }
 0x2cf   :  { %v4907_v18 = vpop.eup %4235 }
 0x2d0   :  { %v781_v60 = vsel %vm245_vm0, %v4907_v18, 0.0 }
 0x2d1   :  { %782 = vadd.xlane.f32.xlu1 %v781_v60  ;;  %v272_v21 = vpop.xlane.xlu2 %271 }
 0x2d2   :  { %4239 = vrcp.f32 %v272_v21  ;;  %v608_v63 = vpop.xlane.xlu1 %607 }
 0x2d3   :  { %4241 = vrcp.f32 %v608_v63 }
 0x2d4   :  { %v4911_v37 = vpop.eup %4237  ;;  %v441_v50 = vpop.xlane.xlu0 %440 }
 0x2d5   :  { %v787_v22 = vsel %vm245_vm0, %v4911_v37, 0.0 }
 0x2d6   :  { %788 = vadd.xlane.f32.xlu0 %v787_v22 }
 0x2d8   :  { %v4240_v26 = vpop.eup %4239 }
 0x2d9   :  { %v275_v54 = vpop.xlane.xlu2 %274  ;;  %v286_v31 = vmul.f32 %v4240_v26, %v4850_v19  ;;  %v4242_v33 = vpop.eup %4241 }
 0x2da   :  { %4243 = vrcp.f32 %v275_v54  ;;  %v622_v40 = vmul.f32 %v4242_v33, %v4852_v38  ;;  %v908_v54 = vperm.slane %v4723_v35, 4 }
 0x2db   :  { %3617 = vmatmul.msk.f32.vlgmr.msra.gmra.mxu0 %vm245_vm0, %v286_v31  ;;  %4245 = vrcp.f32 %v432_v25 }
 0x2dc   :  { %v611_v34 = vpop.xlane.xlu0 %610 }
 0x2dd   :  { %4247 = vrcp.f32 %v611_v34 }
 0x2df   :  { %4008 = vrot.lane.b32.xlu2 %v4693_v10, %s4625_s23 }
 0x2e0   :  { %v4244_v32 = vpop.eup %4243 }
 0x2e1   :  { %v278_v16 = vpop.xlane.xlu2 %277  ;;  %v287_v49 = vmul.f32 %v4244_v32, %v4864_v28  ;;  %v4246_v19 = vpop.eup %4245 }
 0x2e2   :  { %4249 = vrcp.f32 %v278_v16  ;;  %v446_v56 = vmul.f32 %v4246_v19, %v4816_v27 }
 0x2e3   :  { %3618 = vmatmul.msk.f32.vlgmr.msra.gmra.mxu2 %vm245_vm0, %v287_v49  ;;  %3633 = vmatmul.msk.f32.vlgmr.msrb.gmra.mxu0 %vm245_vm0, %v622_v40  ;;  %v4248_v24 = vpop.eup %4247  ;;  %4251 = vrcp.f32 %v435_v17 }
 0x2e4   :  { %v623_v38 = vmul.f32 %v4248_v24, %v4870_v30  ;;  %v617_v30 = vpop.xlane.xlu1 %616 }
 0x2e7   :  { %901 = vperm.xlu2 %4014, %v4683_v44  }
 0x2e8   :  { %v4250_v52 = vpop.eup %4249 }
 0x2e9   :  { %v281_v57 = vpop.xlane.xlu2 %280  ;;  %v288_v39 = vmul.f32 %v4250_v52, %v4878_v36  ;;  %v4252_v28 = vpop.eup %4251 }
 0x2ea   :  { %4253 = vrcp.f32 %v281_v57  ;;  %4003 = vrot.lane.b32.xlu1 %v4691_v9, %s4625_s23  ;;  %893 = vperm.xlu0 %4012, %v4679_v23   ;;  %v447_v25 = vmul.f32 %v4252_v28, %v4838_v5 }
 0x2eb   :  { %3619 = vmatmul.msk.f32.vlgmr.msra.gmra.mxu1 %vm245_vm0, %v288_v39  ;;  %3625 = vmatmul.msk.f32.vlgmr.msrb.gmra.mxu2 %vm245_vm0, %v446_v56  ;;  %4255 = vrcp.f32 %v438_v15 }
 0x2ec   :  { %3634 = vmatmul.msk.f32.gmra.mxu0 %vm245_vm0, %v623_v38 }
 0x2f0   :  { %v4254_v45 = vpop.eup %4253 }
 0x2f1   :  { %v614_v36 = vpop.xlane.xlu2 %613  ;;  %v289_v27 = vmul.f32 %v4254_v45, %v4884_v41  ;;  %v4256_v55 = vpop.eup %4255 }
 0x2f2   :  { %4257 = vrcp.f32 %v614_v36  ;;  %897 = vperm.xlu1 %4013, %v4687_v1   ;;  %v448_v59 = vmul.f32 %v4256_v55, %v4832_v62 }
 0x2f3   :  { %3620 = vmatmul.msk.f32.vlgmr.msra.gmra.mxu3 %vm245_vm0, %v289_v27  ;;  %3626 = vmatmul.msk.f32.gmra.mxu2 %vm245_vm0, %v447_v25  ;;  %4259 = vrcp.f32 %v441_v50 }
 0x2f4   :  { %4261 = vrcp.f32 %v617_v30 }
 0x2f8   :  { %v4258_v58 = vpop.eup %4257 }
 0x2f9   :  { %v624_v8 = vmul.f32 %v4258_v58, %v4888_v48  ;;  %v4260_v5 = vpop.eup %4259 }
 0x2fa   :  { %905 = vperm.xlu1 %4013, %v4703_v14   ;;  %v4262_v41 = vpop.eup %4261  ;;  %v449_v20 = vmul.f32 %v4260_v5, %v4856_v51  ;;  %v4626_v5 = vmov 5  }
 0x2fb   :  { %3627 = vmatmul.msk.f32.vlgmr.msrb.gmra.mxu3 %vm245_vm0, %v448_v59  ;;  %3635 = vmatmul.msk.f32.vlgmr.msrb.gmra.mxu1 %vm245_vm0, %v624_v8  ;;  %v625_v0 = vmul.f32 %v4262_v41, %v4866_v7  ;;  %v909_v7 = vperm.slane %v4739_v53, 4 }
 0x2fc   :  { %4026 = vset.pattern.permute.xlu0 %v4626_v5  ;;  %4025 = vset.pattern.permute.xlu2 %v4626_v5 }
 0x302   :  { %4027 = vset.pattern.permute.xlu1 %v4626_v5 }
 0x303   :  { %3628 = vmatmul.msk.f32.gmra.mxu3 %vm245_vm0, %v449_v20  ;;  %3636 = vmatmul.msk.f32.gmra.mxu1 %vm245_vm0, %v625_v0 }
 0x33a   :  { %v786_v42 = vpop.xlane.xlu2 %785 }
 0x33b   :  { %4263 = vrcp.f32 %v786_v42 }
 0x341   :  { %v780_v62 = vpop.xlane.xlu0 %779  ;;  %v4264_v12 = vpop.eup %4263 }
 0x342   :  { %v4009_v48 = vpop.permute.xlu2 %4008  ;;  %v796_v17 = vmul.f32 %v4264_v12, %v4896_v4 }
 0x343   :  { %v4011_v15 = vunpack.i.h.bf16 %v4009_v48  ;;  %v4010_v46 = vunpack.i.l.bf16 %v4009_v48 }
 0x344   :  { %v783_v4 = vpop.xlane.xlu1 %782 }
 0x345   :  { %859 = vmatpush.msra.mxu3 %v4011_v15 }
 0x347   :  { %860 = vmatpush.msra.mxu3 %v4010_v46 }
 0x348   :  { %3643 = vmatmul.msk.f32.vlgmr.msra.gmra.mxu3 %vm245_vm0, %v796_v17 }
 0x349   :  { %v789_v51 = vpop.xlane.xlu0 %788 }
 0x34a   :  { %4265 = vrcp.f32 %v789_v51  ;;  %v902_v47 = vpop.permute.xlu2 %901 }
 0x34b   :  { %v912_v60 = vadd.f32 %v909_v7, %v902_v47  ;;  %4267 = vrcp.f32 %v780_v62 }
 0x34c   :  { %4269 = vrcp.f32 %v783_v4 }
 0x34d   :  { %vm916_vm2 = vcmp.ge.f32.partialorder %v912_v60, 0.0  ;;  %v920_v21 = vmul.f32 0.2, %v912_v60 }
 0x34f   :  { %v924_v50 = vsel %vm916_vm2, %v912_v60, %v920_v21 }
 0x350   :  { %v4266_v63 = vpop.eup %4265  ;;  %v932_v22 = vsel %vm245_vm0, %v924_v50, -inf }
 0x351   :  { %933 = vmax.xlane.f32.xlu0 %v932_v22  ;;  %v797_v26 = vmul.f32 %v4266_v63, %v4911_v37  ;;  %v4268_v34 = vpop.eup %4267 }
 0x352   :  { %v794_v19 = vmul.f32 %v4268_v34, %v4903_v43  ;;  %v4270_v57 = vpop.eup %4269 }
 0x353   :  { %3644 = vmatmul.msk.f32.gmra.mxu3 %vm245_vm0, %v797_v26  ;;  %v795_v38 = vmul.f32 %v4270_v57, %v4907_v18 }
 0x35c   :  { %v4004_v31 = vpop.permute.xlu1 %4003  ;;  %v894_v33 = vpop.permute.xlu0 %893 }
 0x35d   :  { %v4006_v32 = vunpack.i.h.bf16 %v4004_v31  ;;  %v910_v16 = vadd.f32 %v908_v54, %v894_v33  ;;  %v4005_v49 = vunpack.i.l.bf16 %v4004_v31  ;;  %v1080_v33 = vperm.slane %v4723_v35, 5 }
 0x35f   :  { %824 = vmatpush.msra.mxu2 %v4006_v32  ;;  %vm914_vm3 = vcmp.ge.f32.partialorder %v910_v16, 0.0  ;;  %v918_v40 = vmul.f32 0.2, %v910_v16 }
 0x361   :  { %825 = vmatpush.msra.mxu2 %v4005_v49  ;;  %v922_v37 = vsel %vm914_vm3, %v910_v16, %v918_v40 }
 0x362   :  { %3641 = vmatmul.msk.f32.vlgmr.msra.gmra.mxu2 %vm245_vm0, %v794_v19  ;;  %v926_v24 = vsel %vm245_vm0, %v922_v37, -inf }
 0x363   :  { %927 = vmax.xlane.f32.xlu2 %v926_v24 }
 0x364   :  { %v898_v52 = vpop.permute.xlu1 %897 }
 0x365   :  { %v911_v39 = vadd.f32 %v908_v54, %v898_v52 }
 0x367   :  { %vm915_vm4 = vcmp.ge.f32.partialorder %v911_v39, 0.0  ;;  %v919_v56 = vmul.f32 0.2, %v911_v39 }
 0x369   :  { %v923_v28 = vsel %vm915_vm4, %v911_v39, %v919_v56 }
 0x36a   :  { %3642 = vmatmul.msk.f32.gmra.mxu2 %vm245_vm0, %v795_v38  ;;  %v929_v45 = vsel %vm245_vm0, %v923_v28, -inf }
 0x36b   :  { %930 = vmax.xlane.f32.xlu1 %v929_v45  ;;  %v1081_v45 = vperm.slane %v4739_v53, 5 }
 0x36c   :  { %v906_v43 = vpop.permute.xlu1 %905 }
 0x36d   :  { %v913_v36 = vadd.f32 %v909_v7, %v906_v43 }
 0x36f   :  { %vm917_vm5 = vcmp.ge.f32.partialorder %v913_v36, 0.0  ;;  %v921_v27 = vmul.f32 0.2, %v913_v36 }
 0x371   :  { %v925_v25 = vsel %vm917_vm5, %v913_v36, %v921_v27 }
 0x372   :  { %v935_v30 = vsel %vm245_vm0, %v925_v25, -inf }
 0x373   :  { %936 = vmax.xlane.f32.xlu2 %v935_v30 }
 0x3c4   :  { %v934_v55 = vpop.xlane.xlu0 %933 }
 0x3c5   :  { %v940_v58 = vsub.f32 %v924_v50, %v934_v55 }
 0x3c7   :  { %v946_v59 = vmul.f32 1.442695, %v940_v58 }
 0x3c9   :  { %4271 = vpow2.f32 %v946_v59 }
 0x3cf   :  { %v4272_v8 = vpop.eup %4271 }
 0x3d0   :  { %v956_v18 = vsel %vm245_vm0, %v4272_v8, 0.0 }
 0x3d1   :  { %957 = vadd.xlane.f32.xlu0 %v956_v18 }
 0x3d6   :  { %v928_v41 = vpop.xlane.xlu2 %927 }
 0x3d7   :  { %v938_v20 = vsub.f32 %v922_v37, %v928_v41 }
 0x3d9   :  { %v942_v0 = vmul.f32 1.442695, %v938_v20 }
 0x3db   :  { %4273 = vpow2.f32 %v942_v0 }
 0x3de   :  { %v931_v42 = vpop.xlane.xlu1 %930 }
 0x3df   :  { %v939_v62 = vsub.f32 %v923_v28, %v931_v42 }
 0x3e1   :  { %v4965_v48 = vpop.eup %4273  ;;  %v944_v12 = vmul.f32 1.442695, %v939_v62 }
 0x3e2   :  { %v950_v15 = vsel %vm245_vm0, %v4965_v48, 0.0 }
 0x3e3   :  { %4275 = vpow2.f32 %v944_v12  ;;  %951 = vadd.xlane.f32.xlu2 %v950_v15 }
 0x3e5   :  { %4021 = vrot.lane.b32.xlu0 %v4693_v10, %s4627_s24 }
 0x3e6   :  { %v937_v46 = vpop.xlane.xlu2 %936 }
 0x3e7   :  { %v941_v17 = vsub.f32 %v925_v25, %v937_v46 }
 0x3e9   :  { %v4971_v51 = vpop.eup %4275  ;;  %v948_v7 = vmul.f32 1.442695, %v941_v17 }
 0x3ea   :  { %v953_v47 = vsel %vm245_vm0, %v4971_v51, 0.0 }
 0x3eb   :  { %4277 = vpow2.f32 %v948_v7  ;;  %954 = vadd.xlane.f32.xlu1 %v953_v47 }
 0x3ed   :  { %1069 = vperm.xlu0 %4026, %v4687_v1  }
 0x3f1   :  { %v4278_v60 = vpop.eup %4277 }
 0x3f2   :  { %v959_v21 = vsel %vm245_vm0, %v4278_v60, 0.0 }
 0x3f3   :  { %960 = vadd.xlane.f32.xlu2 %v959_v21 }
 0x404   :  { %4016 = vrot.lane.b32.xlu1 %v4691_v9, %s4627_s24 }
 0x40b   :  { %1065 = vperm.xlu2 %4025, %v4679_v23  }
 0x40c   :  { %1073 = vperm.xlu1 %4027, %v4683_v44  }
 0x413   :  { %1077 = vperm.xlu2 %4025, %v4703_v14  }
 0x444   :  { %v958_v50 = vpop.xlane.xlu0 %957 }
 0x445   :  { %4279 = vrcp.f32 %v958_v50 }
 0x44b   :  { %v4280_v22 = vpop.eup %4279 }
 0x44c   :  { %v968_v54 = vmul.f32 %v4280_v22, %v4272_v8 }
 0x456   :  { %v952_v31 = vpop.xlane.xlu2 %951 }
 0x457   :  { %v4022_v63 = vpop.permute.xlu0 %4021 }
 0x458   :  { %v4024_v26 = vunpack.i.h.bf16 %v4022_v63  ;;  %v4023_v4 = vunpack.i.l.bf16 %v4022_v63 }
 0x45a   :  { %1031 = vmatpush.msra.mxu1 %v4024_v26  ;;  %v4629_v26 = vmov 6  }
 0x45b   :  { %4034 = vset.pattern.permute.xlu2 %v4629_v26 }
 0x45c   :  { %1032 = vmatpush.msra.mxu1 %v4023_v4 }
 0x45d   :  { %3651 = vmatmul.msk.f32.vlgmr.msra.gmra.mxu1 %vm245_vm0, %v968_v54 }
 0x45e   :  { %v955_v24 = vpop.xlane.xlu1 %954 }
 0x45f   :  { %v1070_v34 = vpop.permute.xlu0 %1069 }
 0x460   :  { %v1083_v32 = vadd.f32 %v1080_v33, %v1070_v34 }
 0x462   :  { %vm1087_vm6 = vcmp.ge.f32.partialorder %v1083_v32, 0.0  ;;  %v1091_v16 = vmul.f32 0.2, %v1083_v32 }
 0x464   :  { %v1095_v49 = vsel %vm1087_vm6, %v1083_v32, %v1091_v16 }
 0x465   :  { %v1101_v40 = vsel %vm245_vm0, %v1095_v49, -inf }
 0x466   :  { %1102 = vmax.xlane.f32.xlu0 %v1101_v40  ;;  %v961_v19 = vpop.xlane.xlu2 %960 }
 0x467   :  { %4281 = vrcp.f32 %v961_v19 }
 0x468   :  { %4283 = vrcp.f32 %v952_v31 }
 0x469   :  { %4285 = vrcp.f32 %v955_v24 }
 0x46d   :  { %v4282_v37 = vpop.eup %4281 }
 0x46e   :  { %v1066_v52 = vpop.permute.xlu2 %1065  ;;  %v969_v57 = vmul.f32 %v4282_v37, %v4278_v60  ;;  %v4284_v27 = vpop.eup %4283  ;;  %v4628_v60 = vmov 7  }
 0x46f   :  { %v1082_v39 = vadd.f32 %v1080_v33, %v1066_v52  ;;  %v966_v59 = vmul.f32 %v4284_v27, %v4965_v48  ;;  %v4286_v20 = vpop.eup %4285  ;;  %4035 = vset.pattern.permute.xlu0 %v4628_v60  ;;  %4033 = vset.pattern.permute.xlu1 %v4628_v60 }
 0x470   :  { %3652 = vmatmul.msk.f32.gmra.mxu1 %vm245_vm0, %v969_v57  ;;  %v967_v62 = vmul.f32 %v4286_v20, %v4971_v51 }
 0x471   :  { %vm1086_vm7 = vcmp.ge.f32.partialorder %v1082_v39, 0.0  ;;  %v1090_v56 = vmul.f32 0.2, %v1082_v39 }
 0x473   :  { %v1094_v38 = vsel %vm1086_vm7, %v1082_v39, %v1090_v56 }
 0x474   :  { %v1098_v28 = vsel %vm245_vm0, %v1094_v38, -inf }
 0x475   :  { %1099 = vmax.xlane.f32.xlu1 %v1098_v28  ;;  %v1252_v28 = vperm.slane %v4723_v35, 6 }
 0x476   :  { %v4017_v43 = vpop.permute.xlu1 %4016  ;;  %v1078_v36 = vpop.permute.xlu2 %1077 }
 0x477   :  { %v4019_v25 = vunpack.i.h.bf16 %v4017_v43  ;;  %v1085_v30 = vadd.f32 %v1081_v45, %v1078_v36  ;;  %v4018_v55 = vunpack.i.l.bf16 %v4017_v43 }
 0x479   :  { %996 = vmatpush.msra.mxu0 %v4019_v25  ;;  %vm1089_vm8 = vcmp.ge.f32.partialorder %v1085_v30, 0.0  ;;  %v1093_v58 = vmul.f32 0.2, %v1085_v30 }
 0x47b   :  { %997 = vmatpush.msra.mxu0 %v4018_v55  ;;  %v1097_v8 = vsel %vm1089_vm8, %v1085_v30, %v1093_v58 }
 0x47c   :  { %3649 = vmatmul.msk.f32.vlgmr.msra.gmra.mxu0 %vm245_vm0, %v966_v59  ;;  %v1107_v18 = vsel %vm245_vm0, %v1097_v8, -inf }
 0x47d   :  { %1108 = vmax.xlane.f32.xlu1 %v1107_v18 }
 0x47e   :  { %v1074_v41 = vpop.permute.xlu1 %1073 }
 0x47f   :  { %v1084_v0 = vadd.f32 %v1081_v45, %v1074_v41 }
 0x481   :  { %vm1088_vm9 = vcmp.ge.f32.partialorder %v1084_v0, 0.0  ;;  %v1092_v42 = vmul.f32 0.2, %v1084_v0 }
 0x483   :  { %v1096_v12 = vsel %vm1088_vm9, %v1084_v0, %v1092_v42  ;;  %v1253_v42 = vperm.slane %v4739_v53, 6 }
 0x484   :  { %3650 = vmatmul.msk.f32.gmra.mxu0 %vm245_vm0, %v967_v62  ;;  %v1104_v15 = vsel %vm245_vm0, %v1096_v12, -inf }
 0x485   :  { %1105 = vmax.xlane.f32.xlu2 %v1104_v15 }
 0x4d9   :  { %v1103_v48 = vpop.xlane.xlu0 %1102 }
 0x4da   :  { %v1111_v46 = vsub.f32 %v1095_v49, %v1103_v48 }
 0x4dc   :  { %v1116_v17 = vmul.f32 1.442695, %v1111_v46 }
 0x4de   :  { %4287 = vpow2.f32 %v1116_v17 }
 0x4e4   :  { %v4994_v7 = vpop.eup %4287 }
 0x4e5   :  { %v1125_v47 = vsel %vm245_vm0, %v4994_v7, 0.0 }
 0x4e6   :  { %1126 = vadd.xlane.f32.xlu0 %v1125_v47 }
 0x4e8   :  { %v1100_v51 = vpop.xlane.xlu1 %1099 }
 0x4e9   :  { %v1110_v21 = vsub.f32 %v1094_v38, %v1100_v51 }
 0x4eb   :  { %v1114_v50 = vmul.f32 1.442695, %v1110_v21 }
 0x4ed   :  { %4289 = vpow2.f32 %v1114_v50 }
 0x4f0   :  { %v1109_v63 = vpop.xlane.xlu1 %1108 }
 0x4f1   :  { %v1113_v22 = vsub.f32 %v1097_v8, %v1109_v63  ;;  %v1425_v8 = vperm.slane %v4739_v53, 7 }
 0x4f3   :  { %v4290_v4 = vpop.eup %4289  ;;  %v1120_v54 = vmul.f32 1.442695, %v1113_v22 }
 0x4f4   :  { %v1122_v31 = vsel %vm245_vm0, %v4290_v4, 0.0 }
 0x4f5   :  { %4291 = vpow2.f32 %v1120_v54  ;;  %1123 = vadd.xlane.f32.xlu2 %v1122_v31 }
 0x4f8   :  { %v1106_v33 = vpop.xlane.xlu2 %1105 }
 0x4f9   :  { %v1112_v34 = vsub.f32 %v1096_v12, %v1106_v33 }
 0x4fa   :  { %4029 = vrot.lane.b32.xlu0 %v4691_v9, %s4630_s25 }
 0x4fb   :  { %v5004_v32 = vpop.eup %4291  ;;  %v1118_v16 = vmul.f32 1.442695, %v1112_v34 }
 0x4fc   :  { %v1131_v49 = vsel %vm245_vm0, %v5004_v32, 0.0 }
 0x4fd   :  { %4293 = vpow2.f32 %v1118_v16  ;;  %1132 = vadd.xlane.f32.xlu2 %v1131_v49 }
 0x502   :  { %1413 = vperm.xlu0 %4035, %v4687_v1  }
 0x503   :  { %v5009_v40 = vpop.eup %4293 }
 0x504   :  { %v1128_v19 = vsel %vm245_vm0, %v5009_v40, 0.0 }
 0x505   :  { %1129 = vadd.xlane.f32.xlu1 %v1128_v19 }
 0x50a   :  { %1421 = vperm.xlu0 %4035, %v4703_v14  }
 0x512   :  { %4150 = vset.pattern.permute.xlu0 %v4624_v61 }
 0x515   :  { %1237 = vperm.xlu2 %4034, %v4679_v23  }
 0x51d   :  { %4037 = vset.pattern.permute.xlu2 %v4628_v60 }
 0x51e   :  { %1417 = vperm.xlu2 %4037, %v4683_v44   ;;  %1409 = vperm.xlu1 %4033, %v4679_v23  }
 0x526   :  { %4038 = vset.pattern.permute.xlu2 %v4629_v26  ;;  %4036 = vset.pattern.permute.xlu1 %v4629_v26 }
 0x527   :  { %1249 = vperm.xlu2 %4038, %v4703_v14   ;;  %1241 = vperm.xlu1 %4036, %v4687_v1  }
 0x52f   :  { %1245 = vperm.xlu1 %4036, %v4683_v44   ;;  %4146 = vset.pattern.permute.xlu2 %v4619_v6  ;;  %v1424_v44 = vperm.slane %v4723_v35, 7 }
 0x537   :  { %4144 = vset.pattern.permute.xlu1 %v4617_v2 }
 0x559   :  { %v1127_v9 = vpop.xlane.xlu0 %1126 }
 0x568   :  { %v1124_v37 = vpop.xlane.xlu2 %1123 }
 0x569   :  { %4295 = vrcp.f32 %v1124_v37 }
 0x56a   :  { %4297 = vrcp.f32 %v1127_v9 }
 0x56c   :  { %v4030_v24 = vpop.permute.xlu0 %4029 }
 0x56d   :  { %v4032_v52 = vunpack.i.h.bf16 %v4030_v24  ;;  %v4031_v57 = vunpack.i.l.bf16 %v4030_v24 }
 0x56f   :  { %v4296_v23 = vpop.eup %4295  ;;  %1168 = vmatpush.msrb.mxu2 %v4032_v52 }
 0x570   :  { %v1138_v39 = vmul.f32 %v4296_v23, %v4290_v4  ;;  %v5026_v56 = vpop.xlane.xlu2 %1132  ;;  %v4298_v14 = vpop.eup %4297 }
 0x571   :  { %1169 = vmatpush.msrb.mxu2 %v4031_v57  ;;  %v1139_v36 = vmul.f32 %v4298_v14, %v4994_v7 }
 0x572   :  { %3657 = vmatmul.msk.f32.vlgmr.msrb.gmra.mxu2 %vm245_vm0, %v1138_v39 }
 0x574   :  { %v1414_v1 = vpop.permute.xlu0 %1413 }
 0x575   :  { %v1427_v38 = vadd.f32 %v1424_v44, %v1414_v1 }
 0x577   :  { %vm1431_vm10 = vcmp.ge.f32.partialorder %v1427_v38, 0.0  ;;  %v1435_v45 = vmul.f32 0.2, %v1427_v38 }
 0x578   :  { %v1238_v43 = vpop.permute.xlu2 %1237  ;;  %v5041_v62 = vpop.xlane.xlu1 %1129 }
 0x579   :  { %v1254_v27 = vadd.f32 %v1252_v28, %v1238_v43  ;;  %v1439_v25 = vsel %vm1431_vm10, %v1427_v38, %v1435_v45 }
 0x57a   :  { %v1445_v30 = vsel %vm245_vm0, %v1439_v25, -inf  ;;  %3658 = vmatmul.msk.f32.gmra.mxu2 %vm245_vm0, %v1139_v36 }
 0x57b   :  { %1446 = vmax.xlane.f32.xlu2 %v1445_v30  ;;  %vm1258_vm11 = vcmp.ge.f32.partialorder %v1254_v27, 0.0  ;;  %v1262_v55 = vmul.f32 0.2, %v1254_v27 }
 0x57c   :  { %v1422_v53 = vpop.permute.xlu0 %1421 }
 0x57d   :  { %v1266_v58 = vsel %vm1258_vm11, %v1254_v27, %v1262_v55  ;;  %v1429_v4 = vadd.f32 %v1425_v8, %v1422_v53  ;;  %v5067_v27 = vpop.f32.mrf.mxu2 }
 0x57e   :  { %v1270_v59 = vsel %vm245_vm0, %v1266_v58, -inf }
 0x57f   :  { %1271 = vmax.xlane.f32.xlu0 %v1270_v59  ;;  %v1437_v34 = vmul.f32 0.2, %v1429_v4  ;;  %vm1433_vm1 = vcmp.ge.f32.partialorder %v1429_v4, 0.0  ;;  %v5071_v59 = vpop.f32.mrf.mxu0 }
 0x580   :  { %v1418_v35 = vpop.permute.xlu2 %1417 }
 0x581   :  { %v1428_v18 = vadd.f32 %v1425_v8, %v1418_v35  ;;  %v5049_v19 = vsel %vm1433_vm1, %v1429_v4, %v1437_v34  ;;  %v5101_v34 = vpop.f32.mrf.mxu1 }
 0x582   :  { %v1451_v24 = vsel %vm245_vm0, %v5049_v19, -inf }
 0x583   :  { %vm1432_vm12 = vcmp.ge.f32.partialorder %v1428_v18, 0.0  ;;  %v1436_v41 = vmul.f32 0.2, %v1428_v18 }
 0x585   :  { %v5036_v20 = vsel %vm1432_vm12, %v1428_v18, %v1436_v41  ;;  %v5075_v18 = vpop.f32.mrf.mxu2 }
 0x586   :  { %v1448_v0 = vsel %vm245_vm0, %v5036_v20, -inf  ;;  %vm524_vm4 = vcmp.gt.f32.partialorder %v5075_v18, 0.0 }
 0x587   :  { %1449 = vmax.xlane.f32.xlu0 %v1448_v0 }
 0x588   :  { %v1250_v12 = vpop.permute.xlu2 %1249 }
 0x589   :  { %v1257_v15 = vadd.f32 %v1253_v42, %v1250_v12 }
 0x58b   :  { %vm1261_vm13 = vcmp.ge.f32.partialorder %v1257_v15, 0.0  ;;  %v1265_v48 = vmul.f32 0.2, %v1257_v15 }
 0x58d   :  { %v5043_v46 = vsel %vm1261_vm13, %v1257_v15, %v1265_v48  ;;  %v484_v15 = vpop.f32.mrf.mxu2 }
 0x58e   :  { %v1279_v17 = vsel %vm245_vm0, %v5043_v46, -inf  ;;  %vm525_vm3 = vcmp.gt.f32.partialorder %v484_v15, 0.0 }
 0x58f   :  { %1280 = vmax.xlane.f32.xlu0 %v1279_v17 }
 0x590   :  { %v1410_v7 = vpop.permute.xlu1 %1409 }
 0x591   :  { %v1426_v47 = vadd.f32 %v1424_v44, %v1410_v7 }
 0x593   :  { %vm1430_vm14 = vcmp.ge.f32.partialorder %v1426_v47, 0.0  ;;  %v1434_v51 = vmul.f32 0.2, %v1426_v47 }
 0x595   :  { %v1438_v21 = vsel %vm1430_vm14, %v1426_v47, %v1434_v51  ;;  %v529_v47 = vmin.f32 %v484_v15, 0.0 }
 0x596   :  { %v1442_v50 = vsel %vm245_vm0, %v1438_v21, -inf }
 0x597   :  { %1443 = vmax.xlane.f32.xlu1 %v1442_v50  ;;  %v528_v50 = vmin.f32 %v5075_v18, 0.0 }
 0x599   :  { %v1242_v63 = vpop.permute.xlu1 %1241 }
 0x59a   :  { %v1255_v22 = vadd.f32 %v1252_v28, %v1242_v63  ;;  %v5091_v63 = vpop.f32.mrf.mxu2 }
 0x59b   :  { %vm868_vm8 = vcmp.gt.f32.partialorder %v5091_v63, 0.0 }
 0x59c   :  { %vm1259_vm15 = vcmp.ge.f32.partialorder %v1255_v22, 0.0  ;;  %v1263_v54 = vmul.f32 0.2, %v1255_v22 }
 0x59e   :  { %v1267_v31 = vsel %vm1259_vm15, %v1255_v22, %v1263_v54  ;;  %v534_v22 = vmul.f32 1.442695, %v529_v47  ;;  %v532_v54 = vmul.f32 1.442695, %v528_v50 }
 0x59f   :  { %v1273_v33 = vsel %vm245_vm0, %v1267_v31, -inf }
 0x5a0   :  { %1274 = vmax.xlane.f32.xlu1 %v1273_v33 }
 0x5a1   :  { %v1246_v16 = vpop.permute.xlu1 %1245 }
 0x5a2   :  { %v1256_v49 = vadd.f32 %v1253_v42, %v1246_v16  ;;  %v5082_v42 = vpop.f32.mrf.mxu0 }
 0x5a3   :  { %v700_v33 = vmin.f32 %v5082_v42, 0.0  ;;  %vm696_vm6 = vcmp.gt.f32.partialorder %v5082_v42, 0.0 }
 0x5a4   :  { %vm1260_vm2 = vcmp.ge.f32.partialorder %v1256_v49, 0.0  ;;  %v1264_v9 = vmul.f32 0.2, %v1256_v49 }
 0x5a6   :  { %v5051_v37 = vsel %vm1260_vm2, %v1256_v49, %v1264_v9  ;;  %v830_v9 = vpop.f32.mrf.mxu2 }
 0x5a7   :  { %v1276_v52 = vsel %vm245_vm0, %v5051_v37, -inf  ;;  %vm869_vm7 = vcmp.gt.f32.partialorder %v830_v9, 0.0 }
 0x5a8   :  { %1452 = vmax.xlane.f32.xlu1 %v1451_v24  ;;  %1277 = vmax.xlane.f32.xlu2 %v1276_v52  ;;  %v704_v52 = vmul.f32 1.442695, %v700_v33 }
 0x5aa   :  { %v658_v53 = vpop.f32.mrf.mxu0 }
 0x5ab   :  { %vm697_vm5 = vcmp.gt.f32.partialorder %v658_v53, 0.0 }
 0x5c0   :  { %4040 = vrot.lane.b32.xlu2 %v4693_v10, %s4630_s25 }
 0x5ee   :  { %v1447_v23 = vpop.xlane.xlu2 %1446 }
 0x5ef   :  { %v1455_v44 = vsub.f32 %v1439_v25, %v1447_v23 }
 0x5f1   :  { %v1460_v14 = vmul.f32 1.442695, %v1455_v44 }
 0x5f2   :  { %v1272_v57 = vpop.xlane.xlu0 %1271 }
 0x5f3   :  { %v1282_v39 = vsub.f32 %v1266_v58, %v1272_v57  ;;  %v873_v57 = vmin.f32 %v830_v9, 0.0 }
 0x5f5   :  { %v1286_v1 = vmul.f32 1.442695, %v1282_v39 }
 0x5f7   :  { %4299 = vpow2.f32 %v1286_v1 }
 0x5f8   :  { %4301 = vpow2.f32 %v1460_v14  ;;  %v5109_v14 = vpop.f32.mrf.mxu1 }
 0x5f9   :  { %vm698_vm12 = vcmp.gt.f32.partialorder %v5109_v14, 0.0 }
 0x5fd   :  { %v5059_v38 = vpop.eup %4299 }
 0x5fe   :  { %v1294_v28 = vsel %vm245_vm0, %v5059_v38, 0.0  ;;  %v5063_v45 = vpop.eup %4301 }
 0x5ff   :  { %1295 = vadd.xlane.f32.xlu0 %v1294_v28  ;;  %v1469_v43 = vsel %vm245_vm0, %v5063_v45, 0.0  ;;  %v878_v28 = vmul.f32 1.442695, %v873_v57 }
 0x607   :  { %1470 = vadd.xlane.f32.xlu0 %v1469_v43 }
 0x60a   :  { %v1444_v10 = vpop.xlane.xlu1 %1443 }
 0x60b   :  { %v1454_v36 = vsub.f32 %v1438_v21, %v1444_v10 }
 0x60d   :  { %v1458_v25 = vmul.f32 1.442695, %v1454_v36 }
 0x60f   :  { %4303 = vpow2.f32 %v1458_v25 }
 0x613   :  { %v1275_v30 = vpop.xlane.xlu1 %1274 }
 0x614   :  { %v1283_v55 = vsub.f32 %v1267_v31, %v1275_v30  ;;  %v701_v31 = vmin.f32 %v658_v53, 0.0 }
 0x615   :  { %v5069_v58 = vpop.eup %4303 }
 0x616   :  { %v1288_v8 = vmul.f32 1.442695, %v1283_v55  ;;  %v1466_v35 = vsel %vm245_vm0, %v5069_v58, 0.0  ;;  %v706_v16 = vmul.f32 1.442695, %v701_v31 }
 0x617   :  { %1467 = vadd.xlane.f32.xlu1 %v1466_v35 }
 0x618   :  { %4305 = vpow2.f32 %v1288_v8 }
 0x619   :  { %4307 = vrcp.f32 %v5041_v62  ;;  %v5089_v62 = vpop.f32.mrf.mxu3 }
 0x61a   :  { %4309 = vrcp.f32 %v5026_v56 }
 0x61b   :  { %4050 = vrot.lane.b32.xlu0 %v4697_v11, %s4631_s26  ;;  %v1278_v41 = vpop.xlane.xlu2 %1277  ;;  %4311 = vpow2.f32 %v534_v22 }
 0x61c   :  { %4313 = vpow2.f32 %v532_v54  ;;  %v1284_v24 = vsub.f32 %v5051_v37, %v1278_v41 }
 0x61d   :  { %4315 = vpow2.f32 %v706_v16  ;;  %v702_v16 = vmin.f32 %v5109_v14, 0.0 }
 0x61e   :  { %v5079_v0 = vpop.eup %4305  ;;  %v1290_v44 = vmul.f32 1.442695, %v1284_v24  ;;  %4317 = vpow2.f32 %v704_v52 }
 0x61f   :  { %v1297_v12 = vsel %vm245_vm0, %v5079_v0, 0.0  ;;  %v4308_v17 = vpop.eup %4307 }
 0x620   :  { %1298 = vadd.xlane.f32.xlu2 %v1297_v12  ;;  %v1140_v21 = vmul.f32 %v4308_v17, %v5009_v40  ;;  %v4310_v4 = vpop.eup %4309  ;;  %v5098_v40 = vpop.f32.mrf.mxu0  ;;  %4319 = vpow2.f32 %v1290_v44  ;;  %v708_v44 = vmul.f32 1.442695, %v702_v16 }
 0x621   :  { %v1141_v56 = vmul.f32 %v4310_v4, %v5004_v32  ;;  %v5103_v49 = vpop.f32.mrf.mxu3  ;;  %v4312_v32 = vpop.eup %4311  ;;  %4321 = vpow2.f32 %v878_v28  ;;  %v1044_v12 = vmin.f32 %v5098_v40, 0.0  ;;  %vm1040_vm10 = vcmp.gt.f32.partialorder %v5098_v40, 0.0 }
 0x622   :  { %v4314_v23 = vpop.eup %4313  ;;  %v3630_v39 = vadd.f32 -1.0, %v4312_v32  ;;  %v1450_v4 = vpop.xlane.xlu0 %1449 }
 0x623   :  { %v4041_v48 = vpop.permute.xlu2 %4040  ;;  %v3629_v1 = vadd.f32 -1.0, %v4314_v23  ;;  %v4316_v10 = vpop.eup %4315  ;;  %v1456_v33 = vsub.f32 %v5036_v20, %v1450_v4 }
 0x624   :  { %v4043_v7 = vunpack.i.h.bf16 %v4041_v48  ;;  %v4042_v51 = vunpack.i.l.bf16 %v4041_v48  ;;  %v545_v43 = vsel %vm525_vm3, %v484_v15, %v3630_v39  ;;  %v4318_v55 = vpop.eup %4317  ;;  %v3638_v41 = vadd.f32 -1.0, %v4316_v10  ;;  %v1453_v20 = vpop.xlane.xlu1 %1452 }
 0x625   :  { %v544_v30 = vsel %vm524_vm4, %v5075_v18, %v3629_v1  ;;  %v3637_v48 = vadd.f32 -1.0, %v4318_v55  ;;  %v5123_v18 = vpop.f32.mrf.mxu1  ;;  %v1462_v39 = vmul.f32 1.442695, %v1456_v33  ;;  %vm526_vm3 = vcmp.gt.f32.partialorder %v5103_v49, 0.0 }
 0x626   :  { %1203 = vmatpush.msrb.mxu3 %v4043_v7  ;;  %v4064_v35 = vpack.i.bf16 %v545_v43, %v544_v30  ;;  %v5120_v15 = vpop.eup %4319  ;;  %v717_v7 = vsel %vm697_vm5, %v658_v53, %v3638_v41  ;;  %v703_v53 = vmin.f32 %v5123_v18, 0.0  ;;  %vm699_vm11 = vcmp.gt.f32.partialorder %v5123_v18, 0.0 }
 0x627   :  { %v4322_v47 = vpop.eup %4321  ;;  %v1300_v50 = vsel %vm245_vm0, %v5120_v15, 0.0  ;;  %v716_v22 = vsel %vm696_vm6, %v5082_v42, %v3637_v48 }
 0x628   :  { %1204 = vmatpush.msrb.mxu3 %v4042_v51  ;;  %v5111_v37 = vpop.f32.mrf.mxu0  ;;  %v4074_v31 = vpack.i.bf16 %v717_v7, %v716_v22  ;;  %v710_v32 = vmul.f32 1.442695, %v703_v53 }
 0x629   :  { %3659 = vmatmul.msk.f32.vlgmr.msrb.gmra.mxu3 %vm245_vm0, %v1140_v21  ;;  %v5114_v36 = vpop.f32.mrf.mxu3  ;;  %v1045_v8 = vmin.f32 %v5111_v37, 0.0  ;;  %v1048_v21 = vmul.f32 1.442695, %v1044_v12  ;;  %vm1041_vm9 = vcmp.gt.f32.partialorder %v5111_v37, 0.0 }
 0x62a   :  { %vm527_vm2 = vcmp.gt.f32.partialorder %v5114_v36, 0.0 }
 0x62b   :  { %v1050_v17 = vmul.f32 1.442695, %v1045_v8 }
 0x62d   :  { %v5137_v57 = vpop.f32.mrf.mxu1 }
 0x62e   :  { %vm1042_vm1 = vcmp.gt.f32.partialorder %v5137_v57, 0.0 }
 0x630   :  { %4045 = vrot.lane.b32.xlu1 %v4697_v11, %s4632_s27  ;;  %v872_v11 = vmin.f32 %v5091_v63, 0.0 }
 0x631   :  { %3660 = vmatmul.msk.f32.gmra.mxu3 %vm245_vm0, %v1141_v56  ;;  %v5125_v51 = vpop.f32.mrf.mxu3  ;;  %v3646_v56 = vadd.f32 -1.0, %v4322_v47 }
 0x632   :  { %v876_v25 = vmul.f32 1.442695, %v872_v11  ;;  %vm870_vm14 = vcmp.gt.f32.partialorder %v5125_v51, 0.0 }
 0x633   :  { %v889_v52 = vsel %vm869_vm7, %v830_v9, %v3646_v56  ;;  %v1457_v9 = vsub.f32 %v5049_v19, %v1453_v20  ;;  %v1281_v19 = vpop.xlane.xlu0 %1280 }
 0x634   :  { %4323 = vpow2.f32 %v876_v25  ;;  %v874_v25 = vmin.f32 %v5125_v51, 0.0  ;;  %v1285_v22 = vsub.f32 %v5043_v46, %v1281_v19 }
 0x635   :  { %4325 = vpow2.f32 %v1050_v17  ;;  %v1037_v8 = vpop.f32.mrf.mxu1 }
 0x636   :  { %4327 = vpow2.f32 %v1048_v21  ;;  %v880_v12 = vmul.f32 1.442695, %v874_v25  ;;  %v1047_v21 = vmin.f32 %v1037_v8, 0.0  ;;  %v1292_v46 = vmul.f32 1.442695, %v1285_v22 }
 0x637   :  { %4329 = vpow2.f32 %v710_v32  ;;  %vm1043_vm15 = vcmp.gt.f32.partialorder %v1037_v8, 0.0 }
 0x638   :  { %4055 = vrot.lane.b32.xlu2 %v4701_v13, %s4632_s27  ;;  %4331 = vpow2.f32 %v1462_v39  ;;  %v1171_v39 = vpop.f32.mrf.mxu2 }
 0x639   :  { %v5134_v23 = vpop.f32.mrf.mxu3  ;;  %4333 = vpow2.f32 %v708_v44  ;;  %vm1212_vm5 = vcmp.gt.f32.partialorder %v1171_v39, 0.0 }
 0x63a   :  { %v4324_v54 = vpop.eup %4323  ;;  %v875_v43 = vmin.f32 %v5134_v23, 0.0  ;;  %vm871_vm13 = vcmp.gt.f32.partialorder %v5134_v23, 0.0 }
 0x63b   :  { %v3645_v24 = vadd.f32 -1.0, %v4324_v54  ;;  %v4326_v42 = vpop.eup %4325  ;;  %v1054_v54 = vmul.f32 1.442695, %v1047_v21 }
 0x63c   :  { %v4328_v1 = vpop.eup %4327  ;;  %v3654_v10 = vadd.f32 -1.0, %v4326_v42  ;;  %v882_v55 = vmul.f32 1.442695, %v875_v43  ;;  %v531_v43 = vmin.f32 %v5114_v36, 0.0 }
 0x63d   :  { %v888_v11 = vsel %vm868_vm8, %v5091_v63, %v3645_v24  ;;  %v3653_v30 = vadd.f32 -1.0, %v4328_v1  ;;  %v4330_v41 = vpop.eup %4329  ;;  %vm350_vm8 = vcmp.gt.f32.partialorder %v5101_v34, 0.0 }
 0x63e   :  { %v4084_v28 = vpack.i.bf16 %v889_v52, %v888_v11  ;;  %v1061_v63 = vsel %vm1041_vm9, %v5111_v37, %v3654_v10  ;;  %v5148_v17 = vpop.eup %4331  ;;  %4335 = vpow2.f32 %v882_v55  ;;  %v1046_v37 = vmin.f32 %v5137_v57, 0.0 }
 0x63f   :  { %v1060_v48 = vsel %vm1040_vm10, %v5098_v40, %v3653_v30  ;;  %v4334_v47 = vpop.eup %4333  ;;  %v1472_v40 = vsel %vm245_vm0, %v5148_v17, 0.0  ;;  %v538_v30 = vmul.f32 1.442695, %v531_v43  ;;  %vm351_vm9 = vcmp.gt.f32.partialorder %v5089_v62, 0.0 }
 0x640   :  { %4065 = vrot.lane.b32.xlu2 %v4064_v35, %s4632_s27  ;;  %v1464_v35 = vmul.f32 1.442695, %v1457_v9  ;;  %v4094_v7 = vpack.i.bf16 %v1061_v63, %v1060_v48  ;;  %v3639_v4 = vadd.f32 -1.0, %v4334_v47  ;;  %v1052_v56 = vmul.f32 1.442695, %v1046_v37  ;;  %v1174_v55 = vpop.f32.mrf.mxu2 }
 0x641   :  { %vm1213_vm4 = vcmp.gt.f32.partialorder %v1174_v55, 0.0  ;;  %vm1696_vm10 = vcmask 261120  }
 0x642   :  { %4337 = vpow2.f32 %v1464_v35  ;;  %v718_v16 = vsel %vm698_vm12, %v5109_v14, %v3639_v4 }
 0x643   :  { %4339 = vpow2.f32 %v880_v12  ;;  %v1216_v12 = vmin.f32 %v1171_v39, 0.0 }
 0x644   :  { %v4336_v53 = vpop.eup %4335  ;;  %4341 = vpow2.f32 %v1054_v54 }
 0x645   :  { %1301 = vadd.xlane.f32.xlu0 %v1300_v50  ;;  %v3640_v50 = vadd.f32 -1.0, %v4330_v41  ;;  %v3648_v32 = vadd.f32 -1.0, %v4336_v53  ;;  %4343 = vpow2.f32 %v1292_v46  ;;  %v1217_v41 = vmin.f32 %v1174_v55, 0.0 }
 0x646   :  { %4345 = vpow2.f32 %v1052_v56 }
 0x647   :  { %v891_v42 = vsel %vm871_vm13, %v5134_v23, %v3648_v32  ;;  %v530_v23 = vmin.f32 %v5103_v49, 0.0  ;;  %4347 = vpow2.f32 %v538_v30  ;;  %v1222_v48 = vmul.f32 1.442695, %v1217_v41 }
 0x648   :  { %4075 = vrot.lane.b32.xlu2 %v4074_v31, %s4631_s26  ;;  %v719_v31 = vsel %vm699_vm11, %v5123_v18, %v3640_v50  ;;  %v5160_v33 = vpop.eup %4337 }
 0x649   :  { %v4079_v24 = vpack.i.bf16 %v719_v31, %v718_v16  ;;  %v1475_v18 = vsel %vm245_vm0, %v5160_v33, 0.0  ;;  %v536_v63 = vmul.f32 1.442695, %v530_v23 }
 0x64b   :  { %4349 = vpow2.f32 %v536_v63 }
 0x64c   :  { %4351 = vpow2.f32 %v1222_v48 }
 0x650   :  { %4085 = vrot.lane.b32.xlu2 %v4084_v28, %s4630_s25 }
 0x658   :  { %4095 = vrot.lane.b32.xlu2 %v4094_v7, %s4627_s24  ;;  %v1220_v7 = vmul.f32 1.442695, %v1216_v12 }
 0x659   :  { %4060 = vrot.lane.b32.xlu0 %v4701_v13, %s4631_s26  ;;  %v4340_v13 = vpop.eup %4339 }
 0x65a   :  { %1473 = vadd.xlane.f32.xlu1 %v1472_v40  ;;  %v3647_v52 = vadd.f32 -1.0, %v4340_v13  ;;  %v4342_v44 = vpop.eup %4341  ;;  %4353 = vpow2.f32 %v1220_v7 }
 0x65b   :  { %v5169_v14 = vpop.eup %4343  ;;  %v3656_v28 = vadd.f32 -1.0, %v4342_v44 }
 0x65c   :  { %v890_v11 = vsel %vm870_vm14, %v5125_v51, %v3647_v52  ;;  %v4346_v20 = vpop.eup %4345  ;;  %v1303_v10 = vsel %vm245_vm0, %v5169_v14, 0.0 }
 0x65d   :  { %v4089_v1 = vpack.i.bf16 %v891_v42, %v890_v11  ;;  %v3655_v9 = vadd.f32 -1.0, %v4346_v20  ;;  %v1063_v25 = vsel %vm1043_vm15, %v1037_v8, %v3656_v28  ;;  %v4348_v19 = vpop.eup %4347 }
 0x65e   :  { %v4350_v47 = vpop.eup %4349  ;;  %v3632_v8 = vadd.f32 -1.0, %v4348_v19 }
 0x65f   :  { %v1062_v51 = vsel %vm1042_vm1, %v5137_v57, %v3655_v9  ;;  %v3631_v50 = vadd.f32 -1.0, %v4350_v47  ;;  %v4352_v22 = vpop.eup %4351 }
 0x660   :  { %v4099_v35 = vpack.i.bf16 %v1063_v25, %v1062_v51  ;;  %v547_v57 = vsel %vm527_vm2, %v5114_v36, %v3632_v8  ;;  %v4354_v40 = vpop.eup %4353  ;;  %v3662_v54 = vadd.f32 -1.0, %v4352_v22 }
 0x661   :  { %4080 = vrot.lane.b32.xlu0 %v4079_v24, %s4631_s26  ;;  %v546_v37 = vsel %vm526_vm3, %v5103_v49, %v3631_v50  ;;  %v3661_v31 = vadd.f32 -1.0, %v4354_v40 }
 0x662   :  { %1476 = vadd.xlane.f32.xlu1 %v1475_v18  ;;  %v4069_v4 = vpack.i.bf16 %v547_v57, %v546_v37  ;;  %v1233_v53 = vsel %vm1213_vm4, %v1174_v55, %v3662_v54  ;;  %vm348_vm4 = vcmp.gt.f32.partialorder %v5071_v59, 0.0 }
 0x663   :  { %v1232_v56 = vsel %vm1212_vm5, %v1171_v39, %v3661_v31  ;;  %vm349_vm5 = vcmp.gt.f32.partialorder %v5067_v27, 0.0 }
 0x664   :  { %v4104_v16 = vpack.i.bf16 %v1233_v53, %v1232_v56  ;;  %v354_v53 = vmin.f32 %v5101_v34, 0.0 }
 0x669   :  { %4090 = vrot.lane.b32.xlu0 %v4089_v1, %s4630_s25 }
 0x66a   :  { %1304 = vadd.xlane.f32.xlu1 %v1303_v10 }
 0x671   :  { %4100 = vrot.lane.b32.xlu0 %v4099_v35, %s4627_s24 }
 0x672   :  { %v1296_v21 = vpop.xlane.xlu0 %1295 }
 0x673   :  { %4355 = vrcp.f32 %v1296_v21 }
 0x679   :  { %v4356_v13 = vpop.eup %4355 }
 0x67a   :  { %v1471_v46 = vpop.xlane.xlu0 %1470  ;;  %v1310_v49 = vmul.f32 %v4356_v13, %v5059_v38 }
 0x683   :  { %4070 = vrot.lane.b32.xlu1 %v4069_v4, %s4632_s27 }
 0x68a   :  { %v1468_v42 = vpop.xlane.xlu1 %1467 }
 0x68b   :  { %4105 = vrot.lane.b32.xlu1 %v4104_v16, %s4625_s23  ;;  %v360_v16 = vmul.f32 1.442695, %v354_v53  ;;  %v3943_v53 = vld [vmem:[%s6197_s2 + $0x130] sm:$0xf0] }
 0x68d   :  { %v4051_v36 = vpop.permute.xlu0 %4050 }
 0x68e   :  { %v4052_v24 = vunpack.i.l.bf16 %v4051_v36  ;;  %v4053_v32 = vunpack.i.h.bf16 %v4051_v36 }
 0x690   :  { %1340 = vmatpush.msrb.mxu0 %v4052_v24 }
 0x692   :  { %1341 = vmatpush.msrb.mxu0 %v4053_v32 }
 0x693   :  { %3665 = vmatmul.msk.f32.vlgmr.msrb.gmra.mxu0 %vm245_vm0, %v1310_v49  ;;  %v1299_v18 = vpop.xlane.xlu2 %1298 }
 0x694   :  { %4357 = vrcp.f32 %v1299_v18 }
 0x695   :  { %4359 = vrcp.f32 %v1468_v42 }
 0x696   :  { %4361 = vrcp.f32 %v1471_v46 }
 0x69a   :  { %v4358_v52 = vpop.eup %4357 }
 0x69b   :  { %v4056_v44 = vpop.permute.xlu2 %4055  ;;  %v1311_v39 = vmul.f32 %v4358_v52, %v5079_v0  ;;  %v4360_v28 = vpop.eup %4359 }
 0x69c   :  { %v4057_v11 = vunpack.i.l.bf16 %v4056_v44  ;;  %v4058_v20 = vunpack.i.h.bf16 %v4056_v44  ;;  %v1482_v10 = vmul.f32 %v4360_v28, %v5069_v58  ;;  %v4362_v9 = vpop.eup %4361 }
 0x69d   :  { %3666 = vmatmul.msk.f32.gmra.mxu0 %vm245_vm0, %v1311_v39  ;;  %v1483_v25 = vmul.f32 %v4362_v9, %v5063_v45 }
 0x69e   :  { %1547 = vmatpush.msra.mxu3 %v4057_v11 }
 0x6a0   :  { %1548 = vmatpush.msra.mxu3 %v4058_v20 }
 0x6a2   :  { %v4046_v1 = vpop.permute.xlu1 %4045 }
 0x6a3   :  { %v4047_v38 = vunpack.i.l.bf16 %v4046_v1  ;;  %v4048_v43 = vunpack.i.h.bf16 %v4046_v1 }
 0x6a5   :  { %1512 = vmatpush.msra.mxu2 %v4047_v38 }
 0x6a7   :  { %1513 = vmatpush.msra.mxu2 %v4048_v43 }
 0x6a8   :  { %3673 = vmatmul.msk.f32.vlgmr.msra.gmra.mxu2 %vm245_vm0, %v1482_v10 }
 0x6ac   :  { %v1206_v0 = vpop.f32.mrf.mxu3 }
 0x6ad   :  { %v1218_v23 = vmin.f32 %v1206_v0, 0.0  ;;  %vm1214_vm6 = vcmp.gt.f32.partialorder %v1206_v0, 0.0 }
 0x6af   :  { %v1224_v30 = vmul.f32 1.442695, %v1218_v23 }
 0x6b0   :  { %3674 = vmatmul.msk.f32.gmra.mxu2 %vm245_vm0, %v1483_v25 }
 0x6b1   :  { %4363 = vpow2.f32 %v1224_v30 }
 0x6b4   :  { %v1209_v51 = vpop.f32.mrf.mxu3 }
 0x6b5   :  { %v1219_v55 = vmin.f32 %v1209_v51, 0.0  ;;  %vm1215_vm7 = vcmp.gt.f32.partialorder %v1209_v51, 0.0 }
 0x6b7   :  { %v1226_v63 = vmul.f32 1.442695, %v1219_v55  ;;  %v4364_v35 = vpop.eup %4363 }
 0x6b8   :  { %v3663_v41 = vadd.f32 -1.0, %v4364_v35  ;;  %v1302_v47 = vpop.xlane.xlu0 %1301 }
 0x6b9   :  { %4365 = vpow2.f32 %v1226_v63 }
 0x6ba   :  { %v1234_v48 = vsel %vm1214_vm6, %v1206_v0, %v3663_v41  ;;  %4367 = vrcp.f32 %v1302_v47  ;;  %vm1701_vm6 = vcmask 392192  }
 0x6bf   :  { %v4366_v12 = vpop.eup %4365 }
 0x6c0   :  { %v3664_v58 = vadd.f32 -1.0, %v4366_v12  ;;  %v4368_v8 = vpop.eup %4367 }
 0x6c1   :  { %v1312_v22 = vmul.f32 %v4368_v8, %v5120_v15  ;;  %v355_v15 = vmin.f32 %v5089_v62, 0.0 }
 0x6c2   :  { %v1235_v19 = vsel %vm1215_vm7, %v1209_v51, %v3664_v58  ;;  %vm1706_vm7 = vcmask 523264  }
 0x6c3   :  { %v4109_v7 = vpack.i.bf16 %v1235_v19, %v1234_v48 }
 0x6c5   :  { %4110 = vrot.lane.b32.xlu2 %v4109_v7, %s4625_s23 }
 0x6cb   :  { %v4061_v45 = vpop.permute.xlu0 %4060 }
 0x6cc   :  { %v4062_v21 = vunpack.i.l.bf16 %v4061_v45  ;;  %v4063_v57 = vunpack.i.h.bf16 %v4061_v45 }
 0x6cd   :  { %v1474_v50 = vpop.xlane.xlu1 %1473 }
 0x6ce   :  { %4369 = vrcp.f32 %v1474_v50  ;;  %1375 = vmatpush.msrb.mxu1 %v4062_v21 }
 0x6d0   :  { %1376 = vmatpush.msrb.mxu1 %v4063_v57 }
 0x6d1   :  { %3667 = vmatmul.msk.f32.vlgmr.msrb.gmra.mxu1 %vm245_vm0, %v1312_v22 }
 0x6d3   :  { %v4081_v49 = vpop.permute.xlu0 %4080 }
 0x6d4   :  { %v4370_v37 = vpop.eup %4369  ;;  %v4083_v39 = vunpack.i.h.bf16 %v4081_v49  ;;  %v4082_v11 = vunpack.i.l.bf16 %v4081_v49 }
 0x6d5   :  { %v1484_v40 = vmul.f32 %v4370_v37, %v5148_v17  ;;  %v1477_v4 = vpop.xlane.xlu1 %1476  ;;  %v362_v17 = vmul.f32 1.442695, %v355_v15  ;;  %v3823_v37 = vld [vmem:[%s6197_s2 + $0x118] sm:$0xf] }
 0x6d6   :  { %4371 = vrcp.f32 %v1477_v4  ;;  %v3940_v4 = vld [vmem:[%s6197_s2 + $0x11c] sm:$0xf] }
 0x6d7   :  { %3675 = vmatmul.msk.f32.vlgmr.msra.gmra.mxu3 %vm245_vm0, %v1484_v40  ;;  %v3942_v40 = vld [vmem:[%s6197_s2 + $0x128] sm:$0xf0] }
 0x6dc   :  { %v4372_v54 = vpop.eup %4371 }
 0x6dd   :  { %v1305_v31 = vpop.xlane.xlu1 %1304  ;;  %v1485_v46 = vmul.f32 %v4372_v54, %v5160_v33  ;;  %v3824_v54 = vor.u32 %v3942_v40, %v3823_v37  ;;  %v3930_v37 = vld [vmem:[%s6197_s2 + $0xcc] sm:$0xf]  ;;  %v3785_v40 = vld [vmem:[%s6197_s2 + $0xdc] sm:$0xf0] }
 0x6de   :  { %4373 = vrcp.f32 %v1305_v31  ;;  %v3825_v31 = vld [vmem:[%s6197_s2 + $0x12c] sm:$0xf0] }
 0x6df   :  { %3676 = vmatmul.msk.f32.gmra.mxu3 %vm245_vm0, %v1485_v46  ;;  %4375 = vpow2.f32 %v360_v16  ;;  %v3831_v46 = vld [vmem:[%s6197_s2 + $0x120] sm:$0xf]  ;;  %v3828_v15 = vor.u32 %v3940_v4, %v3825_v31  ;;  %v3941_v16 = vld [vmem:[%s6197_s2 + $0x124] sm:$0xf]  ;;  %1984 = vmatpush.bf16.msra.mxu0 %v3824_v54  ;;  %v3788_v54 = vor.u32 %v3930_v37, %v3785_v40  ;;  %v3791_v31 = vld [vmem:[%s6197_s2 + $0xd0] sm:$0xf] }
 0x6e0   :  { %4377 = vpow2.f32 %v362_v17  ;;  %v3913_v37 = vld [vmem:[%s6197_s2 + $0x40] sm:$0xf0]  ;;  %v3911_v40 = vld [vmem:[%s6197_s2 + $0x34] sm:$0xf] }
 0x6e1   :  { %2003 = vmatpush.bf16.msra.mxu1 %v3828_v15 }
 0x6e4   :  { %v4374_v56 = vpop.eup %4373 }
 0x6e5   :  { %v1313_v36 = vmul.f32 %v4374_v56, %v5169_v14  ;;  %v4376_v13 = vpop.eup %4375  ;;  %v3832_v56 = vor.u32 %v3943_v53, %v3831_v46  ;;  %v3933_v46 = vld [vmem:[%s6197_s2 + $0xe0] sm:$0xf0]  ;;  %v3931_v53 = vld [vmem:[%s6197_s2 + $0xd4] sm:$0xf] }
 0x6e6   :  { %v4378_v24 = vpop.eup %4377  ;;  %v3623_v32 = vadd.f32 -1.0, %v4376_v13  ;;  %v3792_v15 = vor.u32 %v3933_v46, %v3791_v31 }
 0x6e7   :  { %3668 = vmatmul.msk.f32.gmra.mxu1 %vm245_vm0, %v1313_v36  ;;  %v3624_v33 = vadd.f32 -1.0, %v4378_v24  ;;  %v3833_v36 = vld [vmem:[%s6197_s2 + $0x134] sm:$0xf0]  ;;  %2022 = vmatpush.bf16.msrb.mxu2 %v3832_v56  ;;  %v3793_v56 = vld [vmem:[%s6197_s2 + $0xe4] sm:$0xf0] }
 0x6e8   :  { %v370_v44 = vsel %vm350_vm8, %v5101_v34, %v3623_v32  ;;  %v3836_v17 = vor.u32 %v3941_v16, %v3833_v36  ;;  %v3763_v16 = vld [vmem:[%s6197_s2 + $0xa0] sm:$0xf]  ;;  %v3927_v36 = vld [vmem:[%s6197_s2 + $0xb0] sm:$0xf0]  ;;  %vm1711_vm8 = vcmask 654336  }
 0x6e9   :  { %v371_v14 = vsel %vm351_vm9, %v5089_v62, %v3624_v33  ;;  %vm1716_vm9 = vcmask 785408  }
 0x6ea   :  { %2041 = vmatpush.bf16.msrb.mxu3 %v3836_v17  ;;  %v3796_v17 = vor.u32 %v3931_v53, %v3793_v56  ;;  %v353_v56 = vmin.f32 %v5067_v27, 0.0 }
 0x6f5   :  { %v4071_v18 = vpop.permute.xlu1 %4070 }
 0x6f6   :  { %v4073_v52 = vunpack.i.h.bf16 %v4071_v18  ;;  %v4072_v42 = vunpack.i.l.bf16 %v4071_v18 }
 0x6f8   :  { %v1694_v20 = vsel %vm245_vm0, %v370_v44, %v4072_v42  ;;  %v1695_v1 = vsel %vm245_vm0, %v371_v14, %v4073_v52 }
 0x6f9   :  { %v5212_v28 = vsel %vm1696_vm10, %v1694_v20, %v4082_v11  ;;  %v5215_v38 = vsel %vm1696_vm10, %v1695_v1, %v4083_v39 }
 0x710   :  { %v1343_v43 = vpop.f32.mrf.mxu0 }
 0x711   :  { %v1388_v10 = vmin.f32 %v1343_v43, 0.0  ;;  %vm1384_vm11 = vcmp.gt.f32.partialorder %v1343_v43, 0.0 }
 0x713   :  { %v1392_v9 = vmul.f32 1.442695, %v1388_v10 }
 0x715   :  { %4379 = vpow2.f32 %v1392_v9 }
 0x71a   :  { %v1346_v0 = vpop.f32.mrf.mxu0 }
 0x71b   :  { %v1389_v34 = vmin.f32 %v1346_v0, 0.0  ;;  %v4380_v23 = vpop.eup %4379  ;;  %vm1385_vm12 = vcmp.gt.f32.partialorder %v1346_v0, 0.0 }
 0x71c   :  { %v3669_v25 = vadd.f32 -1.0, %v4380_v23 }
 0x71d   :  { %v1394_v62 = vmul.f32 1.442695, %v1389_v34 }
 0x71e   :  { %v1404_v55 = vsel %vm1384_vm11, %v1343_v43, %v3669_v25  ;;  %vm1721_vm11 = vcmask 916480  }
 0x71f   :  { %4381 = vpow2.f32 %v1394_v62 }
 0x725   :  { %v4382_v30 = vpop.eup %4381 }
 0x726   :  { %v3670_v51 = vadd.f32 -1.0, %v4382_v30 }
 0x728   :  { %v1405_v63 = vsel %vm1385_vm12, %v1346_v0, %v3670_v51 }
 0x729   :  { %v4114_v35 = vpack.i.bf16 %v1405_v63, %v1404_v55 }
 0x72b   :  { %v1515_v41 = vpop.f32.mrf.mxu2  ;;  %4115 = vrot.lane.b32.xlu0 %v4114_v35, %s4623_s22  ;;  %v3803_v35 = vld [vmem:[%s6197_s2 + $0xf0] sm:$0xf] }
 0x72c   :  { %v1560_v12 = vmin.f32 %v1515_v41, 0.0  ;;  %vm1556_vm13 = vcmp.gt.f32.partialorder %v1515_v41, 0.0 }
 0x72e   :  { %v1564_v58 = vmul.f32 1.442695, %v1560_v12  ;;  %v3935_v12 = vld [vmem:[%s6197_s2 + $0xf4] sm:$0xf] }
 0x730   :  { %4383 = vpow2.f32 %v1564_v58 }
 0x733   :  { %v1518_v48 = vpop.f32.mrf.mxu2 }
 0x734   :  { %v1561_v19 = vmin.f32 %v1518_v48, 0.0  ;;  %vm1557_vm14 = vcmp.gt.f32.partialorder %v1518_v48, 0.0 }
 0x736   :  { %v1566_v7 = vmul.f32 1.442695, %v1561_v19  ;;  %v4384_v47 = vpop.eup %4383  ;;  %v3811_v19 = vld [vmem:[%s6197_s2 + $0xf8] sm:$0xf] }
 0x737   :  { %v3677_v45 = vadd.f32 -1.0, %v4384_v47 }
 0x738   :  { %4385 = vpow2.f32 %v1566_v7  ;;  %v3938_v7 = vld [vmem:[%s6197_s2 + $0x108] sm:$0xf0] }
 0x739   :  { %v1576_v50 = vsel %vm1556_vm13, %v1515_v41, %v3677_v45  ;;  %v3937_v41 = vld [vmem:[%s6197_s2 + $0x100] sm:$0xf0]  ;;  %v3812_v45 = vor.u32 %v3938_v7, %v3811_v19 }
 0x73a   :  { %v3804_v58 = vor.u32 %v3937_v41, %v3803_v35  ;;  %v3731_v35 = vld [vmem:[%s6197_s2 + $0x58] sm:$0xf]  ;;  %v3918_v41 = vld [vmem:[%s6197_s2 + $0x68] sm:$0xf0] }
 0x73b   :  { %2023 = vmatpush.bf16.msrb.mxu2 %v3812_v45  ;;  %v3732_v7 = vor.u32 %v3918_v41, %v3731_v35  ;;  %v3912_v45 = vld [vmem:[%s6197_s2 + $0x38] sm:$0xf0] }
 0x73c   :  { %1985 = vmatpush.bf16.msra.mxu0 %v3804_v58  ;;  %v3733_v58 = vld [vmem:[%s6197_s2 + $0x6c] sm:$0xf0] }
 0x73e   :  { %v4386_v8 = vpop.eup %4385 }
 0x73f   :  { %v3678_v21 = vadd.f32 -1.0, %v4386_v8  ;;  %v3936_v8 = vld [vmem:[%s6197_s2 + $0xfc] sm:$0xf]  ;;  %2024 = vmatpush.bf16.msrb.mxu2 %v3792_v15  ;;  %v352_v15 = vmin.f32 %v5071_v59, 0.0 }
 0x741   :  { %v1577_v57 = vsel %vm1557_vm14, %v1518_v48, %v3678_v21  ;;  %v3805_v48 = vld [vmem:[%s6197_s2 + $0x104] sm:$0xf0]  ;;  %v3813_v21 = vld [vmem:[%s6197_s2 + $0x10c] sm:$0xf0] }
 0x742   :  { %v4119_v22 = vpack.i.bf16 %v1577_v57, %v1576_v50  ;;  %v3808_v47 = vor.u32 %v3935_v12, %v3805_v48  ;;  %v3783_v50 = vld [vmem:[%s6197_s2 + $0xc8] sm:$0xf]  ;;  %v3816_v57 = vor.u32 %v3936_v8, %v3813_v21  ;;  %v3916_v12 = vld [vmem:[%s6197_s2 + $0x5c] sm:$0xf]  ;;  %v3910_v8 = vld [vmem:[%s6197_s2 + $0x2c] sm:$0xf]  ;;  %v5374_v21 = vpop.permute.xlu2 %4065 }
 0x744   :  { %4120 = vrot.lane.b32.xlu1 %v4119_v22, %s4621_s1  ;;  %v3932_v22 = vld [vmem:[%s6197_s2 + $0xd8] sm:$0xf0]  ;;  %2004 = vmatpush.bf16.msra.mxu1 %v3808_v47  ;;  %v3703_v47 = vld [vmem:[%s6197_s2 + $0x28] sm:$0xf] }
 0x745   :  { %v3784_v4 = vor.u32 %v3932_v22, %v3783_v50  ;;  %2042 = vmatpush.bf16.msrb.mxu3 %v3816_v57  ;;  %v3736_v50 = vor.u32 %v3916_v12, %v3733_v58  ;;  %v3705_v57 = vld [vmem:[%s6197_s2 + $0x3c] sm:$0xf0]  ;;  %v3711_v22 = vld [vmem:[%s6197_s2 + $0x30] sm:$0xf] }
 0x746   :  { %v3708_v31 = vor.u32 %v3910_v8, %v3705_v57  ;;  %v3712_v46 = vor.u32 %v3913_v37, %v3711_v22  ;;  %v3939_v22 = vld [vmem:[%s6197_s2 + $0x110] sm:$0xf0] }
 0x747   :  { %1986 = vmatpush.bf16.msra.mxu0 %v3784_v4  ;;  %v3713_v4 = vld [vmem:[%s6197_s2 + $0x44] sm:$0xf0] }
 0x748   :  { %2005 = vmatpush.bf16.msra.mxu1 %v3788_v54  ;;  %v3704_v54 = vor.u32 %v3912_v45, %v3703_v47  ;;  %v3716_v53 = vor.u32 %v3911_v40, %v3713_v4  ;;  %v3839_v45 = vld [vmem:[%s6197_s2 + $0x128] sm:$0xf] }
 0x749   :  { %2043 = vmatpush.bf16.msrb.mxu3 %v3796_v17  ;;  %v3905_v17 = vld [vmem:[%s6197_s2 + $0x4] sm:$0xf] }
 0x74e   :  { %v1378_v13 = vpop.f32.mrf.mxu1 }
 0x74f   :  { %v1390_v33 = vmin.f32 %v1378_v13, 0.0  ;;  %vm1386_vm2 = vcmp.gt.f32.partialorder %v1378_v13, 0.0 }
 0x751   :  { %v1396_v18 = vmul.f32 1.442695, %v1390_v33  ;;  %v3764_v33 = vor.u32 %v3927_v36, %v3763_v16  ;;  %v3683_v16 = vld [vmem:[%s6197_s2] sm:$0xf]  ;;  %v3907_v36 = vld [vmem:[%s6197_s2 + $0x10] sm:$0xf0] }
 0x753   :  { %1987 = vmatpush.bf16.msra.mxu0 %v3764_v33  ;;  %v3691_v33 = vld [vmem:[%s6197_s2 + $0x8] sm:$0xf] }
 0x75a   :  { %v1550_v24 = vpop.f32.mrf.mxu3 }
 0x75b   :  { %v1562_v32 = vmin.f32 %v1550_v24, 0.0  ;;  %vm1558_vm15 = vcmp.gt.f32.partialorder %v1550_v24, 0.0 }
 0x75d   :  { %v1568_v49 = vmul.f32 1.442695, %v1562_v32  ;;  %v3771_v32 = vld [vmem:[%s6197_s2 + $0xa8] sm:$0xf] }
 0x75f   :  { %4387 = vpow2.f32 %v1568_v49  ;;  %v3928_v49 = vld [vmem:[%s6197_s2 + $0xb8] sm:$0xf0] }
 0x760   :  { %4389 = vpow2.f32 %v1396_v18  ;;  %v3926_v18 = vld [vmem:[%s6197_s2 + $0xac] sm:$0xf] }
 0x762   :  { %v1553_v52 = vpop.f32.mrf.mxu3 }
 0x763   :  { %v1563_v42 = vmin.f32 %v1553_v52, 0.0  ;;  %vm1559_vm1 = vcmp.gt.f32.partialorder %v1553_v52, 0.0 }
 0x764   :  { %v1381_v44 = vpop.f32.mrf.mxu1 }
 0x765   :  { %v1570_v14 = vmul.f32 1.442695, %v1563_v42  ;;  %v1391_v39 = vmin.f32 %v1381_v44, 0.0  ;;  %v4388_v20 = vpop.eup %4387  ;;  %vm1387_vm3 = vcmp.gt.f32.partialorder %v1381_v44, 0.0 }
 0x766   :  { %v4390_v1 = vpop.eup %4389  ;;  %v3679_v43 = vadd.f32 -1.0, %v4388_v20 }
 0x767   :  { %4391 = vpow2.f32 %v1570_v14  ;;  %v1398_v11 = vmul.f32 1.442695, %v1391_v39  ;;  %v3671_v9 = vadd.f32 -1.0, %v4390_v1  ;;  %v3743_v14 = vld [vmem:[%s6197_s2 + $0x78] sm:$0xf] }
 0x768   :  { %v1578_v62 = vsel %vm1558_vm15, %v1550_v24, %v3679_v43  ;;  %v3765_v24 = vld [vmem:[%s6197_s2 + $0xb4] sm:$0xf0]  ;;  %v3922_v39 = vld [vmem:[%s6197_s2 + $0x88] sm:$0xf0]  ;;  %v3745_v1 = vld [vmem:[%s6197_s2 + $0x8c] sm:$0xf0] }
 0x769   :  { %4393 = vpow2.f32 %v1398_v11  ;;  %v1406_v51 = vsel %vm1386_vm2, %v1378_v13, %v3671_v9  ;;  %v3925_v13 = vld [vmem:[%s6197_s2 + $0xa4] sm:$0xf]  ;;  %v3920_v11 = vld [vmem:[%s6197_s2 + $0x7c] sm:$0xf]  ;;  %v3751_v43 = vld [vmem:[%s6197_s2 + $0x80] sm:$0xf] }
 0x76a   :  { %v3768_v42 = vor.u32 %v3925_v13, %v3765_v24  ;;  %v3921_v9 = vld [vmem:[%s6197_s2 + $0x84] sm:$0xf]  ;;  %v4076_v13 = vpop.permute.xlu2 %4075  ;;  %v3684_v24 = vor.u32 %v3907_v36, %v3683_v16 }
 0x76b   :  { %v4078_v35 = vunpack.i.h.bf16 %v4076_v13 }
 0x76c   :  { %2006 = vmatpush.bf16.msra.mxu1 %v3768_v42  ;;  %v3906_v42 = vld [vmem:[%s6197_s2 + $0xc] sm:$0xf] }
 0x76d   :  { %v4392_v10 = vpop.eup %4391 }
 0x76e   :  { %v3680_v0 = vadd.f32 -1.0, %v4392_v10  ;;  %v3923_v10 = vld [vmem:[%s6197_s2 + $0x90] sm:$0xf0] }
 0x76f   :  { %v4394_v34 = vpop.eup %4393 }
 0x770   :  { %v1579_v23 = vsel %vm1559_vm1, %v1553_v52, %v3680_v0  ;;  %v3672_v25 = vadd.f32 -1.0, %v4394_v34  ;;  %v3773_v52 = vld [vmem:[%s6197_s2 + $0xbc] sm:$0xf0]  ;;  %v3753_v0 = vld [vmem:[%s6197_s2 + $0x94] sm:$0xf0]  ;;  %v3744_v34 = vor.u32 %v3922_v39, %v3743_v14 }
 0x771   :  { %v4129_v30 = vpack.i.bf16 %v1579_v23, %v1578_v62  ;;  %v3776_v20 = vor.u32 %v3926_v18, %v3773_v52  ;;  %v3748_v62 = vor.u32 %v3920_v11, %v3745_v1  ;;  %v3752_v23 = vor.u32 %v3923_v10, %v3751_v43 }
 0x772   :  { %v1407_v55 = vsel %vm1387_vm3, %v1381_v44, %v3672_v25  ;;  %v3772_v44 = vor.u32 %v3928_v49, %v3771_v32  ;;  %v3723_v25 = vld [vmem:[%s6197_s2 + $0x50] sm:$0xf]  ;;  %1988 = vmatpush.bf16.msra.mxu0 %v3744_v34  ;;  %v3685_v32 = vld [vmem:[%s6197_s2 + $0x14] sm:$0xf0]  ;;  %v3908_v49 = vld [vmem:[%s6197_s2 + $0x18] sm:$0xf0]  ;;  %v4086_v1 = vpop.permute.xlu2 %4085 }
 0x773   :  { %v4124_v63 = vpack.i.bf16 %v1407_v55, %v1406_v51  ;;  %4130 = vrot.lane.b32.xlu0 %v4129_v30, %s4621_s1  ;;  %v3917_v30 = vld [vmem:[%s6197_s2 + $0x60] sm:$0xf0]  ;;  %v3915_v51 = vld [vmem:[%s6197_s2 + $0x54] sm:$0xf]  ;;  %2044 = vmatpush.bf16.msrb.mxu3 %v3776_v20  ;;  %v3756_v55 = vor.u32 %v3921_v9, %v3753_v0  ;;  %v3688_v18 = vor.u32 %v3905_v17, %v3685_v32  ;;  %v356_v39 = vmul.f32 1.442695, %v352_v15  ;;  %v5417_v20 = vpop.permute.xlu0 %4090 }
 0x774   :  { %2025 = vmatpush.bf16.msrb.mxu2 %v3772_v44  ;;  %v3724_v48 = vor.u32 %v3917_v30, %v3723_v25  ;;  %2007 = vmatpush.bf16.msra.mxu1 %v3748_v62  ;;  %v3692_v52 = vor.u32 %v3908_v49, %v3691_v33  ;;  %v3693_v44 = vld [vmem:[%s6197_s2 + $0x1c] sm:$0xf0]  ;;  %v358_v11 = vmul.f32 1.442695, %v353_v56  ;;  %v4068_v62 = vunpack.i.h.bf16 %v5374_v21  ;;  %v4106_v25 = vpop.permute.xlu1 %4105  ;;  %v3934_v32 = vld [vmem:[%s6197_s2 + $0xe8] sm:$0xf0] }
 0x775   :  { %4125 = vrot.lane.b32.xlu2 %v4124_v63, %s4623_s22  ;;  %v3725_v63 = vld [vmem:[%s6197_s2 + $0x64] sm:$0xf0]  ;;  %v3696_v14 = vor.u32 %v3906_v42, %v3693_v44  ;;  %4395 = vpow2.f32 %v356_v39  ;;  %v4077_v30 = vunpack.i.l.bf16 %v4076_v13  ;;  %v4088_v41 = vunpack.i.h.bf16 %v4086_v1  ;;  %v3929_v39 = vld [vmem:[%s6197_s2 + $0xc0] sm:$0xf0] }
 0x776   :  { %v3728_v19 = vor.u32 %v3915_v51, %v3725_v63  ;;  %1989 = vmatpush.bf16.msra.mxu0 %v3724_v48  ;;  %4397 = vpow2.f32 %v358_v11  ;;  %v4087_v12 = vunpack.i.l.bf16 %v4086_v1  ;;  %v3759_v1 = vld [vmem:[%s6197_s2 + $0x88] sm:$0xf] }
 0x777   :  { %2045 = vmatpush.bf16.msrb.mxu3 %v3756_v55 }
 0x778   :  { %2026 = vmatpush.bf16.msrb.mxu2 %v3752_v23  ;;  %2008 = vmatpush.bf16.msra.mxu1 %v3728_v19  ;;  %v4067_v23 = vunpack.i.l.bf16 %v5374_v21  ;;  %v4108_v21 = vunpack.i.h.bf16 %v4106_v25 }
 0x77a   :  { %1990 = vmatpush.bf16.msra.mxu0 %v3704_v54  ;;  %v4096_v51 = vpop.permute.xlu2 %4095 }
 0x77b   :  { %2046 = vmatpush.bf16.msrb.mxu3 %v3736_v50  ;;  %v4396_v43 = vpop.eup %4395  ;;  %v5419_v9 = vpop.permute.xlu0 %4100  ;;  %v4097_v47 = vunpack.i.l.bf16 %v4096_v51  ;;  %v4107_v50 = vunpack.i.l.bf16 %v4106_v25  ;;  %v3914_v25 = vld [vmem:[%s6197_s2 + $0x48] sm:$0xf0] }
 0x77c   :  { %2027 = vmatpush.bf16.msrb.mxu2 %v3732_v7  ;;  %2009 = vmatpush.bf16.msra.mxu1 %v3708_v31  ;;  %v4398_v10 = vpop.eup %4397  ;;  %v3621_v0 = vadd.f32 -1.0, %v4396_v43  ;;  %v4098_v7 = vunpack.i.h.bf16 %v4096_v51  ;;  %v3924_v43 = vld [vmem:[%s6197_s2 + $0x98] sm:$0xf0]  ;;  %v3699_v51 = vld [vmem:[%s6197_s2 + $0x10] sm:$0xf] }
 0x77d   :  { %v3622_v34 = vadd.f32 -1.0, %v4398_v10  ;;  %v3760_v10 = vor.u32 %v3924_v43, %v3759_v1 }
 0x77e   :  { %1991 = vmatpush.bf16.msra.mxu0 %v3684_v24  ;;  %v368_v55 = vsel %vm348_vm4, %v5071_v59, %v3621_v0  ;;  %v3819_v59 = vld [vmem:[%s6197_s2 + $0x100] sm:$0xf]  ;;  %v3799_v24 = vld [vmem:[%s6197_s2 + $0xd8] sm:$0xf] }
 0x77f   :  { %2047 = vmatpush.bf16.msrb.mxu3 %v3716_v53  ;;  %v369_v63 = vsel %vm349_vm5, %v5067_v27, %v3622_v34  ;;  %v1692_v19 = vsel %vm245_vm0, %v368_v55, %v4067_v23  ;;  %v3944_v27 = vld [vmem:[%s6197_s2 + $0x138] sm:$0xf0]  ;;  %v3800_v44 = vor.u32 %v3934_v32, %v3799_v24  ;;  %v3739_v0 = vld [vmem:[%s6197_s2 + $0x60] sm:$0xf]  ;;  %v3919_v34 = vld [vmem:[%s6197_s2 + $0x70] sm:$0xf0] }
 0x780   :  { %2028 = vmatpush.bf16.msrb.mxu2 %v3712_v46  ;;  %2010 = vmatpush.bf16.msra.mxu1 %v3688_v18  ;;  %v1693_v48 = vsel %vm245_vm0, %v369_v63, %v4068_v62  ;;  %v1697_v8 = vsel %vm1696_vm10, %v1692_v19, %v4077_v30  ;;  %v3840_v57 = vor.u32 %v3944_v27, %v3839_v45  ;;  %v3719_v23 = vld [vmem:[%s6197_s2 + $0x38] sm:$0xf]  ;;  %v3909_v55 = vld [vmem:[%s6197_s2 + $0x20] sm:$0xf0]  ;;  %v4103_v45 = vunpack.i.h.bf16 %v5419_v9 }
 0x781   :  { %v1698_v37 = vsel %vm1696_vm10, %v1693_v48, %v4078_v35  ;;  %v1702_v54 = vsel %vm1701_vm6, %v1697_v8, %v4087_v12  ;;  %v3820_v46 = vor.u32 %v3939_v22, %v3819_v59  ;;  %v3740_v62 = vor.u32 %v3919_v34, %v3739_v0 }
 0x782   :  { %v1703_v31 = vsel %vm1701_vm6, %v1698_v37, %v4088_v41  ;;  %2060 = vmatpush.bf16.msrb.mxu0 %v3840_v57  ;;  %v1707_v53 = vsel %vm1706_vm7, %v1702_v54, %v4097_v47  ;;  %v3720_v30 = vor.u32 %v3914_v25, %v3719_v23  ;;  %v4111_v63 = vpop.permute.xlu2 %4110  ;;  %v3700_v35 = vor.u32 %v3909_v55, %v3699_v51 }
 0x783   :  { %2048 = vmatpush.bf16.msrb.mxu3 %v3696_v14  ;;  %v1708_v15 = vsel %vm1706_vm7, %v1703_v31, %v4098_v7  ;;  %v1712_v36 = vsel %vm1711_vm8, %v1707_v53, %v4107_v50  ;;  %v3779_v14 = vld [vmem:[%s6197_s2 + $0xb0] sm:$0xf]  ;;  %v4093_v41 = vunpack.i.h.bf16 %v5417_v20  ;;  %v4092_v12 = vunpack.i.l.bf16 %v5417_v20 }
 0x784   :  { %2029 = vmatpush.bf16.msrb.mxu2 %v3692_v52  ;;  %v1713_v16 = vsel %vm1711_vm8, %v1708_v15, %v4108_v21  ;;  %v3780_v11 = vor.u32 %v3929_v39, %v3779_v14  ;;  %v4113_v48 = vunpack.i.h.bf16 %v4111_v63  ;;  %v4112_v19 = vunpack.i.l.bf16 %v4111_v63 }
 0x785   :  { %v1704_v7 = vsel %vm1701_vm6, %v5212_v28, %v4092_v12  ;;  %v1705_v47 = vsel %vm1701_vm6, %v5215_v38, %v4093_v41  ;;  %v4102_v27 = vunpack.i.l.bf16 %v5419_v9 }
 0x786   :  { %2061 = vmatpush.bf16.msrb.mxu0 %v3820_v46  ;;  %v1710_v50 = vsel %vm1706_vm7, %v1705_v47, %v4103_v45 }
 0x787   :  { %v1709_v21 = vsel %vm1706_vm7, %v1704_v7, %v4102_v27  ;;  %v1715_v22 = vsel %vm1711_vm8, %v1710_v50, %v4113_v48 }
 0x788   :  { %v1714_v57 = vsel %vm1711_vm8, %v1709_v21, %v4112_v19 }
 0x78a   :  { %2062 = vmatpush.bf16.msrb.mxu0 %v3800_v44 }
 0x78e   :  { %2063 = vmatpush.bf16.msrb.mxu0 %v3780_v11 }
 0x792   :  { %2064 = vmatpush.bf16.msrb.mxu0 %v3760_v10 }
 0x796   :  { %2065 = vmatpush.bf16.msrb.mxu0 %v3740_v62 }
 0x79a   :  { %2066 = vmatpush.bf16.msrb.mxu0 %v3720_v30 }
 0x79d   :  { %v4116_v58 = vpop.permute.xlu0 %4115 }
 0x79e   :  { %v4118_v40 = vunpack.i.h.bf16 %v4116_v58  ;;  %v4117_v4 = vunpack.i.l.bf16 %v4116_v58  ;;  %2067 = vmatpush.bf16.msrb.mxu0 %v3700_v35 }
 0x7a0   :  { %v1718_v33 = vsel %vm1716_vm9, %v1713_v16, %v4118_v40  ;;  %v1717_v49 = vsel %vm1716_vm9, %v1712_v36, %v4117_v4 }
 0x7b6   :  { %v4121_v56 = vpop.permute.xlu1 %4120 }
 0x7b7   :  { %v4123_v17 = vunpack.i.h.bf16 %v4121_v56  ;;  %v4122_v13 = vunpack.i.l.bf16 %v4121_v56 }
 0x7b9   :  { %v1722_v18 = vsel %vm1721_vm11, %v1717_v49, %v4122_v13  ;;  %v1723_v52 = vsel %vm1721_vm11, %v1718_v33, %v4123_v17 }
 0x7ba   :  { %v1774_v42 = vpack.c.bf16 %v1723_v52, %v1722_v18 }
 0x7bc   :  { %1992 = vmatmul.bf16.vlgmr.msra.gmra.mxu0 %v1774_v42  ;;  %2011 = vmatmul.bf16.vlgmr.msra.gmra.mxu1 %v1774_v42 }
 0x7bd   :  { %2030 = vmatmul.bf16.vlgmr.msrb.gmra.mxu2 %v1774_v42  ;;  %2049 = vmatmul.bf16.vlgmr.msrb.gmra.mxu3 %v1774_v42 }
 0x7cf   :  { %v4126_v58 = vpop.permute.xlu2 %4125 }
 0x7d0   :  { %v4128_v59 = vunpack.i.h.bf16 %v4126_v58  ;;  %v4127_v8 = vunpack.i.l.bf16 %v4126_v58 }
 0x7d2   :  { %v1719_v40 = vsel %vm1716_vm9, %v1714_v57, %v4127_v8  ;;  %v1720_v38 = vsel %vm1716_vm9, %v1715_v22, %v4128_v59 }
 0x7e5   :  { %v4131_v20 = vpop.permute.xlu0 %4130 }
 0x7e6   :  { %v4133_v37 = vunpack.i.h.bf16 %v4131_v20  ;;  %v4132_v28 = vunpack.i.l.bf16 %v4131_v20 }
 0x7e8   :  { %v1724_v4 = vsel %vm1721_vm11, %v1719_v40, %v4132_v28  ;;  %v1725_v9 = vsel %vm1721_vm11, %v1720_v38, %v4133_v37 }
 0x7e9   :  { %v1775_v54 = vpack.c.bf16 %v1725_v9, %v1724_v4 }
 0x7eb   :  { %1997 = vmatmul.bf16.gmra.mxu0 %v1775_v54  ;;  %2016 = vmatmul.bf16.gmra.mxu1 %v1775_v54 }
 0x7ec   :  { %2035 = vmatmul.bf16.gmra.mxu2 %v1775_v54  ;;  %2054 = vmatmul.bf16.gmra.mxu3 %v1775_v54 }
 0x7fb   :  { %2068 = vmatmul.bf16.vlgmr.msrb.gmra.mxu0 %v1774_v42 }
 0x80b   :  { %2073 = vmatmul.bf16.gmra.mxu0 %v1775_v54 }
 0x839   :  { %v1993_v31 = vpop.f32.mrf.mxu0  ;;  %v5506_v56 = vpop.f32.mrf.mxu1 }
 0x841   :  { %v1995_v46 = vpop.f32.mrf.mxu0  ;;  %v5508_v17 = vpop.f32.mrf.mxu1 }
 0x842   :  { %v4134_v53 = vpack.i.bf16 %v1995_v46, %v1993_v31  ;;  %2257 = vmatpush.msrb.mxu1 %v1995_v46 }
 0x844   :  { %4135 = vrot.lane.b32.xlu1 %v4134_v53, %s4627_s24  ;;  %2258 = vmatpush.msrb.mxu1 %v1993_v31 }
 0x868   :  { %v1998_v15 = vpop.f32.mrf.mxu0  ;;  %v5545_v49 = vpop.f32.mrf.mxu1 }
 0x870   :  { %v2000_v16 = vpop.f32.mrf.mxu0  ;;  %v5551_v44 = vpop.f32.mrf.mxu1 }
 0x871   :  { %v4139_v36 = vpack.i.bf16 %v2000_v16, %v1998_v15  ;;  %2286 = vmatpush.msra.mxu2 %v2000_v16 }
 0x873   :  { %4140 = vrot.lane.b32.xlu0 %v4139_v36, %s4627_s24  ;;  %2287 = vmatpush.msra.mxu2 %v1998_v15 }
 0x875   :  { %2593 = vmatpush.msrb.mxu2 %v5508_v17 }
 0x877   :  { %2594 = vmatpush.msrb.mxu2 %v5506_v56 }
 0x878   :  { %v2069_v13 = vpop.f32.mrf.mxu0 }
 0x879   :  { %2496 = vperm.xlu2 %4146, %v2069_v13   ;;  %2083 = vrot.lane.b32.xlu1 %v2069_v13, %s4620_s21 }
 0x87b   :  { %2832 = vperm.xlu0 %4150, %v2069_v13  }
 0x880   :  { %v5514_v24 = vpop.f32.mrf.mxu0 }
 0x881   :  { %2160 = vperm.xlu1 %4144, %v2069_v13   ;;  %2085 = vrot.lane.b32.xlu2 %v5514_v24, %s4620_s21 }
 0x882   :  { %4162 = vset.pattern.permute.xlu2 %v4622_v29 }
 0x883   :  { %4151 = vset.pattern.permute.xlu0 %v4629_v26 }
 0x884   :  { %3168 = vperm.xlu0 %4151, %v2069_v13  }
 0x888   :  { %v5520_v32 = vpop.f32.mrf.mxu0 }
 0x889   :  { %4145 = vset.pattern.permute.xlu1 %v4618_v3  ;;  %2664 = vperm.xlu2 %4162, %v5520_v32  }
 0x88a   :  { %2320 = vperm.xlu1 %4145, %v2069_v13  }
 0x88c   :  { %4154 = vset.pattern.permute.xlu0 %v4619_v6 }
 0x88d   :  { %2500 = vperm.xlu0 %4154, %v5514_v24  }
 0x890   :  { %v5535_v33 = vpop.f32.mrf.mxu0 }
 0x891   :  { %4163 = vset.pattern.permute.xlu2 %v4626_v5 }
 0x892   :  { %4147 = vset.pattern.permute.xlu1 %v4622_v29  ;;  %3000 = vperm.xlu2 %4163, %v5520_v32  }
 0x893   :  { %2656 = vperm.xlu1 %4147, %v2069_v13  }
 0x895   :  { %2087 = vrot.lane.b32.xlu0 %v5520_v32, %s4620_s21 }
 0x896   :  { %4172 = vset.pattern.permute.xlu0 %v4628_v60 }
 0x89a   :  { %4164 = vset.pattern.permute.xlu2 %v4628_v60 }
 0x89b   :  { %4148 = vset.pattern.permute.xlu1 %v4626_v5  ;;  %3336 = vperm.xlu2 %4164, %v5520_v32  }
 0x89c   :  { %2992 = vperm.xlu1 %4148, %v2069_v13  }
 0x89d   :  { %3340 = vperm.xlu0 %4172, %v5535_v33  }
 0x8a3   :  { %4165 = vset.pattern.permute.xlu2 %v4624_v61 }
 0x8a4   :  { %4149 = vset.pattern.permute.xlu1 %v4628_v60  ;;  %2840 = vperm.xlu2 %4165, %v5520_v32  }
 0x8a5   :  { %3328 = vperm.xlu1 %4149, %v2069_v13  }
 0x8ac   :  { %4166 = vset.pattern.permute.xlu2 %v4629_v26 }
 0x8ad   :  { %4152 = vset.pattern.permute.xlu1 %v4617_v2  ;;  %3176 = vperm.xlu2 %4166, %v5520_v32  }
 0x8ae   :  { %2164 = vperm.xlu1 %4152, %v5514_v24  }
 0x8b5   :  { %4168 = vset.pattern.permute.xlu2 %v4618_v3 }
 0x8b6   :  { %v4136_v18 = vpop.permute.xlu1 %4135  ;;  %4153 = vset.pattern.permute.xlu1 %v4618_v3  ;;  %2332 = vperm.xlu2 %4168, %v5535_v33  }
 0x8b7   :  { %v4138_v52 = vunpack.i.h.bf16 %v4136_v18  ;;  %2324 = vperm.xlu1 %4153, %v5514_v24   ;;  %v4137_v42 = vunpack.i.l.bf16 %v4136_v18 }
 0x8b9   :  { %2425 = vmatpush.msra.mxu3 %v4138_v52 }
 0x8bb   :  { %2426 = vmatpush.msra.mxu3 %v4137_v42 }
 0x8bd   :  { %2622 = vmatpush.msrb.mxu3 %v5551_v44 }
 0x8be   :  { %4170 = vset.pattern.permute.xlu2 %v4622_v29 }
 0x8bf   :  { %2623 = vmatpush.msrb.mxu3 %v5545_v49  ;;  %4155 = vset.pattern.permute.xlu1 %v4622_v29 }
 0x8c0   :  { %2668 = vperm.xlu2 %4170, %v5535_v33   ;;  %2660 = vperm.xlu1 %4155, %v5514_v24  }
 0x8c8   :  { %4171 = vset.pattern.permute.xlu2 %v4626_v5  ;;  %4156 = vset.pattern.permute.xlu1 %v4626_v5 }
 0x8c9   :  { %3004 = vperm.xlu2 %4171, %v5535_v33   ;;  %2996 = vperm.xlu1 %4156, %v5514_v24  }
 0x8d1   :  { %4173 = vset.pattern.permute.xlu2 %v4624_v61  ;;  %4157 = vset.pattern.permute.xlu1 %v4628_v60 }
 0x8d2   :  { %2844 = vperm.xlu2 %4173, %v5535_v33   ;;  %3332 = vperm.xlu1 %4157, %v5514_v24  }
 0x8da   :  { %4158 = vset.pattern.permute.xlu1 %v4624_v61  ;;  %v5575_v61 = vpop.permute.xlu2 %2496 }
 0x8db   :  { %2836 = vperm.xlu1 %4158, %v5514_v24  }
 0x8e2   :  { %v2086_v0 = vpop.permute.xlu2 %2085 }
 0x8e3   :  { %4159 = vset.pattern.permute.xlu1 %v4617_v2 }
 0x8e4   :  { %2168 = vperm.xlu1 %4159, %v5520_v32  }
 0x8e5   :  { %v4141_v29 = vpop.permute.xlu0 %4140 }
 0x8e6   :  { %v4143_v5 = vunpack.i.h.bf16 %v4141_v29  ;;  %v4142_v14 = vunpack.i.l.bf16 %v4141_v29 }
 0x8e8   :  { %2462 = vmatpush.msra.mxu1 %v4143_v5 }
 0x8ea   :  { %2463 = vmatpush.msra.mxu1 %v4142_v14  ;;  %v5593_v63 = vpop.permute.xlu2 %2664 }
 0x8eb   :  { %v2084_v39 = vpop.permute.xlu1 %2083 }
 0x8ec   :  { %4160 = vset.pattern.permute.xlu1 %v4618_v3 }
 0x8ed   :  { %v5572_v11 = vpop.permute.xlu0 %2832  ;;  %2328 = vperm.xlu1 %4160, %v5520_v32  }
 0x8f2   :  { %v5595_v41 = vpop.permute.xlu2 %3000 }
 0x8f3   :  { %v2161_v1 = vpop.permute.xlu1 %2160 }
 0x8f5   :  { %4161 = vset.pattern.permute.xlu1 %v4619_v6 }
 0x8f6   :  { %v5578_v43 = vpop.permute.xlu0 %3168  ;;  %2504 = vperm.xlu1 %4161, %v5520_v32  }
 0x8f8   :  { %2095 = vxpose.xlu2.b32.start [1/2] (short) (narrow) %v2084_v39, 8 }
 0x8fa   :  { %v5599_v12 = vpop.permute.xlu2 %3336 }
 0x8fc   :  { %v5581_v10 = vpop.permute.xlu1 %2320 }
 0x8fe   :  { %2089 = vrot.lane.b32.xlu1 %v5535_v33, %s4620_s21 }
 0x8ff   :  { %v5585_v3 = vpop.permute.xlu0 %2500  ;;  %4167 = vset.pattern.permute.xlu1 %v4617_v2 }
 0x900   :  { %2096 = vxpose.xlu2.b32.end [2/2] (short) (narrow) %v2086_v0, 8 }
 0x902   :  { %v5603_v48 = vpop.permute.xlu2 %2840 }
 0x905   :  { %v2657_v34 = vpop.permute.xlu1 %2656 }
 0x906   :  { %2172 = vperm.xlu1 %4167, %v5535_v33  }
 0x907   :  { %v2088_v62 = vpop.permute.xlu0 %2087 }
 0x908   :  { %2127 = vxpose.xlu0.b32.start [1/2] (short) (narrow) %v2088_v62, 8 }
 0x90a   :  { %v5609_v7 = vpop.permute.xlu2 %3176 }
 0x90e   :  { %v2993_v23 = vpop.permute.xlu1 %2992  ;;  %4169 = vset.pattern.permute.xlu1 %v4619_v6 }
 0x90f   :  { %2508 = vperm.xlu1 %4169, %v5535_v33  }
 0x912   :  { %v5614_v45 = vpop.permute.xlu2 %2332 }
 0x917   :  { %v5591_v25 = vpop.permute.xlu1 %3328 }
 0x91a   :  { %v5616_v59 = vpop.permute.xlu2 %2668 }
 0x920   :  { %v2165_v30 = vpop.permute.xlu1 %2164 }
 0x923   :  { %v5618_v8 = vpop.permute.xlu2 %3004 }
 0x929   :  { %v2325_v51 = vpop.permute.xlu1 %2324 }
 0x92c   :  { %v5620_v21 = vpop.permute.xlu2 %2844 }
 0x932   :  { %v2661_v55 = vpop.permute.xlu1 %2660 }
 0x93b   :  { %v2997_v35 = vpop.permute.xlu1 %2996 }
 0x944   :  { %v5597_v2 = vpop.permute.xlu1 %3332 }
 0x94d   :  { %v5601_v58 = vpop.permute.xlu1 %2836 }
 0x956   :  { %v5605_v6 = vpop.permute.xlu1 %2168 }
 0x95f   :  { %v5607_v19 = vpop.permute.xlu1 %2328 }
 0x962   :  { %4175 = vset.pattern.permute.xlu2 %v4629_v26 }
 0x968   :  { %v5612_v47 = vpop.permute.xlu1 %2504 }
 0x970   :  { %v2090_v27 = vpop.permute.xlu1 %2089 }
 0x971   :  { %2128 = vxpose.xlu0.b32.end [2/2] (short) (narrow) %v2090_v27, 8 }
 0x991   :  { %v5622_v50 = vpop.trf.xlu2 }
 0x992   :  { %v2175_v20 = vperm.slane %v5622_v50, 0  ;;  %v2671_v57 = vperm.slane %v5622_v50, 3  ;;  %v2335_v22 = vperm.slane %v5622_v50, 1  ;;  %v3007_v36 = vperm.slane %v5622_v50, 5 }
 0x993   :  { %v2511_v27 = vperm.slane %v5622_v50, 2 }
 0x994   :  { %v2178_v37 = vadd.f32 %v2175_v20, %v2165_v30  ;;  %v2177_v28 = vadd.f32 %v2175_v20, %v2161_v1  ;;  %v2673_v40 = vadd.f32 %v2671_v57, %v2657_v34  ;;  %v2338_v38 = vadd.f32 %v2335_v22, %v2325_v51 }
 0x995   :  { %v3009_v18 = vadd.f32 %v3007_v36, %v2993_v23  ;;  %v2674_v52 = vadd.f32 %v2671_v57, %v2661_v55  ;;  %v3010_v0 = vadd.f32 %v3007_v36, %v2997_v35  ;;  %v2337_v55 = vadd.f32 %v2335_v22, %v5581_v10  ;;  %v5671_v10 = vpop.permute.xlu0 %3340 }
 0x996   :  { %vm2182_vm10 = vcmp.ge.f32.partialorder %v2178_v37, 0.0  ;;  %v2186_v4 = vmul.f32 0.2, %v2178_v37  ;;  %vm2181_vm12 = vcmp.ge.f32.partialorder %v2177_v28, 0.0  ;;  %v2185_v9 = vmul.f32 0.2, %v2177_v28 }
 0x997   :  { %v2681_v15 = vmul.f32 0.2, %v2673_v40  ;;  %v2346_v16 = vmul.f32 0.2, %v2338_v38  ;;  %vm2677_vm13 = vcmp.ge.f32.partialorder %v2673_v40, 0.0  ;;  %vm2342_vm14 = vcmp.ge.f32.partialorder %v2338_v38, 0.0 }
 0x998   :  { %v5627_v54 = vsel %vm2182_vm10, %v2178_v37, %v2186_v4  ;;  %v5629_v31 = vsel %vm2181_vm12, %v2177_v28, %v2185_v9  ;;  %v3017_v5 = vmul.f32 0.2, %v3009_v18  ;;  %v2682_v14 = vmul.f32 0.2, %v2674_v52  ;;  %v2173_v4 = vpop.permute.xlu1 %2172 }
 0x999   :  { %v2196_v46 = vsel %vm245_vm0, %v5627_v54, -inf  ;;  %v2193_v53 = vsel %vm245_vm0, %v5629_v31, -inf  ;;  %v5636_v13 = vsel %vm2677_vm13, %v2673_v40, %v2681_v15  ;;  %v5638_v32 = vsel %vm2342_vm14, %v2338_v38, %v2346_v16 }
 0x99a   :  { %2197 = vmax.xlane.f32.xlu2 %v2196_v46  ;;  %2194 = vmax.xlane.f32.xlu1 %v2193_v53  ;;  %v2689_v42 = vsel %vm245_vm0, %v5636_v13, -inf  ;;  %v2356_v29 = vsel %vm245_vm0, %v5638_v32, -inf  ;;  %vm3013_vm15 = vcmp.ge.f32.partialorder %v3009_v18, 0.0  ;;  %vm2678_vm1 = vcmp.ge.f32.partialorder %v2674_v52, 0.0 }
 0x99b   :  { %v5644_v39 = vsel %vm3013_vm15, %v3009_v18, %v3017_v5  ;;  %v5646_v1 = vsel %vm2678_vm1, %v2674_v52, %v2682_v14  ;;  %v3018_v23 = vmul.f32 0.2, %v3010_v0  ;;  %vm3014_vm2 = vcmp.ge.f32.partialorder %v3010_v0, 0.0 }
 0x99c   :  { %v3025_v34 = vsel %vm245_vm0, %v5644_v39, -inf  ;;  %v2692_v62 = vsel %vm245_vm0, %v5646_v1, -inf  ;;  %v2345_v35 = vmul.f32 0.2, %v2337_v55  ;;  %vm2341_vm3 = vcmp.ge.f32.partialorder %v2337_v55, 0.0 }
 0x99d   :  { %v5652_v30 = vsel %vm3014_vm2, %v3010_v0, %v3018_v23  ;;  %v2513_v57 = vadd.f32 %v2511_v27, %v5575_v61 }
 0x99e   :  { %v3028_v51 = vsel %vm245_vm0, %v5652_v30, -inf  ;;  %v5660_v20 = vsel %vm2341_vm3, %v2337_v55, %v2345_v35 }
 0x99f   :  { %v2353_v37 = vsel %vm245_vm0, %v5660_v20, -inf  ;;  %v2521_v28 = vmul.f32 0.2, %v2513_v57  ;;  %vm2517_vm4 = vcmp.ge.f32.partialorder %v2513_v57, 0.0 }
 0x9a2   :  { %2690 = vmax.xlane.f32.xlu2 %v2689_v42  ;;  %2357 = vmax.xlane.f32.xlu1 %v2356_v29 }
 0x9aa   :  { %3026 = vmax.xlane.f32.xlu2 %v3025_v34  ;;  %2693 = vmax.xlane.f32.xlu1 %v2692_v62  ;;  %v3183_v62 = vperm.slane %v5622_v50, 6 }
 0x9ac   :  { %v3185_v35 = vadd.f32 %v3183_v62, %v5578_v43 }
 0x9ae   :  { %vm3189_vm12 = vcmp.ge.f32.partialorder %v3185_v35, 0.0 }
 0x9b2   :  { %3029 = vmax.xlane.f32.xlu1 %v3028_v51  ;;  %v3343_v51 = vperm.slane %v5622_v50, 7 }
 0x9c2   :  { %3180 = vperm.xlu2 %4175, %v5535_v33   ;;  %v5667_v33 = vsel %vm2517_vm4, %v2513_v57, %v2521_v28 }
 0x9d8   :  { %4174 = vset.pattern.permute.xlu0 %v4629_v26  ;;  %v2529_v26 = vsel %vm245_vm0, %v5667_v33, -inf }
 0x9e2   :  { %2354 = vmax.xlane.f32.xlu0 %v2353_v37 }
 0x9ea   :  { %2530 = vmax.xlane.f32.xlu0 %v2529_v26  ;;  %v3345_v26 = vadd.f32 %v3343_v51, %v5591_v25 }
 0x9ec   :  { %vm3349_vm14 = vcmp.ge.f32.partialorder %v3345_v26, 0.0 }
 0xa0d   :  { %v5673_v22 = vpop.trf.xlu0 }
 0xa0e   :  { %v2512_v40 = vperm.slane %v5673_v22, 2  ;;  %v2176_v61 = vperm.slane %v5673_v22, 0  ;;  %v2848_v38 = vperm.slane %v5673_v22, 4  ;;  %v2336_v9 = vperm.slane %v5673_v22, 1 }
 0xa0f   :  { %v2672_v16 = vperm.slane %v5673_v22, 3 }
 0xa10   :  { %v2515_v46 = vadd.f32 %v2512_v40, %v5612_v47  ;;  %v2179_v53 = vadd.f32 %v2176_v61, %v5605_v6  ;;  %v2180_v15 = vadd.f32 %v2176_v61, %v2173_v4  ;;  %v2852_v18 = vadd.f32 %v2848_v38, %v5620_v21 }
 0xa11   :  { %v2339_v29 = vadd.f32 %v2336_v9, %v5607_v19  ;;  %v2675_v47 = vadd.f32 %v2672_v16, %v5593_v63  ;;  %v2340_v37 = vadd.f32 %v2336_v9, %v5614_v45  ;;  %v3353_v45 = vmul.f32 0.2, %v3345_v26 }
 0xa12   :  { %vm2519_vm5 = vcmp.ge.f32.partialorder %v2515_v46, 0.0  ;;  %v2523_v36 = vmul.f32 0.2, %v2515_v46  ;;  %vm2183_vm6 = vcmp.ge.f32.partialorder %v2179_v53, 0.0  ;;  %v2187_v52 = vmul.f32 0.2, %v2179_v53 }
 0xa13   :  { %vm2184_vm8 = vcmp.ge.f32.partialorder %v2180_v15, 0.0  ;;  %v2188_v42 = vmul.f32 0.2, %v2180_v15  ;;  %v2860_v21 = vmul.f32 0.2, %v2852_v18  ;;  %vm2856_vm9 = vcmp.ge.f32.partialorder %v2852_v18, 0.0 }
 0xa14   :  { %v5688_v5 = vsel %vm2519_vm5, %v2515_v46, %v2523_v36  ;;  %v5693_v14 = vsel %vm2183_vm6, %v2179_v53, %v2187_v52  ;;  %v2347_v63 = vmul.f32 0.2, %v2339_v29  ;;  %vm2343_vm11 = vcmp.ge.f32.partialorder %v2339_v29, 0.0 }
 0xa15   :  { %v2535_v6 = vsel %vm245_vm0, %v5688_v5, -inf  ;;  %v2199_v0 = vsel %vm245_vm0, %v5693_v14, -inf  ;;  %v5697_v34 = vsel %vm2184_vm8, %v2180_v15, %v2188_v42  ;;  %v2683_v23 = vmul.f32 0.2, %v2675_v47 }
 0xa16   :  { %2536 = vmax.xlane.f32.xlu2 %v2535_v6  ;;  %2200 = vmax.xlane.f32.xlu0 %v2199_v0  ;;  %v2202_v19 = vsel %vm245_vm0, %v5697_v34, -inf  ;;  %vm2679_vm10 = vcmp.ge.f32.partialorder %v2675_v47, 0.0  ;;  %v5703_v55 = vsel %vm2856_vm9, %v2852_v18, %v2860_v21  ;;  %v5708_v57 = vsel %vm2343_vm11, %v2339_v29, %v2347_v63 }
 0xa17   :  { %2203 = vmax.xlane.f32.xlu1 %v2202_v19  ;;  %v5711_v28 = vsel %vm2679_vm10, %v2675_v47, %v2683_v23  ;;  %v2874_v61 = vsel %vm245_vm0, %v5703_v55, -inf  ;;  %v2359_v4 = vsel %vm245_vm0, %v5708_v57, -inf  ;;  %v3193_v46 = vmul.f32 0.2, %v3185_v35 }
 0xa18   :  { %v2695_v43 = vsel %vm245_vm0, %v5711_v28, -inf  ;;  %v2348_v53 = vmul.f32 0.2, %v2340_v37  ;;  %vm2344_vm13 = vcmp.ge.f32.partialorder %v2340_v37, 0.0  ;;  %v3008_v9 = vperm.slane %v5673_v22, 5 }
 0xa19   :  { %v5721_v25 = vsel %vm3189_vm12, %v3185_v35, %v3193_v46  ;;  %v2676_v36 = vadd.f32 %v2672_v16, %v5616_v59  ;;  %v5726_v18 = vsel %vm3349_vm14, %v3345_v26, %v3353_v45  ;;  %v3346_v35 = vadd.f32 %v3343_v51, %v5597_v2 }
 0xa1a   :  { %v5723_v15 = vsel %vm2344_vm13, %v2340_v37, %v2348_v53  ;;  %v3011_v52 = vadd.f32 %v3008_v9, %v5595_v41  ;;  %v3201_v42 = vsel %vm245_vm0, %v5721_v25, -inf  ;;  %v3361_v47 = vsel %vm245_vm0, %v5726_v18, -inf }
 0xa1b   :  { %v2362_v29 = vsel %vm245_vm0, %v5723_v15, -inf  ;;  %v2684_v6 = vmul.f32 0.2, %v2676_v36  ;;  %vm2680_vm15 = vcmp.ge.f32.partialorder %v2676_v36, 0.0  ;;  %v3012_v41 = vadd.f32 %v3008_v9, %v5618_v8  ;;  %v2509_v9 = vpop.permute.xlu1 %2508 }
 0xa1c   :  { %v3019_v0 = vmul.f32 0.2, %v3011_v52  ;;  %vm3015_vm1 = vcmp.ge.f32.partialorder %v3011_v52, 0.0  ;;  %v3354_v26 = vmul.f32 0.2, %v3346_v35  ;;  %v3344_v8 = vperm.slane %v5673_v22, 7 }
 0xa1d   :  { %v5735_v59 = vsel %vm2680_vm15, %v2676_v36, %v2684_v6  ;;  %v3020_v63 = vmul.f32 0.2, %v3012_v41  ;;  %vm3016_vm2 = vcmp.ge.f32.partialorder %v3012_v41, 0.0  ;;  %vm3350_vm3 = vcmp.ge.f32.partialorder %v3346_v35, 0.0 }
 0xa1e   :  { %2875 = vmax.xlane.f32.xlu2 %v2874_v61  ;;  %2360 = vmax.xlane.f32.xlu0 %v2359_v4  ;;  %v5737_v16 = vsel %vm3015_vm1, %v3011_v52, %v3019_v0  ;;  %v2698_v21 = vsel %vm245_vm0, %v5735_v59, -inf  ;;  %v5750_v61 = vsel %vm3350_vm3, %v3346_v35, %v3354_v26  ;;  %v3348_v4 = vadd.f32 %v3344_v8, %v5671_v10  ;;  %v5763_v10 = vpop.xlane.xlu2 %2197 }
 0xa1f   :  { %2696 = vmax.xlane.f32.xlu1 %v2695_v43  ;;  %v3031_v19 = vsel %vm245_vm0, %v5737_v16, -inf  ;;  %v5744_v23 = vsel %vm3016_vm2, %v3012_v41, %v3020_v63  ;;  %v3364_v46 = vsel %vm245_vm0, %v5750_v61, -inf  ;;  %v2514_v51 = vadd.f32 %v2511_v27, %v5585_v3 }
 0xa20   :  { %v3034_v37 = vsel %vm245_vm0, %v5744_v23, -inf  ;;  %v3356_v43 = vmul.f32 0.2, %v3348_v4  ;;  %vm3352_vm4 = vcmp.ge.f32.partialorder %v3348_v4, 0.0  ;;  %v2847_v27 = vperm.slane %v5622_v50, 4 }
 0xa21   :  { %v2522_v45 = vmul.f32 0.2, %v2514_v51  ;;  %vm2518_vm5 = vcmp.ge.f32.partialorder %v2514_v51, 0.0 }
 0xa22   :  { %v5756_v2 = vsel %vm3352_vm4, %v3348_v4, %v3356_v43 }
 0xa23   :  { %v3370_v53 = vsel %vm245_vm0, %v5756_v2, -inf  ;;  %v5766_v36 = vsel %vm2518_vm5, %v2514_v51, %v2522_v45  ;;  %v2195_v51 = vpop.xlane.xlu1 %2194 }
 0xa24   :  { %v2532_v52 = vsel %vm245_vm0, %v5766_v36, -inf }
 0xa26   :  { %3202 = vmax.xlane.f32.xlu2 %v3201_v42  ;;  %2363 = vmax.xlane.f32.xlu0 %v2362_v29  ;;  %v2691_v42 = vpop.xlane.xlu2 %2690 }
 0xa27   :  { %3362 = vmax.xlane.f32.xlu1 %v3361_v47  ;;  %v2849_v47 = vadd.f32 %v2847_v27, %v5572_v11  ;;  %v2851_v11 = vadd.f32 %v2848_v38, %v5603_v48  ;;  %v2850_v38 = vadd.f32 %v2847_v27, %v5601_v58 }
 0xa29   :  { %vm2853_vm8 = vcmp.ge.f32.partialorder %v2849_v47, 0.0  ;;  %v2859_v26 = vmul.f32 0.2, %v2851_v11  ;;  %vm2855_vm9 = vcmp.ge.f32.partialorder %v2851_v11, 0.0  ;;  %vm2854_vm10 = vcmp.ge.f32.partialorder %v2850_v38, 0.0 }
 0xa2b   :  { %v5793_v48 = vsel %vm2855_vm9, %v2851_v11, %v2859_v26 }
 0xa2e   :  { %2699 = vmax.xlane.f32.xlu0 %v2698_v21  ;;  %v2857_v21 = vmul.f32 0.2, %v2849_v47  ;;  %v3027_v35 = vpop.xlane.xlu2 %3026 }
 0xa2f   :  { %3032 = vmax.xlane.f32.xlu1 %v3031_v19 }
 0xa30   :  { %v5780_v63 = vsel %vm2853_vm8, %v2849_v47, %v2857_v21 }
 0xa37   :  { %3035 = vmax.xlane.f32.xlu1 %v3034_v37 }
 0xa3f   :  { %3365 = vmax.xlane.f32.xlu1 %v3364_v46  ;;  %v3347_v46 = vadd.f32 %v3344_v8, %v5599_v12 }
 0xa41   :  { %vm3351_vm11 = vcmp.ge.f32.partialorder %v3347_v46, 0.0 }
 0xa42   :  { %3172 = vperm.xlu0 %4174, %v5514_v24   ;;  %v2516_v24 = vadd.f32 %v2512_v40, %v2509_v9  ;;  %v2701_v40 = vsub.f32 %v5636_v13, %v2691_v42  ;;  %v3037_v13 = vsub.f32 %v5644_v39, %v3027_v35  ;;  %v2871_v39 = vsel %vm245_vm0, %v5793_v48, -inf }
 0xa43   :  { %v2858_v9 = vmul.f32 0.2, %v2850_v38 }
 0xa44   :  { %v2524_v3 = vmul.f32 0.2, %v2516_v24  ;;  %vm2520_vm6 = vcmp.ge.f32.partialorder %v2516_v24, 0.0  ;;  %v2705_v19 = vmul.f32 1.442695, %v2701_v40 }
 0xa45   :  { %v3041_v43 = vmul.f32 1.442695, %v3037_v13 }
 0xa46   :  { %v5773_v29 = vsel %vm2520_vm6, %v2516_v24, %v2524_v3  ;;  %v5806_v24 = vsel %vm2854_vm10, %v2850_v38, %v2858_v9  ;;  %v2358_v3 = vpop.xlane.xlu1 %2357 }
 0xa47   :  { %3371 = vmax.xlane.f32.xlu1 %v3370_v53  ;;  %v2538_v0 = vsel %vm245_vm0, %v5773_v29, -inf  ;;  %v3355_v53 = vmul.f32 0.2, %v3347_v46  ;;  %v2868_v27 = vsel %vm245_vm0, %v5806_v24, -inf  ;;  %v2366_v11 = vsub.f32 %v5638_v32, %v2358_v3 }
 0xa49   :  { %v5802_v8 = vsel %vm3351_vm11, %v3347_v46, %v3355_v53 }
 0xa4a   :  { %4206 = vset.pattern.permute.xlu0 %v4628_v60  ;;  %v3367_v58 = vsel %vm245_vm0, %v5802_v8, -inf }
 0xa4e   :  { %v2694_v47 = vpop.xlane.xlu1 %2693 }
 0xa4f   :  { %2533 = vmax.xlane.f32.xlu1 %v2532_v52 }
 0xa55   :  { %v2355_v6 = vpop.xlane.xlu0 %2354 }
 0xa56   :  { %v2365_v60 = vsub.f32 %v5660_v20, %v2355_v6  ;;  %v2865_v20 = vsel %vm245_vm0, %v5780_v63, -inf  ;;  %v4176_v6 = vpack.i.bf16 %v5551_v44, %v5508_v17  ;;  %v2371_v17 = vmul.f32 1.442695, %v2366_v11 }
 0xa57   :  { %2539 = vmax.xlane.f32.xlu1 %v2538_v0  ;;  %v4181_v0 = vpack.i.bf16 %v5545_v49, %v5506_v56  ;;  %v2205_v44 = vsub.f32 %v5629_v31, %v2195_v51 }
 0xa58   :  { %v2369_v41 = vmul.f32 1.442695, %v2365_v60  ;;  %v5817_v60 = vpop.xlane.xlu1 %3029 }
 0xa59   :  { %v2209_v26 = vmul.f32 1.442695, %v2205_v44 }
 0xa5a   :  { %4399 = vpow2.f32 %v2369_v41 }
 0xa5b   :  { %4401 = vpow2.f32 %v2705_v19 }
 0xa5c   :  { %4403 = vpow2.f32 %v3041_v43  ;;  %v2206_v43 = vsub.f32 %v5627_v54, %v5763_v10  ;;  %v2702_v54 = vsub.f32 %v5646_v1, %v2694_v47  ;;  %v5845_v10 = vpop.permute.xlu2 %3180 }
 0xa5d   :  { %v5821_v40 = vpop.xlane.xlu0 %2530  ;;  %4405 = vpow2.f32 %v2371_v17 }
 0xa5e   :  { %4407 = vpow2.f32 %v2209_v26  ;;  %v2211_v31 = vmul.f32 1.442695, %v2206_v43  ;;  %v3038_v43 = vsub.f32 %v5652_v30, %v5817_v60 }
 0xa5f   :  { %2866 = vmax.xlane.f32.xlu1 %v2865_v20 }
 0xa60   :  { %v5787_v37 = vpop.eup %4399 }
 0xa61   :  { %v2377_v4 = vsel %vm245_vm0, %v5787_v37, 0.0  ;;  %v5796_v45 = vpop.eup %4401 }
 0xa62   :  { %2378 = vadd.xlane.f32.xlu2 %v2377_v4  ;;  %v2713_v12 = vsel %vm245_vm0, %v5796_v45, 0.0  ;;  %v5808_v52 = vpop.eup %4403 }
 0xa63   :  { %v3049_v42 = vsel %vm245_vm0, %v5808_v52, 0.0  ;;  %v5831_v46 = vpop.eup %4405 }
 0xa64   :  { %v2380_v38 = vsel %vm245_vm0, %v5831_v46, 0.0 }
 0xa67   :  { %2872 = vmax.xlane.f32.xlu1 %v2871_v39  ;;  %v5840_v39 = vpop.eup %4407 }
 0xa6a   :  { %2714 = vadd.xlane.f32.xlu2 %v2713_v12 }
 0xa6c   :  { %3368 = vmax.xlane.f32.xlu0 %v3367_v58  ;;  %v2217_v58 = vsel %vm245_vm0, %v5840_v39, 0.0 }
 0xa6f   :  { %2869 = vmax.xlane.f32.xlu1 %v2868_v27  ;;  %v2707_v27 = vmul.f32 1.442695, %v2702_v54 }
 0xa72   :  { %3050 = vadd.xlane.f32.xlu2 %v3049_v42 }
 0xa80   :  { %4177 = vrot.lane.b32.xlu0 %v4176_v6, %s4627_s24 }
 0xa88   :  { %4182 = vrot.lane.b32.xlu1 %v4181_v0, %s4627_s24 }
 0xa89   :  { %v2201_v21 = vpop.xlane.xlu0 %2200  ;;  %v5861_v11 = vpop.xlane.xlu2 %2536 }
 0xa8a   :  { %v5824_v41 = vpop.xlane.xlu1 %2203 }
 0xa91   :  { %v2361_v35 = vpop.xlane.xlu0 %2360 }
 0xa92   :  { %v2697_v19 = vpop.xlane.xlu1 %2696  ;;  %v2367_v13 = vsub.f32 %v5708_v57, %v2361_v35  ;;  %v2207_v35 = vsub.f32 %v5693_v14, %v2201_v21 }
 0xa94   :  { %v2373_v4 = vmul.f32 1.442695, %v2367_v13  ;;  %v3184_v13 = vperm.slane %v5673_v22, 6  ;;  %v2213_v14 = vmul.f32 1.442695, %v2207_v35  ;;  %v2208_v22 = vsub.f32 %v5697_v34, %v5824_v41 }
 0xa95   :  { %v3043_v34 = vmul.f32 1.442695, %v3038_v43  ;;  %v2541_v35 = vsub.f32 %v5667_v33, %v5821_v40 }
 0xa96   :  { %4409 = vpow2.f32 %v2373_v4  ;;  %v2215_v41 = vmul.f32 1.442695, %v2208_v22  ;;  %v5942_v22 = vpop.f32.mrf.mxu3 }
 0xa97   :  { %4411 = vpow2.f32 %v2211_v31 }
 0xa99   :  { %v2364_v56 = vpop.xlane.xlu0 %2363 }
 0xa9a   :  { %v5827_v20 = vpop.xlane.xlu1 %3362  ;;  %v2368_v32 = vsub.f32 %v5723_v15, %v2364_v56  ;;  %v2703_v15 = vsub.f32 %v5711_v28, %v2697_v19 }
 0xa9c   :  { %v2375_v51 = vmul.f32 1.442695, %v2368_v32  ;;  %v5842_v9 = vpop.eup %4409  ;;  %v2709_v42 = vmul.f32 1.442695, %v2703_v15 }
 0xa9d   :  { %v2383_v3 = vsel %vm245_vm0, %v5842_v9, 0.0  ;;  %v5853_v0 = vpop.eup %4411 }
 0xa9e   :  { %4413 = vpow2.f32 %v2375_v51  ;;  %v2220_v17 = vsel %vm245_vm0, %v5853_v0, 0.0  ;;  %v5893_v51 = vpop.xlane.xlu2 %2875 }
 0xa9f   :  { %4415 = vpow2.f32 %v2707_v27 }
 0xaa0   :  { %4417 = vpow2.f32 %v2709_v42 }
 0xaa1   :  { %v2700_v57 = vpop.xlane.xlu0 %2699 }
 0xaa2   :  { %v3033_v49 = vpop.xlane.xlu1 %3032  ;;  %v2704_v12 = vsub.f32 %v5735_v59, %v2700_v57 }
 0xaa3   :  { %v3039_v44 = vsub.f32 %v5737_v16, %v3033_v49  ;;  %v3187_v16 = vadd.f32 %v3184_v13, %v5609_v7 }
 0xaa4   :  { %v2711_v1 = vmul.f32 1.442695, %v2704_v12  ;;  %v5857_v47 = vpop.eup %4413 }
 0xaa5   :  { %v2386_v50 = vsel %vm245_vm0, %v5857_v47, 0.0  ;;  %v5874_v21 = vpop.eup %4415  ;;  %v3045_v26 = vmul.f32 1.442695, %v3039_v44  ;;  %v3195_v60 = vmul.f32 0.2, %v3187_v16  ;;  %vm3191_vm13 = vcmp.ge.f32.partialorder %v3187_v16, 0.0 }
 0xaa6   :  { %4419 = vpow2.f32 %v2711_v1  ;;  %v5876_v4 = vpop.eup %4417  ;;  %v2716_v31 = vsel %vm245_vm0, %v5874_v21, 0.0  ;;  %v5915_v1 = vpop.xlane.xlu2 %3202 }
 0xaa7   :  { %4421 = vpow2.f32 %v2213_v14  ;;  %v2719_v7 = vsel %vm245_vm0, %v5876_v4, 0.0  ;;  %v5899_v54 = vsel %vm3191_vm13, %v3187_v16, %v3195_v60 }
 0xaa8   :  { %4423 = vpow2.f32 %v3045_v26  ;;  %v2545_v26 = vmul.f32 1.442695, %v2541_v35 }
 0xaa9   :  { %4425 = vpow2.f32 %v3043_v34 }
 0xaaa   :  { %2381 = vadd.xlane.f32.xlu0 %v2380_v38  ;;  %v5838_v53 = vpop.xlane.xlu1 %3035  ;;  %v5887_v38 = vpop.f32.mrf.mxu2  ;;  %4427 = vpow2.f32 %v2215_v41 }
 0xaab   :  { %v3040_v12 = vsub.f32 %v5744_v23, %v5838_v53 }
 0xaac   :  { %v5879_v49 = vpop.eup %4419 }
 0xaad   :  { %v2722_v30 = vsel %vm245_vm0, %v5879_v49, 0.0  ;;  %v5897_v57 = vpop.eup %4421 }
 0xaae   :  { %v5901_v15 = vpop.eup %4423 }
 0xaaf   :  { %v3055_v42 = vsel %vm245_vm0, %v5901_v15, 0.0  ;;  %v5917_v23 = vpop.eup %4425 }
 0xab0   :  { %v5919_v53 = vpop.eup %4427 }
 0xab1   :  { %v2226_v44 = vsel %vm245_vm0, %v5919_v53, 0.0 }
 0xab2   :  { %2218 = vadd.xlane.f32.xlu1 %v2217_v58  ;;  %2384 = vadd.xlane.f32.xlu0 %v2383_v3  ;;  %v5859_v59 = vpop.xlane.xlu1 %3365  ;;  %v2223_v58 = vsel %vm245_vm0, %v5897_v57, 0.0  ;;  %v3207_v3 = vsel %vm245_vm0, %v5899_v54, -inf }
 0xab3   :  { %v3374_v41 = vsub.f32 %v5750_v61, %v5859_v59 }
 0xab4   :  { %v3173_v6 = vpop.permute.xlu0 %3172 }
 0xab5   :  { %v3186_v28 = vadd.f32 %v3183_v62, %v3173_v6  ;;  %v5913_v6 = vpop.f32.mrf.mxu2 }
 0xab7   :  { %v3194_v19 = vmul.f32 0.2, %v3186_v28  ;;  %vm3190_vm12 = vcmp.ge.f32.partialorder %v3186_v28, 0.0 }
 0xab9   :  { %v5869_v62 = vsel %vm3190_vm12, %v3186_v28, %v3194_v19  ;;  %v3047_v28 = vmul.f32 1.442695, %v3040_v12  ;;  %v3188_v19 = vadd.f32 %v3184_v13, %v5845_v10 }
 0xaba   :  { %2221 = vadd.xlane.f32.xlu1 %v2220_v17  ;;  %2387 = vadd.xlane.f32.xlu0 %v2386_v50  ;;  %v3204_v56 = vsel %vm245_vm0, %v5869_v62, -inf  ;;  %v5885_v32 = vpop.xlane.xlu1 %3371  ;;  %v3373_v17 = vsub.f32 %v5726_v18, %v5827_v20  ;;  %v3052_v50 = vsel %vm245_vm0, %v5917_v23, 0.0  ;;  %v2543_v20 = vsub.f32 %v5688_v5, %v5861_v11 }
 0xabb   :  { %3205 = vmax.xlane.f32.xlu2 %v3204_v56  ;;  %4429 = vpow2.f32 %v3047_v28  ;;  %v3196_v56 = vmul.f32 0.2, %v3188_v19  ;;  %vm3192_vm14 = vcmp.ge.f32.partialorder %v3188_v19, 0.0  ;;  %v3376_v61 = vsub.f32 %v5756_v2, %v5885_v32 }
 0xabc   :  { %v3377_v10 = vmul.f32 1.442695, %v3373_v17 }
 0xabd   :  { %v2036_v14 = vpop.f32.mrf.mxu2  ;;  %v5934_v18 = vsel %vm3192_vm14, %v3188_v19, %v3196_v56 }
 0xabe   :  { %v3210_v16 = vsel %vm245_vm0, %v5934_v18, -inf  ;;  %v4191_v19 = vpack.i.bf16 %v2036_v14, %v5887_v38 }
 0xac1   :  { %v5932_v40 = vpop.eup %4429 }
 0xac2   :  { %2717 = vadd.xlane.f32.xlu1 %v2716_v31  ;;  %2720 = vadd.xlane.f32.xlu0 %v2719_v7  ;;  %v5909_v27 = vpop.xlane.xlu1 %2533  ;;  %v3058_v43 = vsel %vm245_vm0, %v5932_v40, 0.0  ;;  %v2549_v7 = vmul.f32 1.442695, %v2543_v20 }
 0xac3   :  { %2723 = vadd.xlane.f32.xlu2 %v2722_v30 }
 0xac5   :  { %v2038_v5 = vpop.f32.mrf.mxu2 }
 0xac6   :  { %v4186_v12 = vpack.i.bf16 %v2038_v5, %v5913_v6 }
 0xaca   :  { %2224 = vadd.xlane.f32.xlu1 %v2223_v58  ;;  %3208 = vmax.xlane.f32.xlu0 %v3207_v3  ;;  %v5930_v13 = vpop.xlane.xlu1 %2539  ;;  %v5958_v3 = vpop.f32.mrf.mxu3 }
 0xacb   :  { %3056 = vadd.xlane.f32.xlu2 %v3055_v42  ;;  %v3379_v42 = vmul.f32 1.442695, %v3374_v41 }
 0xad2   :  { %2227 = vadd.xlane.f32.xlu1 %v2226_v44  ;;  %3053 = vadd.xlane.f32.xlu0 %v3052_v50  ;;  %v2867_v11 = vpop.xlane.xlu1 %2866  ;;  %v5968_v44 = vpop.f32.mrf.mxu3  ;;  %v3383_v50 = vmul.f32 1.442695, %v3376_v61 }
 0xad5   :  { %v2379_v33 = vpop.xlane.xlu2 %2378 }
 0xad6   :  { %4431 = vrcp.f32 %v2379_v33 }
 0xad7   :  { %4433 = vpow2.f32 %v2545_v26  ;;  %v2542_v26 = vsub.f32 %v5766_v36, %v5909_v27 }
 0xad8   :  { %4435 = vpow2.f32 %v3377_v10 }
 0xad9   :  { %4437 = vpow2.f32 %v2549_v7  ;;  %v2547_v20 = vmul.f32 1.442695, %v2542_v26 }
 0xada   :  { %3211 = vmax.xlane.f32.xlu1 %v3210_v16  ;;  %3059 = vadd.xlane.f32.xlu0 %v3058_v43  ;;  %4439 = vpow2.f32 %v3379_v42  ;;  %v2873_v59 = vpop.xlane.xlu1 %2872  ;;  %v5981_v43 = vpop.f32.mrf.mxu3  ;;  %v2877_v42 = vsub.f32 %v5780_v63, %v2867_v11 }
 0xadb   :  { %4441 = vpow2.f32 %v3383_v50  ;;  %v4196_v36 = vpack.i.bf16 %v5981_v43, %v5958_v3 }
 0xadc   :  { %v4432_v31 = vpop.eup %4431  ;;  %v2881_v61 = vmul.f32 1.442695, %v2877_v42 }
 0xadd   :  { %v2393_v30 = vmul.f32 %v4432_v31, %v5787_v37  ;;  %v5945_v60 = vpop.eup %4433  ;;  %v2715_v2 = vpop.xlane.xlu2 %2714 }
 0xade   :  { %v5947_v34 = vpop.eup %4435  ;;  %v2553_v58 = vsel %vm245_vm0, %v5945_v60, 0.0  ;;  %4443 = vrcp.f32 %v2715_v2 }
 0xadf   :  { %3849 = vmatmul.msk.f32.vlgmr.msra.gmra.mxu3 %vm245_vm0, %v2393_v30  ;;  %v3385_v37 = vsel %vm245_vm0, %v5947_v34, 0.0  ;;  %v5960_v28 = vpop.eup %4437  ;;  %v3369_v17 = vpop.xlane.xlu0 %3368  ;;  %4445 = vpow2.f32 %v2547_v20 }
 0xae0   :  { %2958 = vmatpush.msra.mxu3 %v2038_v5  ;;  %v2559_v35 = vsel %vm245_vm0, %v5960_v28, 0.0  ;;  %v5970_v56 = vpop.eup %4439 }
 0xae1   :  { %v3388_v32 = vsel %vm245_vm0, %v5970_v56, 0.0  ;;  %v5979_v16 = vpop.eup %4441 }
 0xae2   :  { %2959 = vmatpush.msra.mxu3 %v2036_v14  ;;  %2554 = vadd.xlane.f32.xlu1 %v2553_v58  ;;  %v2870_v14 = vpop.xlane.xlu1 %2869  ;;  %v3394_v27 = vsel %vm245_vm0, %v5979_v16, 0.0  ;;  %v3375_v58 = vsub.f32 %v5802_v8, %v3369_v17  ;;  %v4201_v8 = vpack.i.bf16 %v5968_v44, %v5942_v22 }
 0xae3   :  { %3386 = vadd.xlane.f32.xlu0 %v3385_v37  ;;  %4187 = vrot.lane.b32.xlu2 %v4186_v12, %s4627_s24  ;;  %v2878_v26 = vsub.f32 %v5806_v24, %v2870_v14 }
 0xae4   :  { %v4444_v31 = vpop.eup %4443  ;;  %v3381_v37 = vmul.f32 1.442695, %v3375_v58 }
 0xae5   :  { %v2729_v5 = vmul.f32 %v4444_v31, %v5796_v45  ;;  %v5992_v41 = vpop.eup %4445  ;;  %v2879_v45 = vsub.f32 %v5793_v48, %v2873_v59 }
 0xae6   :  { %v2556_v12 = vsel %vm245_vm0, %v5992_v41, 0.0  ;;  %4447 = vpow2.f32 %v3381_v37 }
 0xae7   :  { %4449 = vpow2.f32 %v2881_v61  ;;  %v2885_v17 = vmul.f32 1.442695, %v2879_v45 }
 0xae9   :  { %4451 = vpow2.f32 %v2885_v17 }
 0xaeb   :  { %2560 = vadd.xlane.f32.xlu0 %v2559_v35  ;;  %4192 = vrot.lane.b32.xlu2 %v4191_v19, %s4627_s24  ;;  %v2544_v35 = vsub.f32 %v5773_v29, %v5930_v13  ;;  %v2883_v13 = vmul.f32 1.442695, %v2878_v26 }
 0xaec   :  { %v5999_v19 = vpop.eup %4447 }
 0xaed   :  { %v3391_v50 = vsel %vm245_vm0, %v5999_v19, 0.0  ;;  %v2551_v63 = vmul.f32 1.442695, %v2544_v35  ;;  %v6009_v11 = vpop.eup %4449 }
 0xaee   :  { %v2889_v29 = vsel %vm245_vm0, %v6009_v11, 0.0 }
 0xaef   :  { %4453 = vpow2.f32 %v2551_v63  ;;  %v6014_v59 = vpop.eup %4451 }
 0xaf2   :  { %v5976_v10 = vpop.permute.xlu0 %4177 }
 0xaf3   :  { %3389 = vadd.xlane.f32.xlu0 %v3388_v32  ;;  %v4179_v33 = vunpack.i.l.bf16 %v5976_v10  ;;  %v3213_v32 = vsub.f32 %v5721_v25, %v5915_v1  ;;  %v4180_v42 = vunpack.i.h.bf16 %v5976_v10 }
 0xaf5   :  { %2761 = vmatpush.msra.mxu0 %v4179_v33  ;;  %v6016_v2 = vpop.eup %4453  ;;  %v2895_v33 = vsel %vm245_vm0, %v6014_v59, 0.0 }
 0xaf6   :  { %v2562_v14 = vsel %vm245_vm0, %v6016_v2, 0.0 }
 0xafa   :  { %v5987_v7 = vpop.permute.xlu1 %4182 }
 0xafb   :  { %3395 = vadd.xlane.f32.xlu0 %v3394_v27  ;;  %v4184_v30 = vunpack.i.l.bf16 %v5987_v7  ;;  %4197 = vrot.lane.b32.xlu1 %v4196_v36, %s4627_s24  ;;  %v3217_v27 = vmul.f32 1.442695, %v3213_v32 }
 0xafd   :  { %2762 = vmatpush.msra.mxu0 %v4184_v30  ;;  %v6025_v30 = vpop.xlane.xlu2 %3050 }
 0xafe   :  { %3865 = vmatmul.msk.f32.vlgmr.msra.gmra.mxu0 %vm245_vm0, %v2729_v5 }
 0xb03   :  { %2557 = vadd.xlane.f32.xlu0 %v2556_v12  ;;  %v2880_v12 = vsub.f32 %v5703_v55, %v5893_v51 }
 0xb14   :  { %3392 = vadd.xlane.f32.xlu2 %v3391_v50  ;;  %v4185_v50 = vunpack.i.h.bf16 %v5987_v7 }
 0xb17   :  { %4202 = vrot.lane.b32.xlu0 %v4201_v8, %s4627_s24  ;;  %v2887_v8 = vmul.f32 1.442695, %v2880_v12 }
 0xb1c   :  { %2890 = vadd.xlane.f32.xlu2 %v2889_v29 }
 0xb1d   :  { %v2382_v48 = vpop.xlane.xlu0 %2381 }
 0xb1e   :  { %4455 = vrcp.f32 %v2382_v48 }
 0xb1f   :  { %4457 = vpow2.f32 %v2883_v13 }
 0xb24   :  { %v4456_v24 = vpop.eup %4455  ;;  %2896 = vadd.xlane.f32.xlu2 %v2895_v33 }
 0xb25   :  { %2563 = vadd.xlane.f32.xlu1 %v2562_v14  ;;  %v2219_v20 = vpop.xlane.xlu1 %2218  ;;  %v2385_v31 = vpop.xlane.xlu0 %2384  ;;  %v2394_v36 = vmul.f32 %v4456_v24, %v5831_v46 }
 0xb26   :  { %4459 = vrcp.f32 %v2219_v20  ;;  %v6028_v25 = vpop.eup %4457 }
 0xb27   :  { %3850 = vmatmul.msk.f32.gmra.mxu3 %vm245_vm0, %v2394_v36  ;;  %4461 = vpow2.f32 %v3217_v27  ;;  %v2892_v1 = vsel %vm245_vm0, %v6028_v25, 0.0 }
 0xb2c   :  { %v4460_v5 = vpop.eup %4459  ;;  %2893 = vadd.xlane.f32.xlu2 %v2892_v1 }
 0xb2d   :  { %v2233_v58 = vmul.f32 %v4460_v5, %v5840_v39  ;;  %v2222_v46 = vpop.xlane.xlu1 %2221  ;;  %v2388_v37 = vpop.xlane.xlu0 %2387 }
 0xb2e   :  { %4463 = vrcp.f32 %v2222_v46  ;;  %v3206_v61 = vpop.xlane.xlu2 %3205  ;;  %v6038_v35 = vpop.eup %4461 }
 0xb2f   :  { %v3214_v45 = vsub.f32 %v5869_v62, %v3206_v61  ;;  %3841 = vmatmul.msk.f32.vlgmr.msrb.gmra.mxu1 %vm245_vm0, %v2233_v58  ;;  %v3225_v55 = vsel %vm245_vm0, %v6038_v35, 0.0 }
 0xb30   :  { %2798 = vmatpush.msrb.mxu1 %v4180_v42 }
 0xb31   :  { %v3219_v17 = vmul.f32 1.442695, %v3214_v45 }
 0xb32   :  { %2799 = vmatpush.msrb.mxu1 %v4185_v50 }
 0xb33   :  { %4465 = vpow2.f32 %v3219_v17 }
 0xb34   :  { %v4464_v39 = vpop.eup %4463  ;;  %4467 = vrcp.f32 %v2385_v31  ;;  %3226 = vadd.xlane.f32.xlu2 %v3225_v55 }
 0xb35   :  { %4469 = vpow2.f32 %v2887_v8  ;;  %v2718_v51 = vpop.xlane.xlu1 %2717  ;;  %v2721_v62 = vpop.xlane.xlu0 %2720  ;;  %v2234_v10 = vmul.f32 %v4464_v39, %v5853_v0 }
 0xb36   :  { %4471 = vrcp.f32 %v2718_v51  ;;  %v2724_v63 = vpop.xlane.xlu2 %2723 }
 0xb37   :  { %3842 = vmatmul.msk.f32.gmra.mxu1 %vm245_vm0, %v2234_v10  ;;  %4473 = vrcp.f32 %v2388_v37 }
 0xb39   :  { %v6045_v7 = vpop.eup %4465 }
 0xb3a   :  { %v4468_v26 = vpop.eup %4467  ;;  %v3228_v29 = vsel %vm245_vm0, %v6045_v7, 0.0 }
 0xb3b   :  { %v6049_v48 = vpop.eup %4469  ;;  %3229 = vadd.xlane.f32.xlu1 %v3228_v29  ;;  %v2395_v32 = vmul.f32 %v4468_v26, %v5842_v9 }
 0xb3c   :  { %v4472_v13 = vpop.eup %4471  ;;  %v2898_v31 = vsel %vm245_vm0, %v6049_v48, 0.0 }
 0xb3d   :  { %v2225_v33 = vpop.xlane.xlu1 %2224  ;;  %v3209_v24 = vpop.xlane.xlu0 %3208  ;;  %v2730_v0 = vmul.f32 %v4472_v13, %v5874_v21 }
 0xb3e   :  { %4475 = vrcp.f32 %v2225_v33  ;;  %v3215_v14 = vsub.f32 %v5899_v54, %v3209_v24  ;;  %v3057_v20 = vpop.xlane.xlu2 %3056  ;;  %v4474_v27 = vpop.eup %4473 }
 0xb3f   :  { %3851 = vmatmul.msk.f32.vlgmr.msra.gmra.mxu1 %vm245_vm0, %v2395_v32  ;;  %3866 = vmatmul.msk.f32.gmra.mxu0 %vm245_vm0, %v2730_v0  ;;  %v2396_v54 = vmul.f32 %v4474_v27, %v5857_v47 }
 0xb40   :  { %v3221_v36 = vmul.f32 1.442695, %v3215_v14 }
 0xb41   :  { %2899 = vadd.xlane.f32.xlu0 %v2898_v31 }
 0xb42   :  { %4477 = vpow2.f32 %v3221_v36 }
 0xb43   :  { %4479 = vrcp.f32 %v2721_v62 }
 0xb44   :  { %v4476_v9 = vpop.eup %4475 }
 0xb45   :  { %v2235_v1 = vmul.f32 %v4476_v9, %v5897_v57  ;;  %v2228_v21 = vpop.xlane.xlu1 %2227  ;;  %v3054_v5 = vpop.xlane.xlu0 %3053 }
 0xb46   :  { %4481 = vrcp.f32 %v2228_v21  ;;  %v4188_v12 = vpop.permute.xlu2 %4187 }
 0xb47   :  { %4483 = vrcp.f32 %v6025_v30  ;;  %v4190_v58 = vunpack.i.h.bf16 %v4188_v12  ;;  %v4189_v46 = vunpack.i.l.bf16 %v4188_v12  ;;  %3843 = vmatmul.msk.f32.vlgmr.msra.gmra.mxu2 %vm245_vm0, %v2235_v1  ;;  %3852 = vmatmul.msk.f32.gmra.mxu1 %vm245_vm0, %v2396_v54 }
 0xb48   :  { %v6063_v37 = vpop.eup %4477  ;;  %2929 = vmatpush.msra.mxu2 %v5913_v6  ;;  %4485 = vrcp.f32 %v2724_v63 }
 0xb49   :  { %3097 = vmatpush.msrb.mxu0 %v4189_v46  ;;  %3134 = vmatpush.msra.mxu1 %v4190_v58  ;;  %v3231_v57 = vsel %vm245_vm0, %v6063_v37, 0.0  ;;  %v4480_v47 = vpop.eup %4479  ;;  %4487 = vrcp.f32 %v3054_v5 }
 0xb4a   :  { %2930 = vmatpush.msra.mxu2 %v5887_v38  ;;  %3232 = vadd.xlane.f32.xlu2 %v3231_v57  ;;  %v2731_v61 = vmul.f32 %v4480_v47, %v5876_v4 }
 0xb4c   :  { %v4482_v30 = vpop.eup %4481 }
 0xb4d   :  { %v4484_v42 = vpop.eup %4483  ;;  %v3212_v45 = vpop.xlane.xlu1 %3211  ;;  %v2236_v8 = vmul.f32 %v4482_v30, %v5919_v53 }
 0xb4e   :  { %v3060_v50 = vpop.xlane.xlu0 %3059  ;;  %v3216_v6 = vsub.f32 %v5934_v18, %v3212_v45  ;;  %v4193_v17 = vpop.permute.xlu2 %4192  ;;  %v3065_v38 = vmul.f32 %v4484_v42, %v5808_v52 }
 0xb4f   :  { %v4195_v55 = vunpack.i.h.bf16 %v4193_v17  ;;  %v4194_v39 = vunpack.i.l.bf16 %v4193_v17  ;;  %3844 = vmatmul.msk.f32.gmra.mxu2 %vm245_vm0, %v2236_v8  ;;  %3867 = vmatmul.msk.f32.vlgmr.msrb.gmra.mxu1 %vm245_vm0, %v2731_v61  ;;  %v4486_v4 = vpop.eup %4485 }
 0xb50   :  { %v3223_v51 = vmul.f32 1.442695, %v3216_v6  ;;  %v4488_v53 = vpop.eup %4487  ;;  %v2732_v10 = vmul.f32 %v4486_v4, %v5879_v49 }
 0xb51   :  { %3098 = vmatpush.msrb.mxu0 %v4194_v39  ;;  %3135 = vmatpush.msra.mxu1 %v4195_v55  ;;  %v3066_v52 = vmul.f32 %v4488_v53, %v5917_v23 }
 0xb52   :  { %4489 = vpow2.f32 %v3223_v51  ;;  %3881 = vmatmul.msk.f32.vlgmr.msrb.gmra.mxu0 %vm245_vm0, %v3065_v38 }
 0xb53   :  { %4491 = vrcp.f32 %v3057_v20 }
 0xb55   :  { %v2555_v18 = vpop.xlane.xlu1 %2554 }
 0xb56   :  { %v3387_v62 = vpop.xlane.xlu0 %3386  ;;  %4493 = vrcp.f32 %v2555_v18 }
 0xb57   :  { %3868 = vmatmul.msk.f32.gmra.mxu1 %vm245_vm0, %v2732_v10  ;;  %4495 = vrcp.f32 %v3060_v50 }
 0xb58   :  { %v6078_v63 = vpop.eup %4489 }
 0xb59   :  { %v3234_v26 = vsel %vm245_vm0, %v6078_v63, 0.0  ;;  %v4492_v29 = vpop.eup %4491 }
 0xb5a   :  { %3235 = vadd.xlane.f32.xlu2 %v3234_v26  ;;  %3882 = vmatmul.msk.f32.gmra.mxu0 %vm245_vm0, %v3066_v52  ;;  %v3067_v32 = vmul.f32 %v4492_v29, %v5901_v15 }
 0xb5c   :  { %v4494_v13 = vpop.eup %4493 }
 0xb5d   :  { %v2569_v49 = vmul.f32 %v4494_v13, %v5945_v60  ;;  %v4496_v24 = vpop.eup %4495 }
 0xb5e   :  { %v2561_v33 = vpop.xlane.xlu0 %2560  ;;  %v3068_v60 = vmul.f32 %v4496_v24, %v5932_v40 }
 0xb5f   :  { %4497 = vrcp.f32 %v2561_v33  ;;  %3857 = vmatmul.msk.f32.vlgmr.msrb.gmra.mxu2 %vm245_vm0, %v2569_v49  ;;  %3883 = vmatmul.msk.f32.vlgmr.msra.gmra.mxu1 %vm245_vm0, %v3067_v32 }
 0xb60   :  { %3265 = vmatpush.msrb.mxu2 %v5958_v3 }
 0xb62   :  { %v2428_v23 = vpop.f32.mrf.mxu3  ;;  %3266 = vmatpush.msrb.mxu2 %v5942_v22 }
 0xb63   :  { %v2475_v0 = vmin.f32 %v2428_v23, 0.0  ;;  %vm2471_vm15 = vcmp.gt.f32.partialorder %v2428_v23, 0.0 }
 0xb65   :  { %v4498_v14 = vpop.eup %4497  ;;  %v2479_v20 = vmul.f32 1.442695, %v2475_v0 }
 0xb66   :  { %v2571_v31 = vmul.f32 %v4498_v14, %v5960_v28  ;;  %v3390_v15 = vpop.xlane.xlu0 %3389 }
 0xb67   :  { %4499 = vpow2.f32 %v2479_v20  ;;  %3884 = vmatmul.msk.f32.gmra.mxu1 %vm245_vm0, %v3068_v60 }
 0xb68   :  { %3859 = vmatmul.msk.f32.vlgmr.msrb.gmra.mxu3 %vm245_vm0, %v2571_v31 }
 0xb69   :  { %3294 = vmatpush.msrb.mxu3 %v5981_v43 }
 0xb6b   :  { %3295 = vmatpush.msrb.mxu3 %v5968_v44 }
 0xb6d   :  { %v4500_v3 = vpop.eup %4499  ;;  %v4198_v22 = vpop.permute.xlu1 %4197 }
 0xb6e   :  { %v3853_v36 = vadd.f32 -1.0, %v4500_v3  ;;  %v3396_v27 = vpop.xlane.xlu0 %3395  ;;  %v4200_v9 = vunpack.i.h.bf16 %v4198_v22  ;;  %v4199_v1 = vunpack.i.l.bf16 %v4198_v22 }
 0xb70   :  { %v2491_v28 = vsel %vm2471_vm15, %v2428_v23, %v3853_v36  ;;  %3433 = vmatpush.msra.mxu0 %v4199_v1  ;;  %3470 = vmatpush.msrb.mxu1 %v4200_v9 }
 0xb71   :  { %3507 = vrot.lane.b32.xlu1 %v2491_v28, %s4627_s24 }
 0xb76   :  { %v2558_v40 = vpop.xlane.xlu0 %2557 }
 0xb77   :  { %4501 = vrcp.f32 %v2558_v40 }
 0xb7b   :  { %v2764_v21 = vpop.f32.mrf.mxu0 }
 0xb7c   :  { %v2811_v54 = vmin.f32 %v2764_v21, 0.0  ;;  %vm2807_vm1 = vcmp.gt.f32.partialorder %v2764_v21, 0.0 }
 0xb7d   :  { %v4502_v5 = vpop.eup %4501 }
 0xb7e   :  { %v2570_v43 = vmul.f32 %v4502_v5, %v5992_v41  ;;  %v2815_v44 = vmul.f32 1.442695, %v2811_v54 }
 0xb80   :  { %3858 = vmatmul.msk.f32.gmra.mxu2 %vm245_vm0, %v2570_v43  ;;  %4503 = vpow2.f32 %v2815_v44 }
 0xb81   :  { %4505 = vrcp.f32 %v3387_v62 }
 0xb86   :  { %v4504_v12 = vpop.eup %4503 }
 0xb87   :  { %v4506_v58 = vpop.eup %4505  ;;  %v3869_v46 = vadd.f32 -1.0, %v4504_v12  ;;  %v3393_v57 = vpop.xlane.xlu2 %3392 }
 0xb88   :  { %4507 = vrcp.f32 %v3393_v57  ;;  %v3401_v45 = vmul.f32 %v4506_v58, %v5947_v34 }
 0xb89   :  { %v4203_v47 = vpop.permute.xlu0 %4202  ;;  %4509 = vrcp.f32 %v3390_v15  ;;  %v2827_v61 = vsel %vm2807_vm1, %v2764_v21, %v3869_v46 }
 0xb8a   :  { %v4205_v30 = vunpack.i.h.bf16 %v4203_v47  ;;  %v4204_v42 = vunpack.i.l.bf16 %v4203_v47  ;;  %3523 = vrot.lane.b32.xlu2 %v2827_v61, %s4627_s24  ;;  %4511 = vrcp.f32 %v3396_v27 }
 0xb8c   :  { %3434 = vmatpush.msra.mxu0 %v4204_v42  ;;  %3471 = vmatpush.msrb.mxu1 %v4205_v30 }
 0xb8d   :  { %3897 = vmatmul.msk.f32.vlgmr.msra.gmra.mxu0 %vm245_vm0, %v3401_v45 }
 0xb8e   :  { %v4508_v41 = vpop.eup %4507 }
 0xb8f   :  { %v4510_v50 = vpop.eup %4509  ;;  %v3403_v8 = vmul.f32 %v4508_v41, %v5999_v19  ;;  %v2891_v6 = vpop.xlane.xlu2 %2890 }
 0xb90   :  { %4513 = vrcp.f32 %v2891_v6  ;;  %v3402_v17 = vmul.f32 %v4510_v50, %v5970_v56  ;;  %v4512_v55 = vpop.eup %4511 }
 0xb91   :  { %3899 = vmatmul.msk.f32.vlgmr.msrb.gmra.mxu1 %vm245_vm0, %v3403_v8  ;;  %v3404_v51 = vmul.f32 %v4512_v55, %v5979_v16 }
 0xb95   :  { %3898 = vmatmul.msk.f32.gmra.mxu0 %vm245_vm0, %v3402_v17 }
 0xb96   :  { %v4514_v34 = vpop.eup %4513 }
 0xb97   :  { %v2905_v39 = vmul.f32 %v4514_v34, %v6009_v11  ;;  %v2897_v38 = vpop.xlane.xlu2 %2896 }
 0xb98   :  { %v2564_v4 = vpop.xlane.xlu1 %2563 }
 0xb99   :  { %4515 = vrcp.f32 %v2564_v4  ;;  %3873 = vmatmul.msk.f32.vlgmr.msra.gmra.mxu2 %vm245_vm0, %v2905_v39  ;;  %3900 = vmatmul.msk.f32.gmra.mxu1 %vm245_vm0, %v3404_v51 }
 0xb9a   :  { %4517 = vrcp.f32 %v2897_v38 }
 0xb9f   :  { %v4516_v19 = vpop.eup %4515  ;;  %v2894_v53 = vpop.xlane.xlu2 %2893 }
 0xba0   :  { %4519 = vrcp.f32 %v2894_v53  ;;  %v2572_v56 = vmul.f32 %v4516_v19, %v6016_v2  ;;  %v4518_v18 = vpop.eup %4517 }
 0xba1   :  { %v2907_v16 = vmul.f32 %v4518_v18, %v6014_v59 }
 0xba2   :  { %3860 = vmatmul.msk.f32.gmra.mxu3 %vm245_vm0, %v2572_v56 }
 0xba6   :  { %v4520_v62 = vpop.eup %4519 }
 0xba7   :  { %v3227_v11 = vpop.xlane.xlu2 %3226  ;;  %v2906_v10 = vmul.f32 %v4520_v62, %v6028_v25 }
 0xba8   :  { %4521 = vrcp.f32 %v3227_v11 }
 0xba9   :  { %3874 = vmatmul.msk.f32.gmra.mxu2 %vm245_vm0, %v2906_v10 }
 0xbaa   :  { %3875 = vmatmul.msk.f32.vlgmr.msra.gmra.mxu3 %vm245_vm0, %v2907_v16  ;;  %v2431_v52 = vpop.f32.mrf.mxu3 }
 0xbab   :  { %v2476_v26 = vmin.f32 %v2431_v52, 0.0  ;;  %vm2472_vm2 = vcmp.gt.f32.partialorder %v2431_v52, 0.0 }
 0xbac   :  { %v6116_v29 = vpop.f32.mrf.mxu1 }
 0xbad   :  { %v2481_v13 = vmul.f32 1.442695, %v2476_v26  ;;  %v2299_v12 = vmin.f32 %v6116_v29, 0.0  ;;  %vm2295_vm6 = vcmp.gt.f32.partialorder %v6116_v29, 0.0 }
 0xbae   :  { %v4522_v2 = vpop.eup %4521  ;;  %v3230_v32 = vpop.xlane.xlu1 %3229 }
 0xbaf   :  { %v3241_v49 = vmul.f32 %v4522_v2, %v6038_v35  ;;  %4523 = vpow2.f32 %v2481_v13  ;;  %v2303_v47 = vmul.f32 1.442695, %v2299_v12 }
 0xbb0   :  { %4525 = vrcp.f32 %v3230_v32 }
 0xbb1   :  { %3889 = vmatmul.msk.f32.vlgmr.msrb.gmra.mxu2 %vm245_vm0, %v3241_v49 }
 0xbb4   :  { %v2900_v25 = vpop.xlane.xlu0 %2899  ;;  %v6120_v59 = vpop.f32.mrf.mxu1 }
 0xbb5   :  { %4527 = vrcp.f32 %v2900_v25  ;;  %v4524_v33 = vpop.eup %4523  ;;  %vm2296_vm14 = vcmp.gt.f32.partialorder %v6120_v59, 0.0 }
 0xbb6   :  { %v4526_v23 = vpop.eup %4525  ;;  %v3854_v24 = vadd.f32 -1.0, %v4524_v33 }
 0xbb7   :  { %v3242_v0 = vmul.f32 %v4526_v23, %v6045_v7 }
 0xbb8   :  { %v2492_v14 = vsel %vm2472_vm2, %v2431_v52, %v3854_v24 }
 0xbb9   :  { %3890 = vmatmul.msk.f32.gmra.mxu2 %vm245_vm0, %v3242_v0  ;;  %3509 = vrot.lane.b32.xlu2 %v2492_v14, %s4627_s24 }
 0xbbb   :  { %v4528_v35 = vpop.eup %4527 }
 0xbbc   :  { %v2908_v20 = vmul.f32 %v4528_v35, %v6049_v48  ;;  %v2465_v31 = vpop.f32.mrf.mxu1  ;;  %v2767_v15 = vpop.f32.mrf.mxu0 }
 0xbbd   :  { %v2477_v60 = vmin.f32 %v2465_v31, 0.0  ;;  %v2812_v3 = vmin.f32 %v2767_v15, 0.0  ;;  %v3233_v36 = vpop.xlane.xlu2 %3232  ;;  %vm2473_vm3 = vcmp.gt.f32.partialorder %v2465_v31, 0.0  ;;  %vm2808_vm4 = vcmp.gt.f32.partialorder %v2767_v15, 0.0 }
 0xbbe   :  { %3876 = vmatmul.msk.f32.gmra.mxu3 %vm245_vm0, %v2908_v20  ;;  %4529 = vrcp.f32 %v3233_v36 }
 0xbbf   :  { %v2483_v22 = vmul.f32 1.442695, %v2477_v60  ;;  %v2817_v27 = vmul.f32 1.442695, %v2812_v3 }
 0xbc1   :  { %4531 = vpow2.f32 %v2483_v22 }
 0xbc2   :  { %4533 = vpow2.f32 %v2817_v27 }
 0xbc4   :  { %v4530_v7 = vpop.eup %4529  ;;  %v6127_v9 = vpop.f32.mrf.mxu1 }
 0xbc5   :  { %v3243_v1 = vmul.f32 %v4530_v7, %v6063_v37  ;;  %v2478_v58 = vmin.f32 %v6127_v9, 0.0  ;;  %vm2474_vm8 = vcmp.gt.f32.partialorder %v6127_v9, 0.0 }
 0xbc7   :  { %v4532_v28 = vpop.eup %4531  ;;  %3891 = vmatmul.msk.f32.vlgmr.msrb.gmra.mxu3 %vm245_vm0, %v3243_v1  ;;  %v2485_v61 = vmul.f32 1.442695, %v2478_v58 }
 0xbc8   :  { %v4534_v48 = vpop.eup %4533  ;;  %v3855_v40 = vadd.f32 -1.0, %v4532_v28 }
 0xbc9   :  { %v3870_v21 = vadd.f32 -1.0, %v4534_v48 }
 0xbca   :  { %v2493_v5 = vsel %vm2473_vm3, %v2465_v31, %v3855_v40  ;;  %v6137_v46 = vpop.f32.mrf.mxu2 }
 0xbcb   :  { %3511 = vrot.lane.b32.xlu0 %v2493_v5, %s4627_s24  ;;  %v2828_v54 = vsel %vm2808_vm4, %v2767_v15, %v3870_v21  ;;  %v2300_v5 = vmin.f32 %v6120_v59, 0.0  ;;  %vm2297_vm4 = vcmp.gt.f32.partialorder %v6137_v46, 0.0 }
 0xbcc   :  { %3525 = vrot.lane.b32.xlu1 %v2828_v54, %s4627_s24  ;;  %v6133_v43 = vpop.f32.mrf.mxu1 }
 0xbcd   :  { %v3236_v44 = vpop.xlane.xlu2 %3235  ;;  %v2813_v17 = vmin.f32 %v6133_v43, 0.0  ;;  %vm2809_vm10 = vcmp.gt.f32.partialorder %v6133_v43, 0.0  ;;  %v2305_v54 = vmul.f32 1.442695, %v2300_v5 }
 0xbce   :  { %4535 = vrcp.f32 %v3236_v44 }
 0xbcf   :  { %v3100_v37 = vpop.f32.mrf.mxu0  ;;  %v2819_v19 = vmul.f32 1.442695, %v2813_v17 }
 0xbd0   :  { %v3147_v57 = vmin.f32 %v3100_v37, 0.0  ;;  %vm3143_vm5 = vcmp.gt.f32.partialorder %v3100_v37, 0.0 }
 0xbd2   :  { %v3151_v30 = vmul.f32 1.442695, %v3147_v57  ;;  %v6142_v39 = vpop.f32.mrf.mxu2 }
 0xbd4   :  { %v4536_v42 = vpop.eup %4535  ;;  %4537 = vpow2.f32 %v3151_v30  ;;  %v2804_v45 = vpop.f32.mrf.mxu1 }
 0xbd5   :  { %v2814_v41 = vmin.f32 %v2804_v45, 0.0  ;;  %v3244_v50 = vmul.f32 %v4536_v42, %v6078_v63  ;;  %4539 = vpow2.f32 %v2303_v47 }
 0xbd6   :  { %4541 = vpow2.f32 %v2485_v61 }
 0xbd7   :  { %v2821_v8 = vmul.f32 1.442695, %v2814_v41  ;;  %3892 = vmatmul.msk.f32.gmra.mxu3 %vm245_vm0, %v3244_v50  ;;  %v3103_v6 = vpop.f32.mrf.mxu0  ;;  %vm2810_vm0 = vcmp.gt.f32.partialorder %v2804_v45, 0.0 }
 0xbd8   :  { %v3148_v55 = vmin.f32 %v3103_v6, 0.0  ;;  %vm3144_vm9 = vcmp.gt.f32.partialorder %v3103_v6, 0.0 }
 0xbd9   :  { %4543 = vpow2.f32 %v2821_v8 }
 0xbda   :  { %v4538_v34 = vpop.eup %4537  ;;  %v3153_v38 = vmul.f32 1.442695, %v3148_v55 }
 0xbdb   :  { %v3885_v51 = vadd.f32 -1.0, %v4538_v34  ;;  %v4540_v4 = vpop.eup %4539 }
 0xbdc   :  { %4545 = vpow2.f32 %v3153_v38  ;;  %v3137_v63 = vpop.f32.mrf.mxu1  ;;  %v4542_v18 = vpop.eup %4541  ;;  %v3845_v11 = vadd.f32 -1.0, %v4540_v4 }
 0xbdd   :  { %v3149_v53 = vmin.f32 %v3137_v63, 0.0  ;;  %v3163_v56 = vsel %vm3143_vm5, %v3100_v37, %v3885_v51  ;;  %4547 = vpow2.f32 %v2819_v19  ;;  %v3856_v52 = vadd.f32 -1.0, %v4542_v18 }
 0xbde   :  { %3539 = vrot.lane.b32.xlu1 %v3163_v56, %s4627_s24  ;;  %v2315_v32 = vsel %vm2295_vm6, %v6116_v29, %v3845_v11  ;;  %vm3145_vm11 = vcmp.gt.f32.partialorder %v3137_v63, 0.0 }
 0xbdf   :  { %v4544_v62 = vpop.eup %4543  ;;  %v3155_v10 = vmul.f32 1.442695, %v3149_v53  ;;  %v2494_v20 = vsel %vm2474_vm8, %v6127_v9, %v3856_v52 }
 0xbe0   :  { %v3872_v16 = vadd.f32 -1.0, %v4544_v62 }
 0xbe1   :  { %4549 = vpow2.f32 %v3155_v10 }
 0xbe2   :  { %v4546_v26 = vpop.eup %4545  ;;  %v2596_v13 = vpop.f32.mrf.mxu2  ;;  %v2830_v2 = vsel %vm2810_vm0, %v2804_v45, %v3872_v16 }
 0xbe3   :  { %v3886_v49 = vadd.f32 -1.0, %v4546_v26  ;;  %v2635_v25 = vmin.f32 %v2596_v13, 0.0  ;;  %3529 = vrot.lane.b32.xlu2 %v2830_v2, %s4627_s24  ;;  %v3508_v33 = vpop.permute.xlu1 %3507  ;;  %v4548_v31 = vpop.eup %4547  ;;  %vm2631_vm12 = vcmp.gt.f32.partialorder %v2596_v13, 0.0  ;;  %v2301_v26 = vmin.f32 %v6137_v46, 0.0 }
 0xbe4   :  { %v3567_v23 = vsel %vm1706_vm7, %v2315_v32, %v3508_v33  ;;  %v3140_v24 = vpop.f32.mrf.mxu1  ;;  %v3871_v3 = vadd.f32 -1.0, %v4548_v31  ;;  %v3524_v48 = vpop.permute.xlu2 %3523 }
 0xbe5   :  { %v2639_v0 = vmul.f32 1.442695, %v2635_v25  ;;  %3583 = vst [vmem:[#allocation2] sm:$0xff] %v3567_v23  ;;  %v3150_v14 = vmin.f32 %v3140_v24, 0.0  ;;  %v3164_v35 = vsel %vm3144_vm9, %v3103_v6, %v3886_v49  ;;  %vm3146_vm13 = vcmp.gt.f32.partialorder %v3140_v24, 0.0 }
 0xbe6   :  { %3541 = vrot.lane.b32.xlu0 %v3164_v35, %s4627_s24  ;;  %3513 = vrot.lane.b32.xlu1 %v2494_v20, %s4627_s24  ;;  %v2829_v27 = vsel %vm2809_vm10, %v6133_v43, %v3871_v3  ;;  %v2307_v32 = vmul.f32 1.442695, %v2301_v26  ;;  %vm2298_vm9 = vcmp.gt.f32.partialorder %v6142_v39, 0.0 }
 0xbe7   :  { %v4550_v29 = vpop.eup %4549  ;;  %4551 = vpow2.f32 %v2639_v0  ;;  %v3157_v15 = vmul.f32 1.442695, %v3150_v14 }
 0xbe8   :  { %v3887_v60 = vadd.f32 -1.0, %v4550_v29 }
 0xbe9   :  { %4553 = vpow2.f32 %v3157_v15 }
 0xbea   :  { %v3165_v36 = vsel %vm3145_vm11, %v3137_v63, %v3887_v60  ;;  %4555 = vpow2.f32 %v2305_v54 }
 0xbeb   :  { %3543 = vrot.lane.b32.xlu2 %v3165_v36, %s4627_s24  ;;  %v6164_v53 = vpop.f32.mrf.mxu3 }
 0xbec   :  { %vm2633_vm10 = vcmp.gt.f32.partialorder %v6164_v53, 0.0 }
 0xbed   :  { %v4552_v22 = vpop.eup %4551 }
 0xbee   :  { %v3861_v7 = vadd.f32 -1.0, %v4552_v22  ;;  %3527 = vrot.lane.b32.xlu0 %v2829_v27, %s4627_s24 }
 0xbef   :  { %v4554_v9 = vpop.eup %4553 }
 0xbf0   :  { %v2651_v1 = vsel %vm2631_vm12, %v2596_v13, %v3861_v7  ;;  %v3888_v28 = vadd.f32 -1.0, %v4554_v9  ;;  %v4556_v12 = vpop.eup %4555 }
 0xbf1   :  { %v3571_v40 = vsel %vm1706_vm7, %v2651_v1, %v3524_v48  ;;  %v3846_v57 = vadd.f32 -1.0, %v4556_v12 }
 0xbf2   :  { %3584 = vst [vmem:[#allocation2 + $0x8] sm:$0xff] %v3571_v40  ;;  %v3166_v21 = vsel %vm3146_vm13, %v3140_v24, %v3888_v28 }
 0xbf3   :  { %3545 = vrot.lane.b32.xlu1 %v3166_v21, %s4627_s24  ;;  %v2316_v45 = vsel %vm2296_vm14, %v6120_v59, %v3846_v57 }
 0xc03   :  { %v2599_v52 = vpop.f32.mrf.mxu2 }
 0xc04   :  { %v2636_v2 = vmin.f32 %v2599_v52, 0.0  ;;  %vm2632_vm0 = vcmp.gt.f32.partialorder %v2599_v52, 0.0 }
 0xc06   :  { %v2641_v25 = vmul.f32 1.442695, %v2636_v2 }
 0xc0a   :  { %v3436_v43 = vpop.f32.mrf.mxu0 }
 0xc0b   :  { %v3483_v44 = vmin.f32 %v3436_v43, 0.0  ;;  %vm3479_vm15 = vcmp.gt.f32.partialorder %v3436_v43, 0.0 }
 0xc0d   :  { %v3487_v37 = vmul.f32 1.442695, %v3483_v44 }
 0xc0e   :  { %v3473_v58 = vpop.f32.mrf.mxu1 }
 0xc0f   :  { %4557 = vpow2.f32 %v3487_v37  ;;  %v3485_v47 = vmin.f32 %v3473_v58, 0.0  ;;  %vm3481_vm1 = vcmp.gt.f32.partialorder %v3473_v58, 0.0 }
 0xc11   :  { %v3491_v30 = vmul.f32 1.442695, %v3485_v47 }
 0xc12   :  { %v3439_v42 = vpop.f32.mrf.mxu0 }
 0xc13   :  { %v3484_v61 = vmin.f32 %v3439_v42, 0.0  ;;  %4559 = vpow2.f32 %v3491_v30  ;;  %v3510_v41 = vpop.permute.xlu2 %3509  ;;  %vm3480_vm2 = vcmp.gt.f32.partialorder %v3439_v42, 0.0  ;;  %v2637_v30 = vmin.f32 %v6164_v53, 0.0 }
 0xc14   :  { %v3568_v6 = vsel %vm1706_vm7, %v2316_v45, %v3510_v41 }
 0xc15   :  { %v4558_v50 = vpop.eup %4557  ;;  %v3489_v8 = vmul.f32 1.442695, %v3484_v61  ;;  %3587 = vst [vmem:[#allocation2 + $0x20] sm:$0xff] %v3568_v6  ;;  %v2643_v45 = vmul.f32 1.442695, %v2637_v30 }
 0xc16   :  { %v3901_v17 = vadd.f32 -1.0, %v4558_v50  ;;  %v3476_v55 = vpop.f32.mrf.mxu1 }
 0xc17   :  { %4561 = vpow2.f32 %v3489_v8  ;;  %v3486_v34 = vmin.f32 %v3476_v55, 0.0  ;;  %vm3482_vm3 = vcmp.gt.f32.partialorder %v3476_v55, 0.0 }
 0xc18   :  { %v3499_v38 = vsel %vm3479_vm15, %v3436_v43, %v3901_v17 }
 0xc19   :  { %3555 = vrot.lane.b32.xlu0 %v3499_v38, %s4627_s24  ;;  %v4560_v51 = vpop.eup %4559  ;;  %v3493_v4 = vmul.f32 1.442695, %v3486_v34 }
 0xc1a   :  { %v3903_v19 = vadd.f32 -1.0, %v4560_v51 }
 0xc1b   :  { %4563 = vpow2.f32 %v3493_v4 }
 0xc1c   :  { %v3501_v63 = vsel %vm3481_vm1, %v3473_v58, %v3903_v19  ;;  %4565 = vpow2.f32 %v2307_v32  ;;  %v2932_v20 = vpop.f32.mrf.mxu2 }
 0xc1d   :  { %v4562_v59 = vpop.eup %4561  ;;  %3559 = vrot.lane.b32.xlu1 %v3501_v63, %s4627_s24  ;;  %v2971_v60 = vmin.f32 %v2932_v20, 0.0  ;;  %vm2967_vm8 = vcmp.gt.f32.partialorder %v2932_v20, 0.0 }
 0xc1e   :  { %v3902_v56 = vadd.f32 -1.0, %v4562_v59 }
 0xc1f   :  { %v2975_v40 = vmul.f32 1.442695, %v2971_v60 }
 0xc20   :  { %v3500_v18 = vsel %vm3480_vm2, %v3439_v42, %v3902_v56 }
 0xc21   :  { %3557 = vrot.lane.b32.xlu2 %v3500_v18, %s4627_s24  ;;  %v4564_v62 = vpop.eup %4563 }
 0xc22   :  { %v3904_v11 = vadd.f32 -1.0, %v4564_v62  ;;  %v4566_v0 = vpop.eup %4565 }
 0xc23   :  { %v3847_v31 = vadd.f32 -1.0, %v4566_v0 }
 0xc24   :  { %v3502_v10 = vsel %vm3482_vm3, %v3476_v55, %v3904_v11 }
 0xc25   :  { %v2628_v16 = vpop.f32.mrf.mxu3  ;;  %3561 = vrot.lane.b32.xlu0 %v3502_v10, %s4627_s24  ;;  %v2317_v3 = vsel %vm2297_vm4, %v6137_v46, %v3847_v31  ;;  %v2302_v46 = vmin.f32 %v6142_v39, 0.0  ;;  %s3605_s24 = sshll.u32 %s6198_s3, 4  ;;  %s3606_s24 = int_to_ptr.hbm [resolvable:$true] %s3605_s24 }
 0xc26   :  { %v2638_v13 = vmin.f32 %v2628_v16, 0.0  ;;  %vm2634_vm5 = vcmp.gt.f32.partialorder %v2628_v16, 0.0 }
 0xc27   :  { %v2309_v37 = vmul.f32 1.442695, %v2302_v46 }
 0xc28   :  { %v2645_v49 = vmul.f32 1.442695, %v2638_v13 }
 0xc2a   :  { %4567 = vpow2.f32 %v2645_v49 }
 0xc2b   :  { %4569 = vpow2.f32 %v2641_v25 }
 0xc2c   :  { %v2935_v5 = vpop.f32.mrf.mxu2 }
 0xc2d   :  { %v2961_v33 = vpop.f32.mrf.mxu3  ;;  %v2972_v43 = vmin.f32 %v2935_v5, 0.0  ;;  %vm2968_vm11 = vcmp.gt.f32.partialorder %v2935_v5, 0.0 }
 0xc2e   :  { %v2973_v23 = vmin.f32 %v2961_v33, 0.0  ;;  %vm2969_vm6 = vcmp.gt.f32.partialorder %v2961_v33, 0.0 }
 0xc2f   :  { %v2977_v57 = vmul.f32 1.442695, %v2972_v43 }
 0xc30   :  { %v2979_v24 = vmul.f32 1.442695, %v2973_v23  ;;  %v4568_v14 = vpop.eup %4567 }
 0xc31   :  { %v4570_v35 = vpop.eup %4569  ;;  %v3864_v29 = vadd.f32 -1.0, %v4568_v14 }
 0xc32   :  { %4571 = vpow2.f32 %v2979_v24  ;;  %v3862_v15 = vadd.f32 -1.0, %v4570_v35 }
 0xc33   :  { %v2654_v36 = vsel %vm2634_vm5, %v2628_v16, %v3864_v29  ;;  %4573 = vpow2.f32 %v2975_v40 }
 0xc34   :  { %v2652_v9 = vsel %vm2632_vm0, %v2599_v52, %v3862_v15  ;;  %4575 = vpow2.f32 %v2309_v37  ;;  %v3268_v4 = vpop.f32.mrf.mxu2 }
 0xc35   :  { %4577 = vpow2.f32 %v2977_v57  ;;  %v3307_v0 = vmin.f32 %v3268_v4, 0.0  ;;  %vm3303_vm14 = vcmp.gt.f32.partialorder %v3268_v4, 0.0 }
 0xc36   :  { %4579 = vpow2.f32 %v2643_v45 }
 0xc38   :  { %v4572_v7 = vpop.eup %4571 }
 0xc39   :  { %v3879_v54 = vadd.f32 -1.0, %v4572_v7  ;;  %v4574_v47 = vpop.eup %4573 }
 0xc3a   :  { %v3877_v42 = vadd.f32 -1.0, %v4574_v47  ;;  %v4576_v41 = vpop.eup %4575 }
 0xc3b   :  { %v2989_v44 = vsel %vm2969_vm6, %v2961_v33, %v3879_v54  ;;  %v4578_v17 = vpop.eup %4577  ;;  %v3848_v34 = vadd.f32 -1.0, %v4576_v41 }
 0xc3c   :  { %v2987_v50 = vsel %vm2967_vm8, %v2932_v20, %v3877_v42  ;;  %v3878_v38 = vadd.f32 -1.0, %v4578_v17  ;;  %v4580_v18 = vpop.eup %4579  ;;  %v3271_v2 = vpop.f32.mrf.mxu2 }
 0xc3d   :  { %v3512_v22 = vpop.permute.xlu0 %3511  ;;  %v3530_v27 = vpop.permute.xlu2 %3529  ;;  %v2318_v19 = vsel %vm2298_vm9, %v6142_v39, %v3848_v34  ;;  %v3863_v10 = vadd.f32 -1.0, %v4580_v18  ;;  %v3308_v32 = vmin.f32 %v3271_v2, 0.0  ;;  %vm3304_vm13 = vcmp.gt.f32.partialorder %v3271_v2, 0.0 }
 0xc3e   :  { %v3569_v1 = vsel %vm1706_vm7, %v2317_v3, %v3512_v22  ;;  %v3574_v28 = vsel %vm1706_vm7, %v2654_v36, %v3530_v27  ;;  %v3526_v48 = vpop.permute.xlu1 %3525  ;;  %v2988_v59 = vsel %vm2968_vm11, %v2935_v5, %v3878_v38 }
 0xc3f   :  { %3591 = vst [vmem:[#allocation2 + $0x40] sm:$0xff] %v3569_v1  ;;  %v3572_v21 = vsel %vm1706_vm7, %v2652_v9, %v3526_v48  ;;  %v2653_v52 = vsel %vm2633_vm10, %v6164_v53, %v3863_v10  ;;  %v3313_v23 = vmul.f32 1.442695, %v3308_v32  ;;  %v3311_v53 = vmul.f32 1.442695, %v3307_v0 }
 0xc40   :  { %3596 = vst [vmem:[#allocation2 + $0x68] sm:$0xff] %v3574_v28 }
 0xc41   :  { %3588 = vst [vmem:[#allocation2 + $0x28] sm:$0xff] %v3572_v21  ;;  %v2964_v61 = vpop.f32.mrf.mxu3 }
 0xc42   :  { %v2974_v8 = vmin.f32 %v2964_v61, 0.0  ;;  %vm2970_vm12 = vcmp.gt.f32.partialorder %v2964_v61, 0.0 }
 0xc44   :  { %v2981_v51 = vmul.f32 1.442695, %v2974_v8 }
 0xc45   :  { %v3544_v12 = vpop.permute.xlu2 %3543 }
 0xc46   :  { %v3577_v58 = vsel %vm1706_vm7, %v2989_v44, %v3544_v12  ;;  %4581 = vpow2.f32 %v2981_v51 }
 0xc47   :  { %3593 = vst [vmem:[#allocation2 + $0x50] sm:$0xff] %v3577_v58  ;;  %4583 = vpow2.f32 %v3313_v23 }
 0xc48   :  { %4585 = vpow2.f32 %v3311_v53 }
 0xc4a   :  { %v3297_v35 = vpop.f32.mrf.mxu3 }
 0xc4b   :  { %v3309_v31 = vmin.f32 %v3297_v35, 0.0  ;;  %vm3305_vm15 = vcmp.gt.f32.partialorder %v3297_v35, 0.0 }
 0xc4c   :  { %v4582_v16 = vpop.eup %4581 }
 0xc4d   :  { %v3880_v13 = vadd.f32 -1.0, %v4582_v16  ;;  %v4584_v24 = vpop.eup %4583  ;;  %v3315_v60 = vmul.f32 1.442695, %v3309_v31 }
 0xc4e   :  { %v3894_v14 = vadd.f32 -1.0, %v4584_v24  ;;  %v4586_v22 = vpop.eup %4585 }
 0xc4f   :  { %v2990_v49 = vsel %vm2970_vm12, %v2964_v61, %v3880_v13  ;;  %4587 = vpow2.f32 %v3315_v60  ;;  %v3893_v27 = vadd.f32 -1.0, %v4586_v22 }
 0xc50   :  { %v3540_v6 = vpop.permute.xlu1 %3539  ;;  %v3324_v20 = vsel %vm3304_vm13, %v3271_v2, %v3894_v14 }
 0xc51   :  { %v3575_v55 = vsel %vm1706_vm7, %v2987_v50, %v3540_v6  ;;  %v3323_v1 = vsel %vm3303_vm14, %v3268_v4, %v3893_v27 }
 0xc52   :  { %3585 = vst [vmem:[#allocation2 + $0x10] sm:$0xff] %v3575_v55 }
 0xc55   :  { %v4588_v9 = vpop.eup %4587 }
 0xc56   :  { %v3895_v48 = vadd.f32 -1.0, %v4588_v9 }
 0xc58   :  { %v3542_v63 = vpop.permute.xlu0 %3541  ;;  %v3514_v56 = vpop.permute.xlu1 %3513  ;;  %v3325_v21 = vsel %vm3305_vm15, %v3297_v35, %v3895_v48 }
 0xc59   :  { %v3576_v62 = vsel %vm1706_vm7, %v2988_v59, %v3542_v63  ;;  %v3570_v11 = vsel %vm1706_vm7, %v2318_v19, %v3514_v56 }
 0xc5a   :  { %3589 = vst [vmem:[#allocation2 + $0x30] sm:$0xff] %v3576_v62  ;;  %v3300_v3 = vpop.f32.mrf.mxu3 }
 0xc5b   :  { %3595 = vst [vmem:[#allocation2 + $0x60] sm:$0xff] %v3570_v11  ;;  %v3310_v36 = vmin.f32 %v3300_v3, 0.0  ;;  %vm3306_vm1 = vcmp.gt.f32.partialorder %v3300_v3, 0.0 }
 0xc5d   :  { %v3317_v7 = vmul.f32 1.442695, %v3310_v36 }
 0xc5f   :  { %4589 = vpow2.f32 %v3317_v7 }
 0xc60   :  { %v3528_v26 = vpop.permute.xlu0 %3527 }
 0xc61   :  { %v3573_v39 = vsel %vm1706_vm7, %v2653_v52, %v3528_v26 }
 0xc62   :  { %3592 = vst [vmem:[#allocation2 + $0x48] sm:$0xff] %v3573_v39 }
 0xc65   :  { %v3546_v25 = vpop.permute.xlu1 %3545  ;;  %v4590_v54 = vpop.eup %4589 }
 0xc66   :  { %v3578_v33 = vsel %vm1706_vm7, %v2990_v49, %v3546_v25  ;;  %v3896_v43 = vadd.f32 -1.0, %v4590_v54 }
 0xc67   :  { %3597 = vst [vmem:[#allocation2 + $0x70] sm:$0xff] %v3578_v33 }
 0xc68   :  { %v3326_v44 = vsel %vm3306_vm1, %v3300_v3, %v3896_v43 }
 0xc7b   :  { %v3558_v29 = vpop.permute.xlu2 %3557 }
 0xc7c   :  { %v3580_v15 = vsel %vm1706_vm7, %v3324_v20, %v3558_v29 }
 0xc7d   :  { %3590 = vst [vmem:[#allocation2 + $0x38] sm:$0xff] %v3580_v15 }
 0xc8b   :  { %v3556_v28 = vpop.permute.xlu0 %3555 }
 0xc8c   :  { %v3579_v40 = vsel %vm1706_vm7, %v3323_v1, %v3556_v28 }
 0xc8d   :  { %3586 = vst [vmem:[#allocation2 + $0x18] sm:$0xff] %v3579_v40 }
 0xc8f   :  { %v3560_v5 = vpop.permute.xlu1 %3559 }
 0xc90   :  { %v3581_v46 = vsel %vm1706_vm7, %v3325_v21, %v3560_v5 }
 0xc91   :  { %3594 = vst [vmem:[#allocation2 + $0x58] sm:$0xff] %v3581_v46 }
 0xc97   :  { %v3562_v12 = vpop.permute.xlu0 %3561 }
 0xc98   :  { %v3582_v37 = vsel %vm1706_vm7, %v3326_v44, %v3562_v12 }
 0xc99   :  { %3598 = vst [vmem:[#allocation2 + $0x78] sm:$0xff] %v3582_v37 }
 0xc9a   :  { %3611 = dma.vmem_to_hbm [thread:$0]  %s3604_s6, 2048, %s3606_s24, [#allocation3], %s4634_s7, %s4634_s7, %s4631_s26  }
 0xc9b   :  { %4615 = dma.done.wait [#allocation3], 2048  }
 0xc9c   :  { %4616 = vsyncadd [#allocation3], 4294965248 }
 0xc9d   :  { %3616 = vsyncpa [#allocation3], 1 }

</bundles_post_ra>
